<compile_context>
chip_gen: v7x
topology: tpu7x:2x2x1
jax: 0.10.0
libtpu: 0.0.40
codegen_flags: <defaults>
</compile_context>

<pallas_src>
import jax
import jax.numpy as jnp
from jax.experimental import pallas as pl
from jax.experimental.pallas import tpu as pltpu


def _round_up(a: int, b: int) -> int:
    return (a + b - 1) // b * b


def _swiglu_mlp_kernel(x_ref, w1_ref, w3_ref, w2_ref, o_ref):
    # x_ref:  (tm, dim)      bf16
    # w1_ref: (dim, inter)   bf16   (W1^T)
    # w3_ref: (dim, inter)   bf16   (W3^T)
    # w2_ref: (inter, dim)   bf16   (W2^T)
    # o_ref:  (tm, dim)      bf16 (or f32)
    x = x_ref[...]

    # Two aligned MXU passes (no post-dot relayout), f32 accumulation.
    h1 = jnp.dot(x, w1_ref[...], preferred_element_type=jnp.float32)
    h3 = jnp.dot(x, w3_ref[...], preferred_element_type=jnp.float32)

    # SiLU gate in f32 (sigmoid on EUP; v5e has no bf16 VPU/EUP). Hidden under MXU.
    gated = (h1 * jax.nn.sigmoid(h1)) * h3

    out = jnp.dot(gated.astype(jnp.bfloat16), w2_ref[...],
                  preferred_element_type=jnp.float32)
    o_ref[...] = out.astype(o_ref.dtype)


def prepare_mlp_params(w1, w2, w3):
    """One-time weight prep: transpose to matmul layout + bf16 cast.

    PyTorch nn.Linear layouts: w1, w3: [inter, dim]; w2: [dim, inter].
    Call once at parameter init and reuse across forwards.
    """
    return dict(
        w1t=jnp.asarray(w1).T.astype(jnp.bfloat16),   # [dim, inter]
        w3t=jnp.asarray(w3).T.astype(jnp.bfloat16),   # [dim, inter]
        w2t=jnp.asarray(w2).T.astype(jnp.bfloat16),   # [inter, dim]
    )


def _select_tm(tokens: int, tm: int) -> int:
    # Clamp to the (sublane-rounded) token count for small inputs.
    tm = min(tm, _round_up(tokens, 16))
    # v7x has 2 TensorCores: for larger token counts make sure the grid has
    # >= 2 steps so the "parallel" token axis actually shards across cores.
    if tokens >= 256:
        tm = min(tm, _round_up((tokens + 1) // 2, 128))
        tm = max(tm, 128)
    return tm


def _vmem_limit_bytes(tm: int, dim: int, inter: int, out_bytes: int) -> int:
    dim_p = _round_up(dim, 128)
    inter_p = _round_up(inter, 128)
    weights = (2 * dim_p * inter_p + inter_p * dim_p) * 2      # resident bf16, single-buffered
    io = 2 * tm * dim_p * 2 + 2 * tm * dim_p * out_bytes       # double-buffered x / out tiles
    temps = 4 * tm * inter_p * 4                               # h1, h3, gated f32 (+slack)
    need = 2 * (weights + io + temps)                          # 2x headroom for Mosaic scratch
    # Floor above v5e's 16 MiB scoped default; cap below v7x's 64 MiB physical.
    return int(min(max(need, 32 * 1024 * 1024), 48 * 1024 * 1024))


def swiglu_mlp(x, params, *, tm=512, out_dtype=jnp.bfloat16):
    """x: [..., dim].  params: dict from prepare_mlp_params (pre-transposed bf16)."""
    w1t, w3t, w2t = params["w1t"], params["w3t"], params["w2t"]
    dim, inter = w1t.shape

    lead_shape = x.shape[:-1]
    tokens = 1
    for s in lead_shape:
        tokens *= s
    x2 = x.reshape(tokens, dim)

    tm = _select_tm(tokens, tm)
    padded = _round_up(tokens, tm)

    # Activations go to the MXU as bf16 (f32 accumulation in-kernel).
    xb = x2.astype(jnp.bfloat16)
    if padded != tokens:
        xb = jnp.pad(xb, ((0, padded - tokens), (0, 0)))

    grid = (padded // tm,)
    out_bytes = jnp.dtype(out_dtype).itemsize

    cost = pl.CostEstimate(
        flops=2 * padded * dim * inter * 3,
        transcendentals=padded * inter,
        bytes_accessed=(xb.size * 2 + padded * dim * out_bytes
                        + (w1t.size + w3t.size + w2t.size) * 2),
    )

    out = pl.pallas_call(
        _swiglu_mlp_kernel,
        out_shape=jax.ShapeDtypeStruct((padded, dim), out_dtype),
        grid_spec=pltpu.PrefetchScalarGridSpec(
            num_scalar_prefetch=0,
            grid=grid,
            in_specs=[
                # Streamed token tile.
                pl.BlockSpec((tm, dim), lambda i: (i, 0)),
                # Grid-invariant weights: resident, single-buffered.
                pl.BlockSpec((dim, inter), lambda i: (0, 0),
                             pipeline_mode=pl.Buffered(1)),
                pl.BlockSpec((dim, inter), lambda i: (0, 0),
                             pipeline_mode=pl.Buffered(1)),
                pl.BlockSpec((inter, dim), lambda i: (0, 0),
                             pipeline_mode=pl.Buffered(1)),
            ],
            out_specs=pl.BlockSpec((tm, dim), lambda i: (i, 0)),
        ),
        compiler_params=pltpu.CompilerParams(
            dimension_semantics=("parallel",),   # token axis shards across TCs (v7x)
            vmem_limit_bytes=_vmem_limit_bytes(tm, dim, inter, out_bytes),
        ),
        cost_estimate=cost,
    )(xb, w1t, w3t, w2t)

    out = out[:tokens]
    return out.reshape(*lead_shape, dim)


def mlp_reference(x, w1, w2, w3):
    """Reference mirroring the kernel's bf16 quantization (f32 math otherwise)."""
    f32 = jnp.float32
    lead = x.shape[:-1]
    xb = x.reshape(-1, x.shape[-1]).astype(jnp.bfloat16).astype(f32)
    w1b = w1.astype(jnp.bfloat16).astype(f32)
    w2b = w2.astype(jnp.bfloat16).astype(f32)
    w3b = w3.astype(jnp.bfloat16).astype(f32)
    h1 = xb @ w1b.T
    h3 = xb @ w3b.T
    gated = (h1 * jax.nn.sigmoid(h1)) * h3
    gated = gated.astype(jnp.bfloat16).astype(f32)
    out = gated @ w2b.T
    return out.reshape(*lead, w2.shape[0])


if __name__ == "__main__":
    # Module defaults: dim=512, inter_dim=1344. inter_dim=1344 is NOT a
    # multiple of 128, so this exercises the lane-unaligned inter dimension
    # at the real module scale (per the review's correctness concern).
    batch, seq = 2, 8
    dim, inter_dim = 512, 1344

    key = jax.random.PRNGKey(0)
    kx, k1, k2, k3 = jax.random.split(key, 4)

    x = jax.random.normal(kx, (batch, seq, dim), dtype=jnp.float32)
    # nn.Linear weight shapes: [out_features, in_features]
    bound1 = 1.0 / (dim ** 0.5)
    bound2 = 1.0 / (inter_dim ** 0.5)
    w1 = jax.random.uniform(k1, (inter_dim, dim), jnp.float32, -bound1, bound1)
    w2 = jax.random.uniform(k2, (dim, inter_dim), jnp.float32, -bound2, bound2)
    w3 = jax.random.uniform(k3, (inter_dim, dim), jnp.float32, -bound1, bound1)

    params = prepare_mlp_params(w1, w2, w3)   # one-time weight prep (hoisted)
    out = swiglu_mlp(x, params)
    out = jax.block_until_ready(out)

    ref = mlp_reference(x, w1, w2, w3)
    assert out.shape == (batch, seq, dim)
    # bf16 MXU operands + bf16 output -> relaxed tolerance vs the bf16-quantized ref.
    assert jnp.allclose(out.astype(jnp.float32), ref, atol=3e-2, rtol=3e-2), \
        "mismatch vs reference"

    print("KERNEL_OK")
</pallas_src>

<mosaic_0001>
module attributes {stable_mosaic.version = 11 : i64} {
  func.func @_swiglu_mlp_kernel(%arg0: i32, %arg1: memref<16x512xbf16, #tpu.memory_space<vmem>>, %arg2: memref<512x1344xbf16, #tpu.memory_space<vmem>>, %arg3: memref<512x1344xbf16, #tpu.memory_space<vmem>>, %arg4: memref<1344x512xbf16, #tpu.memory_space<vmem>>, %arg5: memref<16x512xbf16, #tpu.memory_space<vmem>>) attributes {dimension_semantics = [#tpu.dimension_semantics<parallel>], iteration_bounds = array<i64: 1>, scalar_prefetch = 0 : i64, scratch_operands = 0 : i64, tpu.core_type = #tpu.core_type<tc>, window_params = [{transform_indices = @transform_0, window_bounds = array<i64: 16, 512>}, {pipeline_mode = #tpu.pipeline_mode<synchronous>, transform_indices = @transform_1, window_bounds = array<i64: 512, 1344>}, {pipeline_mode = #tpu.pipeline_mode<synchronous>, transform_indices = @transform_2, window_bounds = array<i64: 512, 1344>}, {pipeline_mode = #tpu.pipeline_mode<synchronous>, transform_indices = @transform_3, window_bounds = array<i64: 1344, 512>}, {transform_indices = @transform_4, window_bounds = array<i64: 16, 512>}]} {
    %c0 = arith.constant 0 : index
    %c0_0 = arith.constant 0 : index
    %0 = vector.load %arg1[%c0, %c0_0] : memref<16x512xbf16, #tpu.memory_space<vmem>>, vector<16x512xbf16>
    %c0_1 = arith.constant 0 : index
    %c0_2 = arith.constant 0 : index
    %1 = vector.load %arg2[%c0_1, %c0_2] : memref<512x1344xbf16, #tpu.memory_space<vmem>>, vector<512x1344xbf16>
    %cst = arith.constant dense<0.000000e+00> : vector<16x1344xf32>
    %2 = tpu.matmul %0, %1, %cst {dimension_numbers = #tpu.dot_dimension_numbers<[1], [0], [0], [1], [0, 0, 1, 1], [], []>} : vector<16x512xbf16>, vector<512x1344xbf16>, vector<16x1344xf32> -> vector<16x1344xf32>
    %c0_3 = arith.constant 0 : index
    %c0_4 = arith.constant 0 : index
    %3 = vector.load %arg3[%c0_3, %c0_4] : memref<512x1344xbf16, #tpu.memory_space<vmem>>, vector<512x1344xbf16>
    %cst_5 = arith.constant dense<0.000000e+00> : vector<16x1344xf32>
    %4 = tpu.matmul %0, %3, %cst_5 {dimension_numbers = #tpu.dot_dimension_numbers<[1], [0], [0], [1], [0, 0, 1, 1], [], []>} : vector<16x512xbf16>, vector<512x1344xbf16>, vector<16x1344xf32> -> vector<16x1344xf32>
    %5 = arith.negf %2 : vector<16x1344xf32>
    %6 = math.exp %5 : vector<16x1344xf32>
    %cst_6 = arith.constant 1.000000e+00 : f32
    %7 = vector.broadcast %cst_6 : f32 to vector<16x1344xf32>
    %8 = arith.addf %7, %6 : vector<16x1344xf32>
    %9 = arith.divf %7, %8 : vector<16x1344xf32>
    %10 = arith.mulf %2, %9 : vector<16x1344xf32>
    %11 = arith.mulf %10, %4 : vector<16x1344xf32>
    %12 = arith.truncf %11 : vector<16x1344xf32> to vector<16x1344xbf16>
    %c0_7 = arith.constant 0 : index
    %c0_8 = arith.constant 0 : index
    %13 = vector.load %arg4[%c0_7, %c0_8] : memref<1344x512xbf16, #tpu.memory_space<vmem>>, vector<1344x512xbf16>
    %cst_9 = arith.constant dense<0.000000e+00> : vector<16x512xf32>
    %14 = tpu.matmul %12, %13, %cst_9 {dimension_numbers = #tpu.dot_dimension_numbers<[1], [0], [0], [1], [0, 0, 1, 1], [], []>} : vector<16x1344xbf16>, vector<1344x512xbf16>, vector<16x512xf32> -> vector<16x512xf32>
    %15 = arith.truncf %14 : vector<16x512xf32> to vector<16x512xbf16>
    %c0_10 = arith.constant 0 : index
    %c0_11 = arith.constant 0 : index
    %16 = vector.load %arg5[%c0_10, %c0_11] : memref<16x512xbf16, #tpu.memory_space<vmem>>, vector<16x512xbf16>
    tpu.vector_store %arg5[%c0_10, %c0_11], %15 {strides = array<i32>} : memref<16x512xbf16, #tpu.memory_space<vmem>>, vector<16x512xbf16>,
    return
  }
  func.func @transform_0(%arg0: i32) -> (i32, i32) {
    %c0_i32 = arith.constant 0 : i32
    %c0_i32_0 = arith.constant 0 : i32
    return %arg0, %c0_i32 : i32, i32
  }
  func.func @transform_1(%arg0: i32) -> (i32, i32) {
    %c0_i32 = arith.constant 0 : i32
    %c0_i32_0 = arith.constant 0 : i32
    %c0_i32_1 = arith.constant 0 : i32
    return %c0_i32, %c0_i32_0 : i32, i32
  }
  func.func @transform_2(%arg0: i32) -> (i32, i32) {
    %c0_i32 = arith.constant 0 : i32
    %c0_i32_0 = arith.constant 0 : i32
    %c0_i32_1 = arith.constant 0 : i32
    return %c0_i32, %c0_i32_0 : i32, i32
  }
  func.func @transform_3(%arg0: i32) -> (i32, i32) {
    %c0_i32 = arith.constant 0 : i32
    %c0_i32_0 = arith.constant 0 : i32
    %c0_i32_1 = arith.constant 0 : i32
    return %c0_i32, %c0_i32_0 : i32, i32
  }
  func.func @transform_4(%arg0: i32) -> (i32, i32) {
    %c0_i32 = arith.constant 0 : i32
    %c0_i32_0 = arith.constant 0 : i32
    return %arg0, %c0_i32 : i32, i32
  }
}

</mosaic_0001>

<bundles_post_ra>
// kernel: tpu_custom_call.1
= control target key start
LH: loop header
LB: loop body
LE: loop exit
PB: predicated region body
PF: predicated region fallthrough
CT: control target
= control target key end

     0   :  { %s14525_s0 = inlined_call_operand.vmem [shape: bf16[16,512], index: 0, kind: input, shape index: {}]   ;;  %s14526_s1 = inlined_call_operand.vmem [shape: bf16[512,1344], index: 1, kind: input, shape index: {}]   ;;  %s14527_s2 = inlined_call_operand.vmem [shape: bf16[512,1344], index: 2, kind: input, shape index: {}]   ;;  %s14528_s3 = inlined_call_operand.vmem [shape: bf16[1344,512], index: 3, kind: input, shape index: {}]   ;;  %s14529_s4 = inlined_call_operand.hbm [shape: bf16[16,512], index: 4, kind: output, shape index: {}]  }
   0x1   :  { %v9434_v0 = vld [vmem:[%s14526_s1 + $0x4] ss:$44 sps:$4 sm:$0xff]   ;;  %v9436_v1 = vld [vmem:[%s14526_s1 + $0xc] ss:$44 sps:$4 sm:$0xff]   ;;  %v9439_v3 = vld [vmem:[%s14526_s1 + $0x8] ss:$44 sps:$4 sm:$0xff]  }
   0x2   :  { %2219 = vmatprep.subr.bf16.mxu0 %v9434_v0  ;;  %v9438_v2 = vld [vmem:[%s14526_s1] ss:$44 sps:$4 sm:$0xff]   ;;  %2305 = vmatprep.subr.bf16.mxu1 %v9436_v1  ;;  %v9440_v4 = vld [vmem:[%s14526_s1 + $0x5c] ss:$44 sps:$4 sm:$0xff]   ;;  %v9442_v5 = vld [vmem:[%s14526_s1 + $0x64] ss:$44 sps:$4 sm:$0xff]  }
   0x3   :  { %2220 = vmatpush1.bf16.msra.mxu0 %v9438_v2  ;;  %2306 = vmatpush1.bf16.msra.mxu1 %v9439_v3  ;;  %v9444_v6 = vld [vmem:[%s14526_s1 + $0x58] ss:$44 sps:$4 sm:$0xff]   ;;  %v9445_v7 = vld [vmem:[%s14526_s1 + $0x60] ss:$44 sps:$4 sm:$0xff]   ;;  %v9448_v9 = vld [vmem:[%s14526_s1 + $0xbc] ss:$44 sps:$4 sm:$0xff]  }
   0x4   :  { %2221 = vmatprep.subr.bf16.mxu0 %v9440_v4  ;;  %2307 = vmatprep.subr.bf16.mxu1 %v9442_v5  ;;  %v9446_v8 = vld [vmem:[%s14526_s1 + $0xb4] ss:$44 sps:$4 sm:$0xff]   ;;  %v9450_v10 = vld [vmem:[%s14526_s1 + $0xb0] ss:$44 sps:$4 sm:$0xff]   ;;  %v9451_v11 = vld [vmem:[%s14526_s1 + $0xb8] ss:$44 sps:$4 sm:$0xff]  }
   0x5   :  { %v9452_v12 = vld [vmem:[%s14526_s1 + $0x10c] ss:$44 sps:$4 sm:$0xff]   ;;  %v9454_v13 = vld [vmem:[%s14526_s1 + $0x114] ss:$44 sps:$4 sm:$0xff]   ;;  %v9457_v15 = vld [vmem:[%s14526_s1 + $0x110] ss:$44 sps:$4 sm:$0xff]  }
   0x6   :  { %v9456_v14 = vld [vmem:[%s14526_s1 + $0x108] ss:$44 sps:$4 sm:$0xff]   ;;  %v9458_v16 = vld [vmem:[%s14526_s1 + $0x164] ss:$44 sps:$4 sm:$0xff]   ;;  %v9460_v17 = vld [vmem:[%s14526_s1 + $0x16c] ss:$44 sps:$4 sm:$0xff]  }
   0x7   :  { %2222 = vmatpush1.bf16.msra.mxu0 %v9444_v6  ;;  %2308 = vmatpush1.bf16.msra.mxu1 %v9445_v7  ;;  %v9462_v18 = vld [vmem:[%s14526_s1 + $0x160] ss:$44 sps:$4 sm:$0xff]   ;;  %v9463_v19 = vld [vmem:[%s14526_s1 + $0x168] ss:$44 sps:$4 sm:$0xff]   ;;  %v9466_v21 = vld [vmem:[%s14526_s1 + $0x1c4] ss:$44 sps:$4 sm:$0xff]  }
   0x8   :  { %2223 = vmatprep.subr.bf16.mxu0 %v9446_v8  ;;  %2309 = vmatprep.subr.bf16.mxu1 %v9448_v9  ;;  %v9464_v20 = vld [vmem:[%s14526_s1 + $0x1bc] ss:$44 sps:$4 sm:$0xff]   ;;  %v9468_v22 = vld [vmem:[%s14526_s1 + $0x1b8] ss:$44 sps:$4 sm:$0xff]   ;;  %v9469_v23 = vld [vmem:[%s14526_s1 + $0x1c0] ss:$44 sps:$4 sm:$0xff]  }
   0x9   :  { %v9470_v24 = vld [vmem:[%s14526_s1 + $0x214] ss:$44 sps:$4 sm:$0xff]   ;;  %v9472_v25 = vld [vmem:[%s14526_s1 + $0x21c] ss:$44 sps:$4 sm:$0xff]   ;;  %v9475_v27 = vld [vmem:[%s14526_s1 + $0x218] ss:$44 sps:$4 sm:$0xff]  }
   0xa   :  { %v9474_v26 = vld [vmem:[%s14526_s1 + $0x210] ss:$44 sps:$4 sm:$0xff]   ;;  %v9476_v28 = vld [vmem:[%s14526_s1 + $0x26c] ss:$44 sps:$4 sm:$0xff]   ;;  %v9478_v29 = vld [vmem:[%s14526_s1 + $0x274] ss:$44 sps:$4 sm:$0xff]  }
   0xb   :  { %2224 = vmatpush1.bf16.msra.mxu0 %v9450_v10  ;;  %2310 = vmatpush1.bf16.msra.mxu1 %v9451_v11  ;;  %v9480_v30 = vld [vmem:[%s14526_s1 + $0x268] ss:$44 sps:$4 sm:$0xff]   ;;  %v9481_v31 = vld [vmem:[%s14526_s1 + $0x270] ss:$44 sps:$4 sm:$0xff]   ;;  %v9484_v33 = vld [vmem:[%s14526_s1 + $0x2cc] ss:$44 sps:$4 sm:$0xff]  }
   0xc   :  { %2225 = vmatprep.subr.bf16.mxu0 %v9452_v12  ;;  %2311 = vmatprep.subr.bf16.mxu1 %v9454_v13  ;;  %v9482_v32 = vld [vmem:[%s14526_s1 + $0x2c4] ss:$44 sps:$4 sm:$0xff]   ;;  %v9486_v34 = vld [vmem:[%s14526_s1 + $0x2c0] ss:$44 sps:$4 sm:$0xff]   ;;  %v9487_v35 = vld [vmem:[%s14526_s1 + $0x2c8] ss:$44 sps:$4 sm:$0xff]  }
   0xd   :  { %v9488_v36 = vld [vmem:[%s14526_s1 + $0x31c] ss:$44 sps:$4 sm:$0xff]   ;;  %v9490_v37 = vld [vmem:[%s14526_s1 + $0x324] ss:$44 sps:$4 sm:$0xff]   ;;  %v9493_v39 = vld [vmem:[%s14526_s1 + $0x320] ss:$44 sps:$4 sm:$0xff]  }
   0xe   :  { %v9492_v38 = vld [vmem:[%s14526_s1 + $0x318] ss:$44 sps:$4 sm:$0xff]   ;;  %v9494_v40 = vld [vmem:[%s14526_s1 + $0x374] ss:$44 sps:$4 sm:$0xff]   ;;  %v9496_v41 = vld [vmem:[%s14526_s1 + $0x37c] ss:$44 sps:$4 sm:$0xff]  }
   0xf   :  { %2226 = vmatpush1.bf16.msra.mxu0 %v9456_v14  ;;  %2312 = vmatpush1.bf16.msra.mxu1 %v9457_v15  ;;  %v9498_v42 = vld [vmem:[%s14526_s1 + $0x370] ss:$44 sps:$4 sm:$0xff]   ;;  %v9499_v43 = vld [vmem:[%s14526_s1 + $0x378] ss:$44 sps:$4 sm:$0xff]   ;;  %v9502_v45 = vld [vmem:[%s14526_s1 + $0x3d4] ss:$44 sps:$4 sm:$0xff]  }
  0x10   :  { %2227 = vmatprep.subr.bf16.mxu0 %v9458_v16  ;;  %2313 = vmatprep.subr.bf16.mxu1 %v9460_v17  ;;  %v9500_v44 = vld [vmem:[%s14526_s1 + $0x3cc] ss:$44 sps:$4 sm:$0xff]   ;;  %v9504_v46 = vld [vmem:[%s14526_s1 + $0x3c8] ss:$44 sps:$4 sm:$0xff]   ;;  %v9505_v48 = vld [vmem:[%s14526_s1 + $0x3d0] ss:$44 sps:$4 sm:$0xff]  }
  0x11   :  { %v11265_v47 = vld [vmem:[%s14525_s0 + $0x4] ss:$16 sps:$4 sm:$0xff]   ;;  %v9508_v50 = vld [vmem:[%s14526_s1 + $0x42c] ss:$44 sps:$4 sm:$0xff]   ;;  %v9512_v53 = vld [vmem:[%s14526_s1 + $0x47c] ss:$44 sps:$4 sm:$0xff]  }
  0x12   :  { %v9506_v49 = vld [vmem:[%s14526_s1 + $0x424] ss:$44 sps:$4 sm:$0xff]   ;;  %2251 = vmatprep.mubr.bf16.mxu0 %v11265_v47  ;;  %2337 = vmatprep.mubr.bf16.mxu1 %v11265_v47  ;;  %v9510_v51 = vld [vmem:[%s14526_s1 + $0x420] ss:$44 sps:$4 sm:$0xff]   ;;  %v9511_v52 = vld [vmem:[%s14526_s1 + $0x428] ss:$44 sps:$4 sm:$0xff]  }
  0x13   :  { %2228 = vmatpush1.bf16.msra.mxu0 %v9462_v18  ;;  %2314 = vmatpush1.bf16.msra.mxu1 %v9463_v19  ;;  %v9514_v54 = vld [vmem:[%s14526_s1 + $0x484] ss:$44 sps:$4 sm:$0xff]   ;;  %v9517_v56 = vld [vmem:[%s14526_s1 + $0x480] ss:$44 sps:$4 sm:$0xff]   ;;  %v9520_v58 = vld [vmem:[%s14526_s1 + $0x4dc] ss:$44 sps:$4 sm:$0xff]  }
  0x14   :  { %2229 = vmatprep.subr.bf16.mxu0 %v9464_v20  ;;  %2315 = vmatprep.subr.bf16.mxu1 %v9466_v21  ;;  %v9516_v55 = vld [vmem:[%s14526_s1 + $0x478] ss:$44 sps:$4 sm:$0xff]   ;;  %v9518_v57 = vld [vmem:[%s14526_s1 + $0x4d4] ss:$44 sps:$4 sm:$0xff]   ;;  %v9522_v59 = vld [vmem:[%s14526_s1 + $0x4d0] ss:$44 sps:$4 sm:$0xff]  }
  0x15   :  { %v9523_v60 = vld [vmem:[%s14526_s1 + $0x4d8] ss:$44 sps:$4 sm:$0xff]   ;;  %v9526_v62 = vld [vmem:[%s14526_s1 + $0x534] ss:$44 sps:$4 sm:$0xff]   ;;  %v9529_v0 = vld [vmem:[%s14526_s1 + $0x530] ss:$44 sps:$4 sm:$0xff]  }
  0x16   :  { %v9524_v61 = vld [vmem:[%s14526_s1 + $0x52c] ss:$44 sps:$4 sm:$0xff]   ;;  %v9528_v63 = vld [vmem:[%s14526_s1 + $0x528] ss:$44 sps:$4 sm:$0xff]   ;;  %v9534_v1 = vld [vmem:[%s14526_s1 + $0x584] ss:$44 sps:$4 sm:$0xff]  }
  0x17   :  { %2230 = vmatpush1.bf16.msra.mxu0 %v9468_v22  ;;  %2316 = vmatpush1.bf16.msra.mxu1 %v9469_v23  ;;  %v9537_v2 = vld [vmem:[%s14526_s1 + $0x58c] ss:$44 sps:$4 sm:$0xff]   ;;  %v9535_v4 = vld [vmem:[%s14526_s1 + $0x588] ss:$44 sps:$4 sm:$0xff]   ;;  %v11335_v5 = vld [vmem:[%s14525_s0] ss:$16 sps:$4 sm:$0xff]  }
  0x18   :  { %2231 = vmatprep.subr.bf16.mxu0 %v9470_v24  ;;  %2317 = vmatprep.subr.bf16.mxu1 %v9472_v25  ;;  %v9532_v3 = vld [vmem:[%s14526_s1 + $0x580] ss:$44 sps:$4 sm:$0xff]   ;;  %v9541_v6 = vld [vmem:[%s14526_s1 + $0x5dc] ss:$44 sps:$4 sm:$0xff]   ;;  %v9544_v7 = vld [vmem:[%s14526_s1 + $0x5e4] ss:$44 sps:$4 sm:$0xff]  }
  0x19   :  { %v9539_v8 = vld [vmem:[%s14526_s1 + $0x5d8] ss:$44 sps:$4 sm:$0xff]   ;;  %v9542_v9 = vld [vmem:[%s14526_s1 + $0x5e0] ss:$44 sps:$4 sm:$0xff]   ;;  %v9550_v11 = vld [vmem:[%s14526_s1 + $0x63c] ss:$44 sps:$4 sm:$0xff]  }
  0x1a   :  { %v9547_v10 = vld [vmem:[%s14526_s1 + $0x634] ss:$44 sps:$4 sm:$0xff]   ;;  %v9545_v12 = vld [vmem:[%s14526_s1 + $0x630] ss:$44 sps:$4 sm:$0xff]   ;;  %v9548_v13 = vld [vmem:[%s14526_s1 + $0x638] ss:$44 sps:$4 sm:$0xff]  }
  0x1b   :  { %2232 = vmatpush1.bf16.msra.mxu0 %v9474_v26  ;;  %2318 = vmatpush1.bf16.msra.mxu1 %v9475_v27  ;;  %v9553_v14 = vld [vmem:[%s14526_s1 + $0x68c] ss:$44 sps:$4 sm:$0xff]   ;;  %v9556_v15 = vld [vmem:[%s14526_s1 + $0x694] ss:$44 sps:$4 sm:$0xff]   ;;  %v9554_v17 = vld [vmem:[%s14526_s1 + $0x690] ss:$44 sps:$4 sm:$0xff]  }
  0x1c   :  { %2233 = vmatprep.subr.bf16.mxu0 %v9476_v28  ;;  %2319 = vmatprep.subr.bf16.mxu1 %v9478_v29  ;;  %v9551_v16 = vld [vmem:[%s14526_s1 + $0x688] ss:$44 sps:$4 sm:$0xff]   ;;  %v9559_v18 = vld [vmem:[%s14526_s1 + $0x6e4] ss:$44 sps:$4 sm:$0xff]   ;;  %v9562_v19 = vld [vmem:[%s14526_s1 + $0x6ec] ss:$44 sps:$4 sm:$0xff]  }
  0x1d   :  { %v9557_v20 = vld [vmem:[%s14526_s1 + $0x6e0] ss:$44 sps:$4 sm:$0xff]   ;;  %v9560_v21 = vld [vmem:[%s14526_s1 + $0x6e8] ss:$44 sps:$4 sm:$0xff]   ;;  %v9568_v23 = vld [vmem:[%s14526_s1 + $0x744] ss:$44 sps:$4 sm:$0xff]  }
  0x1e   :  { %v9565_v22 = vld [vmem:[%s14526_s1 + $0x73c] ss:$44 sps:$4 sm:$0xff]   ;;  %v9563_v24 = vld [vmem:[%s14526_s1 + $0x738] ss:$44 sps:$4 sm:$0xff]   ;;  %v9566_v25 = vld [vmem:[%s14526_s1 + $0x740] ss:$44 sps:$4 sm:$0xff]  }
  0x1f   :  { %2234 = vmatpush1.bf16.msra.mxu0 %v9480_v30  ;;  %2320 = vmatpush1.bf16.msra.mxu1 %v9481_v31  ;;  %v9571_v26 = vld [vmem:[%s14526_s1 + $0x794] ss:$44 sps:$4 sm:$0xff]   ;;  %v9574_v27 = vld [vmem:[%s14526_s1 + $0x79c] ss:$44 sps:$4 sm:$0xff]   ;;  %v9572_v29 = vld [vmem:[%s14526_s1 + $0x798] ss:$44 sps:$4 sm:$0xff]  }
  0x20   :  { %2235 = vmatprep.subr.bf16.mxu0 %v9482_v32  ;;  %2321 = vmatprep.subr.bf16.mxu1 %v9484_v33  ;;  %v9569_v28 = vld [vmem:[%s14526_s1 + $0x790] ss:$44 sps:$4 sm:$0xff]   ;;  %v9577_v31 = vld [vmem:[%s14526_s1 + $0x7ec] ss:$44 sps:$4 sm:$0xff]   ;;  %v9580_v32 = vld [vmem:[%s14526_s1 + $0x7f4] ss:$44 sps:$4 sm:$0xff]  }
  0x21   :  { %v11414_v30 = vld [vmem:[%s14525_s0 + $0xc] ss:$16 sps:$4 sm:$0xff]   ;;  %v9575_v33 = vld [vmem:[%s14526_s1 + $0x7e8] ss:$44 sps:$4 sm:$0xff]  }
  0x23   :  { %2236 = vmatpush1.bf16.msra.mxu0 %v9486_v34  ;;  %2322 = vmatpush1.bf16.msra.mxu1 %v9487_v35  ;;  %v9578_v34 = vld [vmem:[%s14526_s1 + $0x7f0] ss:$44 sps:$4 sm:$0xff]  }
  0x24   :  { %2237 = vmatprep.subr.bf16.mxu0 %v9488_v36  ;;  %2323 = vmatprep.subr.bf16.mxu1 %v9490_v37  ;;  %v9583_v35 = vld [vmem:[%s14526_s1 + $0x844] ss:$44 sps:$4 sm:$0xff]   ;;  %v9586_v36 = vld [vmem:[%s14526_s1 + $0x84c] ss:$44 sps:$4 sm:$0xff]  }
  0x25   :  { %v9581_v37 = vld [vmem:[%s14526_s1 + $0x840] ss:$44 sps:$4 sm:$0xff]  }
  0x27   :  { %2238 = vmatpush1.bf16.msra.mxu0 %v9492_v38  ;;  %2324 = vmatpush1.bf16.msra.mxu1 %v9493_v39  ;;  %v9584_v38 = vld [vmem:[%s14526_s1 + $0x848] ss:$44 sps:$4 sm:$0xff]  }
  0x28   :  { %2239 = vmatprep.subr.bf16.mxu0 %v9494_v40  ;;  %2325 = vmatprep.subr.bf16.mxu1 %v9496_v41  ;;  %v9589_v39 = vld [vmem:[%s14526_s1 + $0x89c] ss:$44 sps:$4 sm:$0xff]   ;;  %v9592_v40 = vld [vmem:[%s14526_s1 + $0x8a4] ss:$44 sps:$4 sm:$0xff]  }
  0x29   :  { %v9587_v41 = vld [vmem:[%s14526_s1 + $0x898] ss:$44 sps:$4 sm:$0xff]  }
  0x2b   :  { %2240 = vmatpush1.bf16.msra.mxu0 %v9498_v42  ;;  %2326 = vmatpush1.bf16.msra.mxu1 %v9499_v43  ;;  %v9590_v42 = vld [vmem:[%s14526_s1 + $0x8a0] ss:$44 sps:$4 sm:$0xff]  }
  0x2c   :  { %2241 = vmatprep.subr.bf16.mxu0 %v9500_v44  ;;  %2327 = vmatprep.subr.bf16.mxu1 %v9502_v45  ;;  %v9595_v43 = vld [vmem:[%s14526_s1 + $0x8f4] ss:$44 sps:$4 sm:$0xff]   ;;  %v9598_v44 = vld [vmem:[%s14526_s1 + $0x8fc] ss:$44 sps:$4 sm:$0xff]  }
  0x2d   :  { %v9593_v45 = vld [vmem:[%s14526_s1 + $0x8f0] ss:$44 sps:$4 sm:$0xff]  }
  0x2f   :  { %2242 = vmatpush1.bf16.msra.mxu0 %v9504_v46  ;;  %2328 = vmatpush1.bf16.msra.mxu1 %v9505_v48  ;;  %v9596_v46 = vld [vmem:[%s14526_s1 + $0x8f8] ss:$44 sps:$4 sm:$0xff]  }
  0x30   :  { %2243 = vmatprep.subr.bf16.mxu0 %v9506_v49  ;;  %2329 = vmatprep.subr.bf16.mxu1 %v9508_v50  ;;  %v9601_v48 = vld [vmem:[%s14526_s1 + $0x94c] ss:$44 sps:$4 sm:$0xff]   ;;  %v9604_v49 = vld [vmem:[%s14526_s1 + $0x954] ss:$44 sps:$4 sm:$0xff]  }
  0x31   :  { %v9599_v50 = vld [vmem:[%s14526_s1 + $0x948] ss:$44 sps:$4 sm:$0xff]  }
  0x33   :  { %2244 = vmatpush1.bf16.msra.mxu0 %v9510_v51  ;;  %2330 = vmatpush1.bf16.msra.mxu1 %v9511_v52  ;;  %v9602_v51 = vld [vmem:[%s14526_s1 + $0x950] ss:$44 sps:$4 sm:$0xff]  }
  0x34   :  { %2245 = vmatprep.subr.bf16.mxu0 %v9512_v53  ;;  %2331 = vmatprep.subr.bf16.mxu1 %v9514_v54  ;;  %v9607_v52 = vld [vmem:[%s14526_s1 + $0x9a4] ss:$44 sps:$4 sm:$0xff]   ;;  %v9610_v53 = vld [vmem:[%s14526_s1 + $0x9ac] ss:$44 sps:$4 sm:$0xff]  }
  0x35   :  { %v9605_v54 = vld [vmem:[%s14526_s1 + $0x9a0] ss:$44 sps:$4 sm:$0xff]  }
  0x37   :  { %2246 = vmatpush1.bf16.msra.mxu0 %v9516_v55  ;;  %2332 = vmatpush1.bf16.msra.mxu1 %v9517_v56  ;;  %v9608_v55 = vld [vmem:[%s14526_s1 + $0x9a8] ss:$44 sps:$4 sm:$0xff]  }
  0x38   :  { %2247 = vmatprep.subr.bf16.mxu0 %v9518_v57  ;;  %2333 = vmatprep.subr.bf16.mxu1 %v9520_v58  ;;  %v9613_v56 = vld [vmem:[%s14526_s1 + $0x9fc] ss:$44 sps:$4 sm:$0xff]   ;;  %v9616_v57 = vld [vmem:[%s14526_s1 + $0xa04] ss:$44 sps:$4 sm:$0xff]  }
  0x39   :  { %v9611_v58 = vld [vmem:[%s14526_s1 + $0x9f8] ss:$44 sps:$4 sm:$0xff]  }
  0x3b   :  { %2248 = vmatpush1.bf16.msra.mxu0 %v9522_v59  ;;  %2334 = vmatpush1.bf16.msra.mxu1 %v9523_v60  ;;  %v9614_v59 = vld [vmem:[%s14526_s1 + $0xa00] ss:$44 sps:$4 sm:$0xff]  }
  0x3c   :  { %2249 = vmatprep.subr.bf16.mxu0 %v9524_v61  ;;  %2335 = vmatprep.subr.bf16.mxu1 %v9526_v62  ;;  %v9619_v60 = vld [vmem:[%s14526_s1 + $0xa54] ss:$44 sps:$4 sm:$0xff]   ;;  %v9622_v61 = vld [vmem:[%s14526_s1 + $0xa5c] ss:$44 sps:$4 sm:$0xff]  }
  0x3d   :  { %v9617_v62 = vld [vmem:[%s14526_s1 + $0xa50] ss:$44 sps:$4 sm:$0xff]  }
  0x3f   :  { %2250 = vmatpush1.bf16.msra.mxu0 %v9528_v63  ;;  %2336 = vmatpush1.bf16.msra.mxu1 %v9529_v0  ;;  %v9620_v63 = vld [vmem:[%s14526_s1 + $0xa58] ss:$44 sps:$4 sm:$0xff]  }
  0x40   :  { %2262 = vmatprep.subr.bf16.mxu0 %v9534_v1  ;;  %2348 = vmatprep.subr.bf16.mxu1 %v9537_v2  ;;  %v9625_v0 = vld [vmem:[%s14526_s1 + $0xaac] ss:$44 sps:$4 sm:$0xff]   ;;  %v9628_v1 = vld [vmem:[%s14526_s1 + $0xab4] ss:$44 sps:$4 sm:$0xff]  }
  0x41   :  { %v9623_v2 = vld [vmem:[%s14526_s1 + $0xaa8] ss:$44 sps:$4 sm:$0xff]  }
  0x42   :  { %2252 = vmatmul.mubr.bf16.vlgmr.msra.gmra.mrb[0].mxu0 %v11335_v5  ;;  %2338 = vmatmul.mubr.bf16.vlgmr.msra.gmra.mrb[0].mxu1 %v11335_v5 }
  0x43   :  { %2263 = vmatpush1.bf16.msra.mxu0 %v9532_v3  ;;  %2349 = vmatpush1.bf16.msra.mxu1 %v9535_v4  ;;  %v9626_v3 = vld [vmem:[%s14526_s1 + $0xab0] ss:$44 sps:$4 sm:$0xff]   ;;  %v9634_v4 = vld [vmem:[%s14526_s1 + $0x14] ss:$44 sps:$4 sm:$0xff]  }
  0x44   :  { %2264 = vmatprep.subr.bf16.mxu0 %v9541_v6  ;;  %2350 = vmatprep.subr.bf16.mxu1 %v9544_v7  ;;  %v9637_v6 = vld [vmem:[%s14526_s1 + $0x1c] ss:$44 sps:$4 sm:$0xff]  }
  0x45   :  { %2294 = vmatprep.mubr.bf16.mxu0 %v11414_v30  ;;  %2380 = vmatprep.mubr.bf16.mxu1 %v11414_v30  ;;  %v11535_v7 = vld [vmem:[%s14525_s0 + $0x8] ss:$16 sps:$4 sm:$0xff]  }
  0x47   :  { %2265 = vmatpush1.bf16.msra.mxu0 %v9539_v8  ;;  %2351 = vmatpush1.bf16.msra.mxu1 %v9542_v9  ;;  %v9632_v8 = vld [vmem:[%s14526_s1 + $0x10] ss:$44 sps:$4 sm:$0xff]   ;;  %v9635_v9 = vld [vmem:[%s14526_s1 + $0x18] ss:$44 sps:$4 sm:$0xff]  }
  0x48   :  { %2266 = vmatprep.subr.bf16.mxu0 %v9547_v10  ;;  %2352 = vmatprep.subr.bf16.mxu1 %v9550_v11  ;;  %v9640_v10 = vld [vmem:[%s14526_s1 + $0x6c] ss:$44 sps:$4 sm:$0xff]   ;;  %v9643_v11 = vld [vmem:[%s14526_s1 + $0x74] ss:$44 sps:$4 sm:$0xff]  }
  0x4b   :  { %2267 = vmatpush1.bf16.msra.mxu0 %v9545_v12  ;;  %2353 = vmatpush1.bf16.msra.mxu1 %v9548_v13  ;;  %v9638_v12 = vld [vmem:[%s14526_s1 + $0x68] ss:$44 sps:$4 sm:$0xff]   ;;  %v9641_v13 = vld [vmem:[%s14526_s1 + $0x70] ss:$44 sps:$4 sm:$0xff]  }
  0x4c   :  { %2268 = vmatprep.subr.bf16.mxu0 %v9553_v14  ;;  %2354 = vmatprep.subr.bf16.mxu1 %v9556_v15  ;;  %v9646_v14 = vld [vmem:[%s14526_s1 + $0xc4] ss:$44 sps:$4 sm:$0xff]   ;;  %v9649_v15 = vld [vmem:[%s14526_s1 + $0xcc] ss:$44 sps:$4 sm:$0xff]  }
  0x4f   :  { %2269 = vmatpush1.bf16.msra.mxu0 %v9551_v16  ;;  %2355 = vmatpush1.bf16.msra.mxu1 %v9554_v17  ;;  %v9644_v16 = vld [vmem:[%s14526_s1 + $0xc0] ss:$44 sps:$4 sm:$0xff]   ;;  %v9647_v17 = vld [vmem:[%s14526_s1 + $0xc8] ss:$44 sps:$4 sm:$0xff]  }
  0x50   :  { %2270 = vmatprep.subr.bf16.mxu0 %v9559_v18  ;;  %2356 = vmatprep.subr.bf16.mxu1 %v9562_v19  ;;  %v9652_v18 = vld [vmem:[%s14526_s1 + $0x11c] ss:$44 sps:$4 sm:$0xff]   ;;  %v9650_v19 = vld [vmem:[%s14526_s1 + $0x118] ss:$44 sps:$4 sm:$0xff]  }
  0x53   :  { %2271 = vmatpush1.bf16.msra.mxu0 %v9557_v20  ;;  %2357 = vmatpush1.bf16.msra.mxu1 %v9560_v21  ;;  %v9653_v20 = vld [vmem:[%s14526_s1 + $0x120] ss:$44 sps:$4 sm:$0xff]  }
  0x54   :  { %2272 = vmatprep.subr.bf16.mxu0 %v9565_v22  ;;  %2358 = vmatprep.subr.bf16.mxu1 %v9568_v23  ;;  %v9658_v21 = vld [vmem:[%s14526_s1 + $0x174] ss:$44 sps:$4 sm:$0xff]   ;;  %v9661_v22 = vld [vmem:[%s14526_s1 + $0x17c] ss:$44 sps:$4 sm:$0xff]  }
  0x55   :  { %v9656_v23 = vld [vmem:[%s14526_s1 + $0x170] ss:$44 sps:$4 sm:$0xff]  }
  0x57   :  { %2273 = vmatpush1.bf16.msra.mxu0 %v9563_v24  ;;  %2359 = vmatpush1.bf16.msra.mxu1 %v9566_v25  ;;  %v9659_v24 = vld [vmem:[%s14526_s1 + $0x178] ss:$44 sps:$4 sm:$0xff]  }
  0x58   :  { %2274 = vmatprep.subr.bf16.mxu0 %v9571_v26  ;;  %2360 = vmatprep.subr.bf16.mxu1 %v9574_v27  ;;  %v9664_v25 = vld [vmem:[%s14526_s1 + $0x1cc] ss:$44 sps:$4 sm:$0xff]   ;;  %v9667_v26 = vld [vmem:[%s14526_s1 + $0x1d4] ss:$44 sps:$4 sm:$0xff]  }
  0x59   :  { %v9662_v27 = vld [vmem:[%s14526_s1 + $0x1c8] ss:$44 sps:$4 sm:$0xff]  }
  0x5b   :  { %2275 = vmatpush1.bf16.msra.mxu0 %v9569_v28  ;;  %2361 = vmatpush1.bf16.msra.mxu1 %v9572_v29  ;;  %v9665_v28 = vld [vmem:[%s14526_s1 + $0x1d0] ss:$44 sps:$4 sm:$0xff]  }
  0x5c   :  { %2276 = vmatprep.subr.bf16.mxu0 %v9577_v31  ;;  %2362 = vmatprep.subr.bf16.mxu1 %v9580_v32  ;;  %v9670_v29 = vld [vmem:[%s14526_s1 + $0x224] ss:$44 sps:$4 sm:$0xff]   ;;  %v9673_v31 = vld [vmem:[%s14526_s1 + $0x22c] ss:$44 sps:$4 sm:$0xff]  }
  0x5d   :  { %v9668_v32 = vld [vmem:[%s14526_s1 + $0x220] ss:$44 sps:$4 sm:$0xff]  }
  0x5f   :  { %2277 = vmatpush1.bf16.msra.mxu0 %v9575_v33  ;;  %2363 = vmatpush1.bf16.msra.mxu1 %v9578_v34  ;;  %v9671_v33 = vld [vmem:[%s14526_s1 + $0x228] ss:$44 sps:$4 sm:$0xff]  }
  0x60   :  { %2278 = vmatprep.subr.bf16.mxu0 %v9583_v35  ;;  %2364 = vmatprep.subr.bf16.mxu1 %v9586_v36  ;;  %v9676_v34 = vld [vmem:[%s14526_s1 + $0x27c] ss:$44 sps:$4 sm:$0xff]   ;;  %v9679_v35 = vld [vmem:[%s14526_s1 + $0x284] ss:$44 sps:$4 sm:$0xff]  }
  0x61   :  { %v9674_v36 = vld [vmem:[%s14526_s1 + $0x278] ss:$44 sps:$4 sm:$0xff]  }
  0x63   :  { %2279 = vmatpush1.bf16.msra.mxu0 %v9581_v37  ;;  %2365 = vmatpush1.bf16.msra.mxu1 %v9584_v38  ;;  %v9677_v37 = vld [vmem:[%s14526_s1 + $0x280] ss:$44 sps:$4 sm:$0xff]  }
  0x64   :  { %2280 = vmatprep.subr.bf16.mxu0 %v9589_v39  ;;  %2366 = vmatprep.subr.bf16.mxu1 %v9592_v40  ;;  %v9682_v38 = vld [vmem:[%s14526_s1 + $0x2d4] ss:$44 sps:$4 sm:$0xff]   ;;  %v9685_v39 = vld [vmem:[%s14526_s1 + $0x2dc] ss:$44 sps:$4 sm:$0xff]  }
  0x65   :  { %v9680_v40 = vld [vmem:[%s14526_s1 + $0x2d0] ss:$44 sps:$4 sm:$0xff]  }
  0x67   :  { %2281 = vmatpush1.bf16.msra.mxu0 %v9587_v41  ;;  %2367 = vmatpush1.bf16.msra.mxu1 %v9590_v42  ;;  %v9683_v41 = vld [vmem:[%s14526_s1 + $0x2d8] ss:$44 sps:$4 sm:$0xff]  }
  0x68   :  { %2282 = vmatprep.subr.bf16.mxu0 %v9595_v43  ;;  %2368 = vmatprep.subr.bf16.mxu1 %v9598_v44  ;;  %v9688_v42 = vld [vmem:[%s14526_s1 + $0x32c] ss:$44 sps:$4 sm:$0xff]   ;;  %v9691_v43 = vld [vmem:[%s14526_s1 + $0x334] ss:$44 sps:$4 sm:$0xff]  }
  0x69   :  { %v9686_v44 = vld [vmem:[%s14526_s1 + $0x328] ss:$44 sps:$4 sm:$0xff]  }
  0x6b   :  { %2283 = vmatpush1.bf16.msra.mxu0 %v9593_v45  ;;  %2369 = vmatpush1.bf16.msra.mxu1 %v9596_v46  ;;  %v9689_v45 = vld [vmem:[%s14526_s1 + $0x330] ss:$44 sps:$4 sm:$0xff]  }
  0x6c   :  { %2284 = vmatprep.subr.bf16.mxu0 %v9601_v48  ;;  %2370 = vmatprep.subr.bf16.mxu1 %v9604_v49  ;;  %v9694_v46 = vld [vmem:[%s14526_s1 + $0x384] ss:$44 sps:$4 sm:$0xff]   ;;  %v9697_v48 = vld [vmem:[%s14526_s1 + $0x38c] ss:$44 sps:$4 sm:$0xff]  }
  0x6d   :  { %v9692_v49 = vld [vmem:[%s14526_s1 + $0x380] ss:$44 sps:$4 sm:$0xff]  }
  0x6f   :  { %2285 = vmatpush1.bf16.msra.mxu0 %v9599_v50  ;;  %2371 = vmatpush1.bf16.msra.mxu1 %v9602_v51  ;;  %v9695_v50 = vld [vmem:[%s14526_s1 + $0x388] ss:$44 sps:$4 sm:$0xff]  }
  0x70   :  { %2286 = vmatprep.subr.bf16.mxu0 %v9607_v52  ;;  %2372 = vmatprep.subr.bf16.mxu1 %v9610_v53  ;;  %v9700_v51 = vld [vmem:[%s14526_s1 + $0x3dc] ss:$44 sps:$4 sm:$0xff]   ;;  %v9703_v52 = vld [vmem:[%s14526_s1 + $0x3e4] ss:$44 sps:$4 sm:$0xff]  }
  0x71   :  { %v9698_v53 = vld [vmem:[%s14526_s1 + $0x3d8] ss:$44 sps:$4 sm:$0xff]  }
  0x73   :  { %2287 = vmatpush1.bf16.msra.mxu0 %v9605_v54  ;;  %2373 = vmatpush1.bf16.msra.mxu1 %v9608_v55  ;;  %v9701_v54 = vld [vmem:[%s14526_s1 + $0x3e0] ss:$44 sps:$4 sm:$0xff]  }
  0x74   :  { %2288 = vmatprep.subr.bf16.mxu0 %v9613_v56  ;;  %2374 = vmatprep.subr.bf16.mxu1 %v9616_v57  ;;  %v9706_v55 = vld [vmem:[%s14526_s1 + $0x434] ss:$44 sps:$4 sm:$0xff]   ;;  %v9709_v56 = vld [vmem:[%s14526_s1 + $0x43c] ss:$44 sps:$4 sm:$0xff]  }
  0x75   :  { %v9704_v57 = vld [vmem:[%s14526_s1 + $0x430] ss:$44 sps:$4 sm:$0xff]  }
  0x77   :  { %2289 = vmatpush1.bf16.msra.mxu0 %v9611_v58  ;;  %2375 = vmatpush1.bf16.msra.mxu1 %v9614_v59  ;;  %v9707_v58 = vld [vmem:[%s14526_s1 + $0x438] ss:$44 sps:$4 sm:$0xff]  }
  0x78   :  { %2290 = vmatprep.subr.bf16.mxu0 %v9619_v60  ;;  %2376 = vmatprep.subr.bf16.mxu1 %v9622_v61  ;;  %v9712_v59 = vld [vmem:[%s14526_s1 + $0x48c] ss:$44 sps:$4 sm:$0xff]   ;;  %v9715_v60 = vld [vmem:[%s14526_s1 + $0x494] ss:$44 sps:$4 sm:$0xff]  }
  0x79   :  { %v9710_v61 = vld [vmem:[%s14526_s1 + $0x488] ss:$44 sps:$4 sm:$0xff]  }
  0x7b   :  { %2291 = vmatpush1.bf16.msra.mxu0 %v9617_v62  ;;  %2377 = vmatpush1.bf16.msra.mxu1 %v9620_v63  ;;  %v9713_v62 = vld [vmem:[%s14526_s1 + $0x490] ss:$44 sps:$4 sm:$0xff]  }
  0x7c   :  { %2292 = vmatprep.subr.bf16.mxu0 %v9625_v0  ;;  %2378 = vmatprep.subr.bf16.mxu1 %v9628_v1  ;;  %v9718_v63 = vld [vmem:[%s14526_s1 + $0x4e4] ss:$44 sps:$4 sm:$0xff]   ;;  %v9721_v0 = vld [vmem:[%s14526_s1 + $0x4ec] ss:$44 sps:$4 sm:$0xff]  }
  0x7d   :  { %v9716_v1 = vld [vmem:[%s14526_s1 + $0x4e0] ss:$44 sps:$4 sm:$0xff]  }
  0x7f   :  { %2293 = vmatpush1.bf16.msra.mxu0 %v9623_v2  ;;  %2379 = vmatpush1.bf16.msra.mxu1 %v9626_v3  ;;  %v9719_v2 = vld [vmem:[%s14526_s1 + $0x4e8] ss:$44 sps:$4 sm:$0xff]  }
  0x80   :  { %2391 = vmatprep.subr.bf16.mxu0 %v9634_v4  ;;  %2477 = vmatprep.subr.bf16.mxu1 %v9637_v6  ;;  %v9724_v3 = vld [vmem:[%s14526_s1 + $0x53c] ss:$44 sps:$4 sm:$0xff]   ;;  %v9727_v4 = vld [vmem:[%s14526_s1 + $0x544] ss:$44 sps:$4 sm:$0xff]  }
  0x81   :  { %v9722_v6 = vld [vmem:[%s14526_s1 + $0x538] ss:$44 sps:$4 sm:$0xff]  }
  0x82   :  { %2295 = vmatmul.mubr.bf16.vlgmr.msra.gmra.mrb[0].mxu0 %v11535_v7  ;;  %2381 = vmatmul.mubr.bf16.vlgmr.msra.gmra.mrb[0].mxu1 %v11535_v7 }
  0x83   :  { %2392 = vmatpush1.bf16.msra.mxu0 %v9632_v8  ;;  %2478 = vmatpush1.bf16.msra.mxu1 %v9635_v9  ;;  %v9725_v8 = vld [vmem:[%s14526_s1 + $0x540] ss:$44 sps:$4 sm:$0xff]  }
  0x84   :  { %2393 = vmatprep.subr.bf16.mxu0 %v9640_v10  ;;  %2479 = vmatprep.subr.bf16.mxu1 %v9643_v11  ;;  %v9730_v9 = vld [vmem:[%s14526_s1 + $0x594] ss:$44 sps:$4 sm:$0xff]   ;;  %v9733_v10 = vld [vmem:[%s14526_s1 + $0x59c] ss:$44 sps:$4 sm:$0xff]  }
  0x85   :  { %2423 = vmatprep.mubr.bf16.mxu0 %v11265_v47  ;;  %2509 = vmatprep.mubr.bf16.mxu1 %v11265_v47  ;;  %v9655_v47 = vld [vmem:[%s14526_s1 + $0x124] ss:$44 sps:$4 sm:$0xff]  }
  0x86   :  { %v9728_v11 = vld [vmem:[%s14526_s1 + $0x590] ss:$44 sps:$4 sm:$0xff]  }
  0x87   :  { %2394 = vmatpush1.bf16.msra.mxu0 %v9638_v12  ;;  %2480 = vmatpush1.bf16.msra.mxu1 %v9641_v13  ;;  %v9731_v12 = vld [vmem:[%s14526_s1 + $0x598] ss:$44 sps:$4 sm:$0xff]  }
  0x88   :  { %2395 = vmatprep.subr.bf16.mxu0 %v9646_v14  ;;  %2481 = vmatprep.subr.bf16.mxu1 %v9649_v15  ;;  %v9736_v13 = vld [vmem:[%s14526_s1 + $0x5ec] ss:$44 sps:$4 sm:$0xff]   ;;  %v9739_v14 = vld [vmem:[%s14526_s1 + $0x5f4] ss:$44 sps:$4 sm:$0xff]  }
  0x89   :  { %v9734_v15 = vld [vmem:[%s14526_s1 + $0x5e8] ss:$44 sps:$4 sm:$0xff]  }
  0x8b   :  { %2396 = vmatpush1.bf16.msra.mxu0 %v9644_v16  ;;  %2482 = vmatpush1.bf16.msra.mxu1 %v9647_v17  ;;  %v9737_v16 = vld [vmem:[%s14526_s1 + $0x5f0] ss:$44 sps:$4 sm:$0xff]  }
  0x8c   :  { %2397 = vmatprep.subr.bf16.mxu0 %v9652_v18  ;;  %2483 = vmatprep.subr.bf16.mxu1 %v9655_v47  ;;  %v9742_v17 = vld [vmem:[%s14526_s1 + $0x644] ss:$44 sps:$4 sm:$0xff]   ;;  %v9740_v18 = vld [vmem:[%s14526_s1 + $0x640] ss:$44 sps:$4 sm:$0xff]   ;;  %v9743_v47 = vld [vmem:[%s14526_s1 + $0x648] ss:$44 sps:$4 sm:$0xff]  }
  0x8f   :  { %2398 = vmatpush1.bf16.msra.mxu0 %v9650_v19  ;;  %2484 = vmatpush1.bf16.msra.mxu1 %v9653_v20  ;;  %v9748_v19 = vld [vmem:[%s14526_s1 + $0x69c] ss:$44 sps:$4 sm:$0xff]   ;;  %v9751_v20 = vld [vmem:[%s14526_s1 + $0x6a4] ss:$44 sps:$4 sm:$0xff]  }
  0x90   :  { %2399 = vmatprep.subr.bf16.mxu0 %v9658_v21  ;;  %2485 = vmatprep.subr.bf16.mxu1 %v9661_v22  ;;  %v9749_v21 = vld [vmem:[%s14526_s1 + $0x6a0] ss:$44 sps:$4 sm:$0xff]  }
  0x91   :  { %v9754_v22 = vld [vmem:[%s14526_s1 + $0x6f4] ss:$44 sps:$4 sm:$0xff]  }
  0x93   :  { %2400 = vmatpush1.bf16.msra.mxu0 %v9656_v23  ;;  %2486 = vmatpush1.bf16.msra.mxu1 %v9659_v24  ;;  %v9757_v23 = vld [vmem:[%s14526_s1 + $0x6fc] ss:$44 sps:$4 sm:$0xff]  }
  0x94   :  { %2401 = vmatprep.subr.bf16.mxu0 %v9664_v25  ;;  %2487 = vmatprep.subr.bf16.mxu1 %v9667_v26  ;;  %v9752_v24 = vld [vmem:[%s14526_s1 + $0x6f0] ss:$44 sps:$4 sm:$0xff]   ;;  %v9755_v25 = vld [vmem:[%s14526_s1 + $0x6f8] ss:$44 sps:$4 sm:$0xff]  }
  0x95   :  { %v9760_v26 = vld [vmem:[%s14526_s1 + $0x74c] ss:$44 sps:$4 sm:$0xff]  }
  0x97   :  { %2402 = vmatpush1.bf16.msra.mxu0 %v9662_v27  ;;  %2488 = vmatpush1.bf16.msra.mxu1 %v9665_v28  ;;  %v9763_v27 = vld [vmem:[%s14526_s1 + $0x754] ss:$44 sps:$4 sm:$0xff]  }
  0x98   :  { %2403 = vmatprep.subr.bf16.mxu0 %v9670_v29  ;;  %2489 = vmatprep.subr.bf16.mxu1 %v9673_v31  ;;  %v9758_v28 = vld [vmem:[%s14526_s1 + $0x748] ss:$44 sps:$4 sm:$0xff]   ;;  %v9761_v29 = vld [vmem:[%s14526_s1 + $0x750] ss:$44 sps:$4 sm:$0xff]  }
  0x99   :  { %v9766_v31 = vld [vmem:[%s14526_s1 + $0x7a4] ss:$44 sps:$4 sm:$0xff]  }
  0x9b   :  { %2404 = vmatpush1.bf16.msra.mxu0 %v9668_v32  ;;  %2490 = vmatpush1.bf16.msra.mxu1 %v9671_v33  ;;  %v9769_v32 = vld [vmem:[%s14526_s1 + $0x7ac] ss:$44 sps:$4 sm:$0xff]  }
  0x9c   :  { %2405 = vmatprep.subr.bf16.mxu0 %v9676_v34  ;;  %2491 = vmatprep.subr.bf16.mxu1 %v9679_v35  ;;  %v9764_v33 = vld [vmem:[%s14526_s1 + $0x7a0] ss:$44 sps:$4 sm:$0xff]   ;;  %v9767_v34 = vld [vmem:[%s14526_s1 + $0x7a8] ss:$44 sps:$4 sm:$0xff]  }
  0x9d   :  { %v9772_v35 = vld [vmem:[%s14526_s1 + $0x7fc] ss:$44 sps:$4 sm:$0xff]  }
  0x9f   :  { %2406 = vmatpush1.bf16.msra.mxu0 %v9674_v36  ;;  %2492 = vmatpush1.bf16.msra.mxu1 %v9677_v37  ;;  %v9775_v36 = vld [vmem:[%s14526_s1 + $0x804] ss:$44 sps:$4 sm:$0xff]  }
  0xa0   :  { %2407 = vmatprep.subr.bf16.mxu0 %v9682_v38  ;;  %2493 = vmatprep.subr.bf16.mxu1 %v9685_v39  ;;  %v9770_v37 = vld [vmem:[%s14526_s1 + $0x7f8] ss:$44 sps:$4 sm:$0xff]   ;;  %v9773_v38 = vld [vmem:[%s14526_s1 + $0x800] ss:$44 sps:$4 sm:$0xff]  }
  0xa1   :  { %v9778_v39 = vld [vmem:[%s14526_s1 + $0x854] ss:$44 sps:$4 sm:$0xff]  }
  0xa3   :  { %2408 = vmatpush1.bf16.msra.mxu0 %v9680_v40  ;;  %2494 = vmatpush1.bf16.msra.mxu1 %v9683_v41  ;;  %v9781_v40 = vld [vmem:[%s14526_s1 + $0x85c] ss:$44 sps:$4 sm:$0xff]  }
  0xa4   :  { %2409 = vmatprep.subr.bf16.mxu0 %v9688_v42  ;;  %2495 = vmatprep.subr.bf16.mxu1 %v9691_v43  ;;  %v9776_v41 = vld [vmem:[%s14526_s1 + $0x850] ss:$44 sps:$4 sm:$0xff]   ;;  %v9779_v42 = vld [vmem:[%s14526_s1 + $0x858] ss:$44 sps:$4 sm:$0xff]  }
  0xa5   :  { %v9784_v43 = vld [vmem:[%s14526_s1 + $0x8ac] ss:$44 sps:$4 sm:$0xff]  }
  0xa7   :  { %2410 = vmatpush1.bf16.msra.mxu0 %v9686_v44  ;;  %2496 = vmatpush1.bf16.msra.mxu1 %v9689_v45  ;;  %v9787_v44 = vld [vmem:[%s14526_s1 + $0x8b4] ss:$44 sps:$4 sm:$0xff]  }
  0xa8   :  { %2411 = vmatprep.subr.bf16.mxu0 %v9694_v46  ;;  %2497 = vmatprep.subr.bf16.mxu1 %v9697_v48  ;;  %v9782_v45 = vld [vmem:[%s14526_s1 + $0x8a8] ss:$44 sps:$4 sm:$0xff]   ;;  %v9785_v46 = vld [vmem:[%s14526_s1 + $0x8b0] ss:$44 sps:$4 sm:$0xff]  }
  0xa9   :  { %v9790_v48 = vld [vmem:[%s14526_s1 + $0x904] ss:$44 sps:$4 sm:$0xff]  }
  0xab   :  { %2412 = vmatpush1.bf16.msra.mxu0 %v9692_v49  ;;  %2498 = vmatpush1.bf16.msra.mxu1 %v9695_v50  ;;  %v9793_v49 = vld [vmem:[%s14526_s1 + $0x90c] ss:$44 sps:$4 sm:$0xff]  }
  0xac   :  { %2413 = vmatprep.subr.bf16.mxu0 %v9700_v51  ;;  %2499 = vmatprep.subr.bf16.mxu1 %v9703_v52  ;;  %v9788_v50 = vld [vmem:[%s14526_s1 + $0x900] ss:$44 sps:$4 sm:$0xff]   ;;  %v9791_v51 = vld [vmem:[%s14526_s1 + $0x908] ss:$44 sps:$4 sm:$0xff]  }
  0xad   :  { %v9796_v52 = vld [vmem:[%s14526_s1 + $0x95c] ss:$44 sps:$4 sm:$0xff]  }
  0xaf   :  { %2414 = vmatpush1.bf16.msra.mxu0 %v9698_v53  ;;  %2500 = vmatpush1.bf16.msra.mxu1 %v9701_v54  ;;  %v9799_v53 = vld [vmem:[%s14526_s1 + $0x964] ss:$44 sps:$4 sm:$0xff]  }
  0xb0   :  { %2415 = vmatprep.subr.bf16.mxu0 %v9706_v55  ;;  %2501 = vmatprep.subr.bf16.mxu1 %v9709_v56  ;;  %v9794_v54 = vld [vmem:[%s14526_s1 + $0x958] ss:$44 sps:$4 sm:$0xff]   ;;  %v9797_v55 = vld [vmem:[%s14526_s1 + $0x960] ss:$44 sps:$4 sm:$0xff]  }
  0xb1   :  { %v9802_v56 = vld [vmem:[%s14526_s1 + $0x9b4] ss:$44 sps:$4 sm:$0xff]  }
  0xb3   :  { %2416 = vmatpush1.bf16.msra.mxu0 %v9704_v57  ;;  %2502 = vmatpush1.bf16.msra.mxu1 %v9707_v58  ;;  %v9805_v57 = vld [vmem:[%s14526_s1 + $0x9bc] ss:$44 sps:$4 sm:$0xff]  }
  0xb4   :  { %2417 = vmatprep.subr.bf16.mxu0 %v9712_v59  ;;  %2503 = vmatprep.subr.bf16.mxu1 %v9715_v60  ;;  %v9800_v58 = vld [vmem:[%s14526_s1 + $0x9b0] ss:$44 sps:$4 sm:$0xff]   ;;  %v9803_v59 = vld [vmem:[%s14526_s1 + $0x9b8] ss:$44 sps:$4 sm:$0xff]  }
  0xb5   :  { %v9808_v60 = vld [vmem:[%s14526_s1 + $0xa0c] ss:$44 sps:$4 sm:$0xff]  }
  0xb7   :  { %2418 = vmatpush1.bf16.msra.mxu0 %v9710_v61  ;;  %2504 = vmatpush1.bf16.msra.mxu1 %v9713_v62  ;;  %v9811_v61 = vld [vmem:[%s14526_s1 + $0xa14] ss:$44 sps:$4 sm:$0xff]  }
  0xb8   :  { %2419 = vmatprep.subr.bf16.mxu0 %v9718_v63  ;;  %2505 = vmatprep.subr.bf16.mxu1 %v9721_v0  ;;  %v9806_v62 = vld [vmem:[%s14526_s1 + $0xa08] ss:$44 sps:$4 sm:$0xff]   ;;  %v9809_v63 = vld [vmem:[%s14526_s1 + $0xa10] ss:$44 sps:$4 sm:$0xff]  }
  0xb9   :  { %v9814_v0 = vld [vmem:[%s14526_s1 + $0xa64] ss:$44 sps:$4 sm:$0xff]  }
  0xbb   :  { %2420 = vmatpush1.bf16.msra.mxu0 %v9716_v1  ;;  %2506 = vmatpush1.bf16.msra.mxu1 %v9719_v2  ;;  %v9817_v1 = vld [vmem:[%s14526_s1 + $0xa6c] ss:$44 sps:$4 sm:$0xff]  }
  0xbc   :  { %2421 = vmatprep.subr.bf16.mxu0 %v9724_v3  ;;  %2507 = vmatprep.subr.bf16.mxu1 %v9727_v4  ;;  %v9812_v2 = vld [vmem:[%s14526_s1 + $0xa60] ss:$44 sps:$4 sm:$0xff]   ;;  %v9815_v3 = vld [vmem:[%s14526_s1 + $0xa68] ss:$44 sps:$4 sm:$0xff]  }
  0xbd   :  { %v9820_v4 = vld [vmem:[%s14526_s1 + $0xabc] ss:$44 sps:$4 sm:$0xff]  }
  0xbf   :  { %2422 = vmatpush1.bf16.msra.mxu0 %v9722_v6  ;;  %2508 = vmatpush1.bf16.msra.mxu1 %v9725_v8  ;;  %v9823_v6 = vld [vmem:[%s14526_s1 + $0xac4] ss:$44 sps:$4 sm:$0xff]  }
  0xc0   :  { %2434 = vmatprep.subr.bf16.mxu0 %v9730_v9  ;;  %2520 = vmatprep.subr.bf16.mxu1 %v9733_v10  ;;  %v9818_v8 = vld [vmem:[%s14526_s1 + $0xab8] ss:$44 sps:$4 sm:$0xff]   ;;  %v9821_v9 = vld [vmem:[%s14526_s1 + $0xac0] ss:$44 sps:$4 sm:$0xff]  }
  0xc1   :  { %v9826_v10 = vld [vmem:[%s14526_s1 + $0x24] ss:$44 sps:$4 sm:$0xff]  }
  0xc2   :  { %2424 = vmatmul.mubr.bf16.vlgmr.msra.gmra.mrb[4].mxu0 %v11335_v5  ;;  %2510 = vmatmul.mubr.bf16.vlgmr.msra.gmra.mrb[4].mxu1 %v11335_v5  ;;  %v9745_v5 = vld [vmem:[%s14526_s1 + $0x64c] ss:$44 sps:$4 sm:$0xff]  }
  0xc3   :  { %2435 = vmatpush1.bf16.msra.mxu0 %v9728_v11  ;;  %2521 = vmatpush1.bf16.msra.mxu1 %v9731_v12  ;;  %v9827_v11 = vld [vmem:[%s14526_s1 + $0x2e8] ss:$44 sps:$4 sm:$0xff]   ;;  %v9824_v12 = vld [vmem:[%s14526_s1 + $0x20] ss:$44 sps:$4 sm:$0xff]  }
  0xc4   :  { %2436 = vmatprep.subr.bf16.mxu0 %v9736_v13  ;;  %2522 = vmatprep.subr.bf16.mxu1 %v9739_v14  ;;  %v9828_v13 = vld [vmem:[%s14526_s1 + $0x28] ss:$44 sps:$4 sm:$0xff]  }
  0xc5   :  { %2466 = vmatprep.mubr.bf16.mxu0 %v11414_v30  ;;  %2552 = vmatprep.mubr.bf16.mxu1 %v11414_v30  ;;  %v9746_v30 = vld [vmem:[%s14526_s1 + $0x698] ss:$44 sps:$4 sm:$0xff]   ;;  %v9831_v14 = vld [vmem:[%s14526_s1 + $0x7c] ss:$44 sps:$4 sm:$0xff]  }
  0xc7   :  { %2437 = vmatpush1.bf16.msra.mxu0 %v9734_v15  ;;  %2523 = vmatpush1.bf16.msra.mxu1 %v9737_v16  ;;  %v9832_v15 = vld [vmem:[%s14526_s1 + $0x340] ss:$44 sps:$4 sm:$0xff]   ;;  %v9829_v16 = vld [vmem:[%s14526_s1 + $0x78] ss:$44 sps:$4 sm:$0xff]  }
  0xc8   :  { %2438 = vmatprep.subr.bf16.mxu0 %v9742_v17  ;;  %2524 = vmatprep.subr.bf16.mxu1 %v9745_v5  ;;  %v9833_v17 = vld [vmem:[%s14526_s1 + $0x80] ss:$44 sps:$4 sm:$0xff]  }
  0xc9   :  { %v9836_v5 = vld [vmem:[%s14526_s1 + $0xd4] ss:$44 sps:$4 sm:$0xff]  }
  0xcb   :  { %2439 = vmatpush1.bf16.msra.mxu0 %v9740_v18  ;;  %2525 = vmatpush1.bf16.msra.mxu1 %v9743_v47  ;;  %v11958_v18 = vld [vmem:[%s14525_s0 + $0x4] ss:$16 sps:$4 sm:$0xff]   ;;  %v9834_v47 = vld [vmem:[%s14526_s1 + $0xd0] ss:$44 sps:$4 sm:$0xff]  }
  0xcc   :  { %2440 = vmatprep.subr.bf16.mxu0 %v9748_v19  ;;  %2526 = vmatprep.subr.bf16.mxu1 %v9751_v20  ;;  %v9838_v19 = vld [vmem:[%s14526_s1 + $0xd8] ss:$44 sps:$4 sm:$0xff]  }
  0xcd   :  { %v9841_v20 = vld [vmem:[%s14526_s1 + $0x12c] ss:$44 sps:$4 sm:$0xff]  }
  0xcf   :  { %2441 = vmatpush1.bf16.msra.mxu0 %v9746_v30  ;;  %2527 = vmatpush1.bf16.msra.mxu1 %v9749_v21  ;;  %v9842_v30 = vld [vmem:[%s14526_s1 + $0x3f0] ss:$44 sps:$4 sm:$0xff]   ;;  %v9839_v21 = vld [vmem:[%s14526_s1 + $0x128] ss:$44 sps:$4 sm:$0xff]  }
  0xd0   :  { %2442 = vmatprep.subr.bf16.mxu0 %v9754_v22  ;;  %2528 = vmatprep.subr.bf16.mxu1 %v9757_v23  ;;  %v9843_v22 = vld [vmem:[%s14526_s1 + $0x130] ss:$44 sps:$4 sm:$0xff]  }
  0xd1   :  { %v9846_v23 = vld [vmem:[%s14526_s1 + $0x184] ss:$44 sps:$4 sm:$0xff]  }
  0xd3   :  { %2443 = vmatpush1.bf16.msra.mxu0 %v9752_v24  ;;  %2529 = vmatpush1.bf16.msra.mxu1 %v9755_v25  ;;  %v9847_v24 = vld [vmem:[%s14526_s1 + $0x448] ss:$44 sps:$4 sm:$0xff]   ;;  %v9844_v25 = vld [vmem:[%s14526_s1 + $0x180] ss:$44 sps:$4 sm:$0xff]  }
  0xd4   :  { %2444 = vmatprep.subr.bf16.mxu0 %v9760_v26  ;;  %2530 = vmatprep.subr.bf16.mxu1 %v9763_v27  ;;  %v9848_v26 = vld [vmem:[%s14526_s1 + $0x188] ss:$44 sps:$4 sm:$0xff]  }
  0xd5   :  { %v9851_v27 = vld [vmem:[%s14526_s1 + $0x1dc] ss:$44 sps:$4 sm:$0xff]  }
  0xd7   :  { %2445 = vmatpush1.bf16.msra.mxu0 %v9758_v28  ;;  %2531 = vmatpush1.bf16.msra.mxu1 %v9761_v29  ;;  %v9852_v28 = vld [vmem:[%s14526_s1 + $0x4a0] ss:$44 sps:$4 sm:$0xff]   ;;  %v9849_v29 = vld [vmem:[%s14526_s1 + $0x1d8] ss:$44 sps:$4 sm:$0xff]  }
  0xd8   :  { %2446 = vmatprep.subr.bf16.mxu0 %v9766_v31  ;;  %2532 = vmatprep.subr.bf16.mxu1 %v9769_v32  ;;  %v9853_v31 = vld [vmem:[%s14526_s1 + $0x1e0] ss:$44 sps:$4 sm:$0xff]  }
  0xd9   :  { %v9856_v32 = vld [vmem:[%s14526_s1 + $0x234] ss:$44 sps:$4 sm:$0xff]  }
  0xdb   :  { %2447 = vmatpush1.bf16.msra.mxu0 %v9764_v33  ;;  %2533 = vmatpush1.bf16.msra.mxu1 %v9767_v34  ;;  %v9857_v33 = vld [vmem:[%s14526_s1 + $0x4f8] ss:$44 sps:$4 sm:$0xff]   ;;  %v9854_v34 = vld [vmem:[%s14526_s1 + $0x230] ss:$44 sps:$4 sm:$0xff]  }
  0xdc   :  { %2448 = vmatprep.subr.bf16.mxu0 %v9772_v35  ;;  %2534 = vmatprep.subr.bf16.mxu1 %v9775_v36  ;;  %v9858_v35 = vld [vmem:[%s14526_s1 + $0x238] ss:$44 sps:$4 sm:$0xff]  }
  0xdd   :  { %v9861_v36 = vld [vmem:[%s14526_s1 + $0x28c] ss:$44 sps:$4 sm:$0xff]  }
  0xdf   :  { %2449 = vmatpush1.bf16.msra.mxu0 %v9770_v37  ;;  %2535 = vmatpush1.bf16.msra.mxu1 %v9773_v38  ;;  %v9862_v37 = vld [vmem:[%s14526_s1 + $0x550] ss:$44 sps:$4 sm:$0xff]   ;;  %v9859_v38 = vld [vmem:[%s14526_s1 + $0x288] ss:$44 sps:$4 sm:$0xff]  }
  0xe0   :  { %2450 = vmatprep.subr.bf16.mxu0 %v9778_v39  ;;  %2536 = vmatprep.subr.bf16.mxu1 %v9781_v40  ;;  %v9863_v39 = vld [vmem:[%s14526_s1 + $0x290] ss:$44 sps:$4 sm:$0xff]  }
  0xe1   :  { %v9866_v40 = vld [vmem:[%s14526_s1 + $0x2e4] ss:$44 sps:$4 sm:$0xff]  }
  0xe3   :  { %2451 = vmatpush1.bf16.msra.mxu0 %v9776_v41  ;;  %2537 = vmatpush1.bf16.msra.mxu1 %v9779_v42  ;;  %v9867_v41 = vld [vmem:[%s14526_s1 + $0x868] ss:$44 sps:$4 sm:$0xff]   ;;  %v9864_v42 = vld [vmem:[%s14526_s1 + $0x2e0] ss:$44 sps:$4 sm:$0xff]  }
  0xe4   :  { %2452 = vmatprep.subr.bf16.mxu0 %v9784_v43  ;;  %2538 = vmatprep.subr.bf16.mxu1 %v9787_v44  ;;  %v9868_v43 = vld [vmem:[%s14526_s1 + $0x5a8] ss:$44 sps:$4 sm:$0xff]  }
  0xe5   :  { %v9871_v44 = vld [vmem:[%s14526_s1 + $0x33c] ss:$44 sps:$4 sm:$0xff]  }
  0xe7   :  { %2453 = vmatpush1.bf16.msra.mxu0 %v9782_v45  ;;  %2539 = vmatpush1.bf16.msra.mxu1 %v9785_v46  ;;  %v9872_v45 = vld [vmem:[%s14526_s1 + $0x8c0] ss:$44 sps:$4 sm:$0xff]  }
  0xe8   :  { %2454 = vmatprep.subr.bf16.mxu0 %v9790_v48  ;;  %2540 = vmatprep.subr.bf16.mxu1 %v9793_v49  ;;  %v12049_v46 = vld [vmem:[%s14525_s0] ss:$16 sps:$4 sm:$0xff]   ;;  %v9869_v48 = vld [vmem:[%s14526_s1 + $0x338] ss:$44 sps:$4 sm:$0xff]  }
  0xe9   :  { %v9873_v49 = vld [vmem:[%s14526_s1 + $0x600] ss:$44 sps:$4 sm:$0xff]  }
  0xeb   :  { %2455 = vmatpush1.bf16.msra.mxu0 %v9788_v50  ;;  %2541 = vmatpush1.bf16.msra.mxu1 %v9791_v51  ;;  %v9876_v50 = vld [vmem:[%s14526_s1 + $0x394] ss:$44 sps:$4 sm:$0xff]   ;;  %v9877_v51 = vld [vmem:[%s14526_s1 + $0x918] ss:$44 sps:$4 sm:$0xff]  }
  0xec   :  { %2456 = vmatprep.subr.bf16.mxu0 %v9796_v52  ;;  %2542 = vmatprep.subr.bf16.mxu1 %v9799_v53  ;;  %v12067_v52 = vld [vmem:[%s14525_s0 + $0xc] ss:$16 sps:$4 sm:$0xff]  }
  0xed   :  { %v9874_v53 = vld [vmem:[%s14526_s1 + $0x390] ss:$44 sps:$4 sm:$0xff]  }
  0xef   :  { %2457 = vmatpush1.bf16.msra.mxu0 %v9794_v54  ;;  %2543 = vmatpush1.bf16.msra.mxu1 %v9797_v55  ;;  %v9878_v54 = vld [vmem:[%s14526_s1 + $0x658] ss:$44 sps:$4 sm:$0xff]  }
  0xf0   :  { %2458 = vmatprep.subr.bf16.mxu0 %v9802_v56  ;;  %2544 = vmatprep.subr.bf16.mxu1 %v9805_v57  ;;  %v9881_v55 = vld [vmem:[%s14526_s1 + $0x3ec] ss:$44 sps:$4 sm:$0xff]   ;;  %v9882_v56 = vld [vmem:[%s14526_s1 + $0x970] ss:$44 sps:$4 sm:$0xff]   ;;  %v9879_v57 = vld [vmem:[%s14526_s1 + $0x3e8] ss:$44 sps:$4 sm:$0xff]  }
  0xf3   :  { %2459 = vmatpush1.bf16.msra.mxu0 %v9800_v58  ;;  %2545 = vmatpush1.bf16.msra.mxu1 %v9803_v59  ;;  %v9883_v58 = vld [vmem:[%s14526_s1 + $0x6b0] ss:$44 sps:$4 sm:$0xff]  }
  0xf4   :  { %2460 = vmatprep.subr.bf16.mxu0 %v9808_v60  ;;  %2546 = vmatprep.subr.bf16.mxu1 %v9811_v61  ;;  %v9886_v59 = vld [vmem:[%s14526_s1 + $0x444] ss:$44 sps:$4 sm:$0xff]   ;;  %v9887_v60 = vld [vmem:[%s14526_s1 + $0x9c8] ss:$44 sps:$4 sm:$0xff]   ;;  %v9884_v61 = vld [vmem:[%s14526_s1 + $0x440] ss:$44 sps:$4 sm:$0xff]  }
  0xf7   :  { %2461 = vmatpush1.bf16.msra.mxu0 %v9806_v62  ;;  %2547 = vmatpush1.bf16.msra.mxu1 %v9809_v63  ;;  %v9888_v62 = vld [vmem:[%s14526_s1 + $0x708] ss:$44 sps:$4 sm:$0xff]  }
  0xf8   :  { %2462 = vmatprep.subr.bf16.mxu0 %v9814_v0  ;;  %2548 = vmatprep.subr.bf16.mxu1 %v9817_v1  ;;  %v9891_v63 = vld [vmem:[%s14526_s1 + $0x49c] ss:$44 sps:$4 sm:$0xff]   ;;  %v9892_v0 = vld [vmem:[%s14526_s1 + $0xa20] ss:$44 sps:$4 sm:$0xff]   ;;  %v9889_v1 = vld [vmem:[%s14526_s1 + $0x498] ss:$44 sps:$4 sm:$0xff]  }
  0xfb   :  { %2463 = vmatpush1.bf16.msra.mxu0 %v9812_v2  ;;  %2549 = vmatpush1.bf16.msra.mxu1 %v9815_v3  ;;  %v9893_v2 = vld [vmem:[%s14526_s1 + $0x760] ss:$44 sps:$4 sm:$0xff]  }
  0xfc   :  { %2464 = vmatprep.subr.bf16.mxu0 %v9820_v4  ;;  %2550 = vmatprep.subr.bf16.mxu1 %v9823_v6  ;;  %v9896_v3 = vld [vmem:[%s14526_s1 + $0x4f4] ss:$44 sps:$4 sm:$0xff]   ;;  %v9897_v4 = vld [vmem:[%s14526_s1 + $0xa78] ss:$44 sps:$4 sm:$0xff]   ;;  %v9894_v6 = vld [vmem:[%s14526_s1 + $0x4f0] ss:$44 sps:$4 sm:$0xff]  }
  0xff   :  { %2465 = vmatpush1.bf16.msra.mxu0 %v9818_v8  ;;  %2551 = vmatpush1.bf16.msra.mxu1 %v9821_v9  ;;  %v9898_v8 = vld [vmem:[%s14526_s1 + $0x7b8] ss:$44 sps:$4 sm:$0xff]  }
 0x100   :  { %2563 = vmatprep.subr.bf16.mxu0 %v9826_v10  ;;  %9262 = vmatprep.subr.bf16.mxu1 %v9827_v11  ;;  %v9901_v9 = vld [vmem:[%s14526_s1 + $0x54c] ss:$44 sps:$4 sm:$0xff]   ;;  %v9902_v10 = vld [vmem:[%s14526_s1 + $0xad0] ss:$44 sps:$4 sm:$0xff]   ;;  %v9899_v11 = vld [vmem:[%s14526_s1 + $0x548] ss:$44 sps:$4 sm:$0xff]  }
 0x102   :  { %2467 = vmatmul.mubr.bf16.vlgmr.msra.gmra.mrb[4].mxu0 %v11535_v7  ;;  %2553 = vmatmul.mubr.bf16.vlgmr.msra.gmra.mrb[4].mxu1 %v11535_v7  ;;  %v9837_v7 = vld [vmem:[%s14526_s1 + $0x398] ss:$44 sps:$4 sm:$0xff]  }
 0x103   :  { %2564 = vmatpush1.bf16.msra.mxu0 %v9824_v12  ;;  %9263 = vmatpush3.bf16.msra.mxu1 %v9828_v13  ;;  %v9903_v12 = vld [vmem:[%s14526_s1 + $0x810] ss:$44 sps:$4 sm:$0xff]  }
 0x104   :  { %2565 = vmatprep.subr.bf16.mxu0 %v9831_v14  ;;  %9264 = vmatprep.subr.bf16.mxu1 %v9832_v15  ;;  %v9906_v13 = vld [vmem:[%s14526_s1 + $0x5a4] ss:$44 sps:$4 sm:$0xff]   ;;  %v9904_v15 = vld [vmem:[%s14526_s1 + $0x5a0] ss:$44 sps:$4 sm:$0xff]  }
 0x105   :  { %2681 = vmatprep.mubr.bf16.mxu1 %v11958_v18  ;;  %2595 = vmatprep.mubr.bf16.mxu0 %v11958_v18  ;;  %v9909_v14 = vld [vmem:[%s14527_s2 + $0x4] ss:$44 sps:$4 sm:$0xff]  }
 0x107   :  { %2566 = vmatpush1.bf16.msra.mxu0 %v9829_v16  ;;  %9265 = vmatpush3.bf16.msra.mxu1 %v9833_v17  ;;  %v9907_v16 = vld [vmem:[%s14527_s2] ss:$44 sps:$4 sm:$0xff]   ;;  %v9912_v17 = vld [vmem:[%s14526_s1 + $0x5fc] ss:$44 sps:$4 sm:$0xff]  }
 0x108   :  { %2567 = vmatprep.subr.bf16.mxu0 %v9836_v5  ;;  %9266 = vmatprep.subr.bf16.mxu1 %v9837_v7  ;;  %v9915_v5 = vld [vmem:[%s14527_s2 + $0x5c] ss:$44 sps:$4 sm:$0xff]  }
 0x109   :  { %v12157_v7 = vld [vmem:[%s14525_s0 + $0x8] ss:$16 sps:$4 sm:$0xff]  }
 0x10b   :  { %2568 = vmatpush1.bf16.msra.mxu0 %v9834_v47  ;;  %9267 = vmatpush3.bf16.msra.mxu1 %v9838_v19  ;;  %v9910_v47 = vld [vmem:[%s14526_s1 + $0x5f8] ss:$44 sps:$4 sm:$0xff]  }
 0x10c   :  { %2569 = vmatprep.subr.bf16.mxu0 %v9841_v20  ;;  %9268 = vmatprep.subr.bf16.mxu1 %v9842_v30  ;;  %v9913_v19 = vld [vmem:[%s14527_s2 + $0x58] ss:$44 sps:$4 sm:$0xff]   ;;  %v9918_v20 = vld [vmem:[%s14526_s1 + $0x654] ss:$44 sps:$4 sm:$0xff]  }
 0x10d   :  { %v9921_v30 = vld [vmem:[%s14527_s2 + $0xb4] ss:$44 sps:$4 sm:$0xff]  }
 0x10f   :  { %2570 = vmatpush1.bf16.msra.mxu0 %v9839_v21  ;;  %9269 = vmatpush3.bf16.msra.mxu1 %v9843_v22  ;;  %v9916_v21 = vld [vmem:[%s14526_s1 + $0x650] ss:$44 sps:$4 sm:$0xff]  }
 0x110   :  { %2571 = vmatprep.subr.bf16.mxu0 %v9846_v23  ;;  %9270 = vmatprep.subr.bf16.mxu1 %v9847_v24  ;;  %v9919_v22 = vld [vmem:[%s14527_s2 + $0xb0] ss:$44 sps:$4 sm:$0xff]   ;;  %v9924_v23 = vld [vmem:[%s14526_s1 + $0x6ac] ss:$44 sps:$4 sm:$0xff]  }
 0x111   :  { %v9927_v24 = vld [vmem:[%s14527_s2 + $0x10c] ss:$44 sps:$4 sm:$0xff]  }
 0x113   :  { %2572 = vmatpush1.bf16.msra.mxu0 %v9844_v25  ;;  %9271 = vmatpush3.bf16.msra.mxu1 %v9848_v26  ;;  %v9922_v25 = vld [vmem:[%s14526_s1 + $0x6a8] ss:$44 sps:$4 sm:$0xff]  }
 0x114   :  { %2573 = vmatprep.subr.bf16.mxu0 %v9851_v27  ;;  %9272 = vmatprep.subr.bf16.mxu1 %v9852_v28  ;;  %v9925_v26 = vld [vmem:[%s14527_s2 + $0x108] ss:$44 sps:$4 sm:$0xff]   ;;  %v9930_v27 = vld [vmem:[%s14526_s1 + $0x704] ss:$44 sps:$4 sm:$0xff]  }
 0x115   :  { %v9933_v28 = vld [vmem:[%s14527_s2 + $0x164] ss:$44 sps:$4 sm:$0xff]  }
 0x117   :  { %2574 = vmatpush1.bf16.msra.mxu0 %v9849_v29  ;;  %9273 = vmatpush3.bf16.msra.mxu1 %v9853_v31  ;;  %v9928_v29 = vld [vmem:[%s14526_s1 + $0x700] ss:$44 sps:$4 sm:$0xff]  }
 0x118   :  { %2575 = vmatprep.subr.bf16.mxu0 %v9856_v32  ;;  %9274 = vmatprep.subr.bf16.mxu1 %v9857_v33  ;;  %v9931_v31 = vld [vmem:[%s14527_s2 + $0x160] ss:$44 sps:$4 sm:$0xff]   ;;  %v9936_v32 = vld [vmem:[%s14526_s1 + $0x75c] ss:$44 sps:$4 sm:$0xff]  }
 0x119   :  { %v9939_v33 = vld [vmem:[%s14527_s2 + $0x1bc] ss:$44 sps:$4 sm:$0xff]  }
 0x11b   :  { %2576 = vmatpush1.bf16.msra.mxu0 %v9854_v34  ;;  %9275 = vmatpush3.bf16.msra.mxu1 %v9858_v35  ;;  %v9934_v34 = vld [vmem:[%s14526_s1 + $0x758] ss:$44 sps:$4 sm:$0xff]  }
 0x11c   :  { %2577 = vmatprep.subr.bf16.mxu0 %v9861_v36  ;;  %9276 = vmatprep.subr.bf16.mxu1 %v9862_v37  ;;  %v9937_v35 = vld [vmem:[%s14527_s2 + $0x1b8] ss:$44 sps:$4 sm:$0xff]   ;;  %v9942_v36 = vld [vmem:[%s14526_s1 + $0x7b4] ss:$44 sps:$4 sm:$0xff]  }
 0x11d   :  { %v9945_v37 = vld [vmem:[%s14527_s2 + $0x214] ss:$44 sps:$4 sm:$0xff]  }
 0x11f   :  { %2578 = vmatpush1.bf16.msra.mxu0 %v9859_v38  ;;  %9277 = vmatpush3.bf16.msra.mxu1 %v9863_v39 }
 0x120   :  { %2579 = vmatprep.subr.bf16.mxu0 %v9866_v40  ;;  %9284 = vmatprep.subr.bf16.mxu1 %v9867_v41 }
 0x122   :  { %2682 = vmatmul.mubr.bf16.vlgmr.msra.gmra.mrb[8].mxu1 %v12049_v46 }
 0x123   :  { %2580 = vmatpush1.bf16.msra.mxu0 %v9864_v42  ;;  %9285 = vmatpush3.bf16.msra.mxu1 %v9868_v43 }
 0x124   :  { %2581 = vmatprep.subr.bf16.mxu0 %v9871_v44  ;;  %9286 = vmatprep.subr.bf16.mxu1 %v9872_v45  ;;  %v9940_v44 = vld [vmem:[%s14526_s1 + $0x7b0] ss:$44 sps:$4 sm:$0xff]  }
 0x125   :  { %2722 = vmatprep.mubr.bf16.mxu1 %v12067_v52  ;;  %v9943_v45 = vld [vmem:[%s14527_s2 + $0x210] ss:$44 sps:$4 sm:$0xff]  }
 0x127   :  { %2582 = vmatpush1.bf16.msra.mxu0 %v9869_v48  ;;  %9287 = vmatpush3.bf16.msra.mxu1 %v9873_v49 }
 0x128   :  { %2583 = vmatprep.subr.bf16.mxu0 %v9876_v50  ;;  %9288 = vmatprep.subr.bf16.mxu1 %v9877_v51  ;;  %v9948_v50 = vld [vmem:[%s14526_s1 + $0x80c] ss:$44 sps:$4 sm:$0xff]  }
 0x129   :  { %v9951_v51 = vld [vmem:[%s14527_s2 + $0x26c] ss:$44 sps:$4 sm:$0xff]  }
 0x12b   :  { %2584 = vmatpush1.bf16.msra.mxu0 %v9874_v53  ;;  %9289 = vmatpush3.bf16.msra.mxu1 %v9878_v54  ;;  %v9946_v53 = vld [vmem:[%s14526_s1 + $0x808] ss:$44 sps:$4 sm:$0xff]  }
 0x12c   :  { %2585 = vmatprep.subr.bf16.mxu0 %v9881_v55  ;;  %9290 = vmatprep.subr.bf16.mxu1 %v9882_v56  ;;  %v9949_v54 = vld [vmem:[%s14527_s2 + $0x268] ss:$44 sps:$4 sm:$0xff]   ;;  %v9954_v55 = vld [vmem:[%s14526_s1 + $0x864] ss:$44 sps:$4 sm:$0xff]  }
 0x12d   :  { %v9957_v56 = vld [vmem:[%s14527_s2 + $0x2c4] ss:$44 sps:$4 sm:$0xff]  }
 0x12f   :  { %2586 = vmatpush1.bf16.msra.mxu0 %v9879_v57  ;;  %9291 = vmatpush3.bf16.msra.mxu1 %v9883_v58  ;;  %v9952_v57 = vld [vmem:[%s14526_s1 + $0x860] ss:$44 sps:$4 sm:$0xff]  }
 0x130   :  { %2587 = vmatprep.subr.bf16.mxu0 %v9886_v59  ;;  %9292 = vmatprep.subr.bf16.mxu1 %v9887_v60  ;;  %v9955_v58 = vld [vmem:[%s14527_s2 + $0x2c0] ss:$44 sps:$4 sm:$0xff]   ;;  %v9960_v59 = vld [vmem:[%s14526_s1 + $0x8bc] ss:$44 sps:$4 sm:$0xff]  }
 0x131   :  { %v9963_v60 = vld [vmem:[%s14527_s2 + $0x31c] ss:$44 sps:$4 sm:$0xff]  }
 0x133   :  { %2588 = vmatpush1.bf16.msra.mxu0 %v9884_v61  ;;  %9293 = vmatpush3.bf16.msra.mxu1 %v9888_v62  ;;  %v9958_v61 = vld [vmem:[%s14526_s1 + $0x8b8] ss:$44 sps:$4 sm:$0xff]  }
 0x134   :  { %2589 = vmatprep.subr.bf16.mxu0 %v9891_v63  ;;  %9294 = vmatprep.subr.bf16.mxu1 %v9892_v0  ;;  %v9961_v62 = vld [vmem:[%s14527_s2 + $0x318] ss:$44 sps:$4 sm:$0xff]   ;;  %v9966_v63 = vld [vmem:[%s14526_s1 + $0x914] ss:$44 sps:$4 sm:$0xff]  }
 0x135   :  { %v9969_v0 = vld [vmem:[%s14527_s2 + $0x374] ss:$44 sps:$4 sm:$0xff]  }
 0x137   :  { %2590 = vmatpush1.bf16.msra.mxu0 %v9889_v1  ;;  %9295 = vmatpush3.bf16.msra.mxu1 %v9893_v2  ;;  %v9964_v1 = vld [vmem:[%s14526_s1 + $0x910] ss:$44 sps:$4 sm:$0xff]  }
 0x138   :  { %2591 = vmatprep.subr.bf16.mxu0 %v9896_v3  ;;  %9296 = vmatprep.subr.bf16.mxu1 %v9897_v4  ;;  %v9967_v2 = vld [vmem:[%s14527_s2 + $0x370] ss:$44 sps:$4 sm:$0xff]   ;;  %v9972_v3 = vld [vmem:[%s14526_s1 + $0x96c] ss:$44 sps:$4 sm:$0xff]  }
 0x139   :  { %v9975_v4 = vld [vmem:[%s14527_s2 + $0x3cc] ss:$44 sps:$4 sm:$0xff]  }
 0x13b   :  { %2592 = vmatpush1.bf16.msra.mxu0 %v9894_v6  ;;  %9297 = vmatpush3.bf16.msra.mxu1 %v9898_v8  ;;  %v9970_v6 = vld [vmem:[%s14526_s1 + $0x968] ss:$44 sps:$4 sm:$0xff]  }
 0x13c   :  { %2593 = vmatprep.subr.bf16.mxu0 %v9901_v9  ;;  %9298 = vmatprep.subr.bf16.mxu1 %v9902_v10  ;;  %v9973_v8 = vld [vmem:[%s14527_s2 + $0x3c8] ss:$44 sps:$4 sm:$0xff]   ;;  %v9978_v9 = vld [vmem:[%s14526_s1 + $0x9c4] ss:$44 sps:$4 sm:$0xff]  }
 0x13d   :  { %v9981_v10 = vld [vmem:[%s14527_s2 + $0x424] ss:$44 sps:$4 sm:$0xff]  }
 0x13f   :  { %2594 = vmatpush1.bf16.msra.mxu0 %v9899_v11  ;;  %9299 = vmatpush3.bf16.msra.mxu1 %v9903_v12  ;;  %v9976_v11 = vld [vmem:[%s14526_s1 + $0x9c0] ss:$44 sps:$4 sm:$0xff]  }
 0x140   :  { %2606 = vmatprep.subr.bf16.mxu0 %v9906_v13  ;;  %4907 = vmatprep.subr.bf16.mxu1 %v9909_v14  ;;  %v9979_v12 = vld [vmem:[%s14527_s2 + $0x420] ss:$44 sps:$4 sm:$0xff]   ;;  %v9984_v13 = vld [vmem:[%s14526_s1 + $0xa1c] ss:$44 sps:$4 sm:$0xff]  }
 0x141   :  { %v9987_v14 = vld [vmem:[%s14527_s2 + $0x47c] ss:$44 sps:$4 sm:$0xff]  }
 0x142   :  { %2723 = vmatmul.mubr.bf16.vlgmr.msra.gmra.mrb[12].mxu1 %v12157_v7  ;;  %2596 = vmatmul.mubr.bf16.vlgmr.msra.gmra.mrb[8].mxu0 %v12049_v46 }
 0x143   :  { %2607 = vmatpush1.bf16.msra.mxu0 %v9904_v15  ;;  %4908 = vmatpush1.bf16.msra.mxu1 %v9907_v16  ;;  %v9982_v15 = vld [vmem:[%s14526_s1 + $0xa18] ss:$44 sps:$4 sm:$0xff]  }
 0x144   :  { %2608 = vmatprep.subr.bf16.mxu0 %v9912_v17  ;;  %4909 = vmatprep.subr.bf16.mxu1 %v9915_v5  ;;  %v9985_v16 = vld [vmem:[%s14527_s2 + $0x478] ss:$44 sps:$4 sm:$0xff]   ;;  %v9990_v17 = vld [vmem:[%s14526_s1 + $0xa74] ss:$44 sps:$4 sm:$0xff]  }
 0x145   :  { %2638 = vmatprep.mubr.bf16.mxu0 %v12067_v52  ;;  %4939 = vmatprep.mubr.bf16.mxu1 %v11958_v18  ;;  %v9993_v5 = vld [vmem:[%s14527_s2 + $0x4d4] ss:$44 sps:$4 sm:$0xff]  }
 0x147   :  { %2609 = vmatpush1.bf16.msra.mxu0 %v9910_v47  ;;  %4910 = vmatpush1.bf16.msra.mxu1 %v9913_v19  ;;  %v9988_v47 = vld [vmem:[%s14526_s1 + $0xa70] ss:$44 sps:$4 sm:$0xff]  }
 0x148   :  { %2610 = vmatprep.subr.bf16.mxu0 %v9918_v20  ;;  %4911 = vmatprep.subr.bf16.mxu1 %v9921_v30  ;;  %v9991_v19 = vld [vmem:[%s14527_s2 + $0x4d0] ss:$44 sps:$4 sm:$0xff]   ;;  %v9996_v20 = vld [vmem:[%s14526_s1 + $0xacc] ss:$44 sps:$4 sm:$0xff]  }
 0x149   :  { %v9999_v30 = vld [vmem:[%s14527_s2 + $0x52c] ss:$44 sps:$4 sm:$0xff]  }
 0x14b   :  { %2611 = vmatpush1.bf16.msra.mxu0 %v9916_v21  ;;  %4912 = vmatpush1.bf16.msra.mxu1 %v9919_v22  ;;  %v9994_v21 = vld [vmem:[%s14526_s1 + $0xac8] ss:$44 sps:$4 sm:$0xff]  }
 0x14c   :  { %2612 = vmatprep.subr.bf16.mxu0 %v9924_v23  ;;  %4913 = vmatprep.subr.bf16.mxu1 %v9927_v24  ;;  %v9997_v22 = vld [vmem:[%s14527_s2 + $0x528] ss:$44 sps:$4 sm:$0xff]   ;;  %v10002_v23 = vld [vmem:[%s14527_s2 + $0x584] ss:$44 sps:$4 sm:$0xff]   ;;  %v10005_v24 = vld [vmem:[%s14527_s2 + $0xc] ss:$44 sps:$4 sm:$0xff]  }
 0x14f   :  { %2613 = vmatpush1.bf16.msra.mxu0 %v9922_v25  ;;  %4914 = vmatpush1.bf16.msra.mxu1 %v9925_v26  ;;  %v10000_v25 = vld [vmem:[%s14527_s2 + $0x580] ss:$44 sps:$4 sm:$0xff]   ;;  %v10003_v26 = vld [vmem:[%s14527_s2 + $0x8] ss:$44 sps:$4 sm:$0xff]  }
 0x150   :  { %2614 = vmatprep.subr.bf16.mxu0 %v9930_v27  ;;  %4915 = vmatprep.subr.bf16.mxu1 %v9933_v28  ;;  %v10008_v27 = vld [vmem:[%s14527_s2 + $0x5dc] ss:$44 sps:$4 sm:$0xff]   ;;  %v10011_v28 = vld [vmem:[%s14527_s2 + $0x64] ss:$44 sps:$4 sm:$0xff]  }
 0x153   :  { %2615 = vmatpush1.bf16.msra.mxu0 %v9928_v29  ;;  %4916 = vmatpush1.bf16.msra.mxu1 %v9931_v31  ;;  %v10006_v29 = vld [vmem:[%s14527_s2 + $0x5d8] ss:$44 sps:$4 sm:$0xff]   ;;  %v10009_v31 = vld [vmem:[%s14527_s2 + $0x60] ss:$44 sps:$4 sm:$0xff]  }
 0x154   :  { %2616 = vmatprep.subr.bf16.mxu0 %v9936_v32  ;;  %4917 = vmatprep.subr.bf16.mxu1 %v9939_v33  ;;  %v10014_v32 = vld [vmem:[%s14527_s2 + $0x634] ss:$44 sps:$4 sm:$0xff]   ;;  %v10015_v33 = vld [vmem:[%s14527_s2 + $0xb8] ss:$44 sps:$4 sm:$0xff]  }
 0x155   :  { %v12223_v38 = vpop.f32.mrb[0].mxu0  ;;  %v12225_v39 = vpop.f32.mrb[0].mxu1 }
 0x156   :  { %v12227_v40 = vpop.f32.mrb[1].mxu0  ;;  %v12229_v41 = vpop.f32.mrb[1].mxu1 }
 0x157   :  { %v12231_v42 = vpop.f32.mrb[2].mxu0  ;;  %v12233_v43 = vpop.f32.mrb[2].mxu1  ;;  %2617 = vmatpush1.bf16.msra.mxu0 %v9934_v34  ;;  %4918 = vmatpush1.bf16.msra.mxu1 %v9937_v35  ;;  %v10020_v34 = vld [vmem:[%s14527_s2 + $0x68c] ss:$44 sps:$4 sm:$0xff]   ;;  %v10021_v35 = vld [vmem:[%s14527_s2 + $0x110] ss:$44 sps:$4 sm:$0xff]  }
 0x158   :  { %v12241_v48 = vpop.f32.mrb[3].mxu0  ;;  %v12243_v49 = vpop.f32.mrb[3].mxu1  ;;  %2618 = vmatprep.subr.bf16.mxu0 %v9942_v36  ;;  %4919 = vmatprep.subr.bf16.mxu1 %v9945_v37  ;;  %v10026_v36 = vld [vmem:[%s14527_s2 + $0x6e4] ss:$44 sps:$4 sm:$0xff]   ;;  %v10029_v37 = vld [vmem:[%s14527_s2 + $0x16c] ss:$44 sps:$4 sm:$0xff]  }
 0x15b   :  { %2619 = vmatpush1.bf16.msra.mxu0 %v9940_v44  ;;  %4920 = vmatpush1.bf16.msra.mxu1 %v9943_v45  ;;  %v10024_v44 = vld [vmem:[%s14527_s2 + $0x6e0] ss:$44 sps:$4 sm:$0xff]   ;;  %v10027_v45 = vld [vmem:[%s14527_s2 + $0x168] ss:$44 sps:$4 sm:$0xff]  }
 0x15c   :  { %2620 = vmatprep.subr.bf16.mxu0 %v9948_v50  ;;  %4921 = vmatprep.subr.bf16.mxu1 %v9951_v51  ;;  %v10032_v50 = vld [vmem:[%s14527_s2 + $0x73c] ss:$44 sps:$4 sm:$0xff]   ;;  %v10035_v51 = vld [vmem:[%s14527_s2 + $0x1c4] ss:$44 sps:$4 sm:$0xff]  }
 0x15f   :  { %2621 = vmatpush1.bf16.msra.mxu0 %v9946_v53  ;;  %4922 = vmatpush1.bf16.msra.mxu1 %v9949_v54  ;;  %v10030_v53 = vld [vmem:[%s14527_s2 + $0x738] ss:$44 sps:$4 sm:$0xff]   ;;  %v10033_v54 = vld [vmem:[%s14527_s2 + $0x1c0] ss:$44 sps:$4 sm:$0xff]  }
 0x160   :  { %2622 = vmatprep.subr.bf16.mxu0 %v9954_v55  ;;  %4923 = vmatprep.subr.bf16.mxu1 %v9957_v56  ;;  %v10038_v55 = vld [vmem:[%s14527_s2 + $0x794] ss:$44 sps:$4 sm:$0xff]   ;;  %v10041_v56 = vld [vmem:[%s14527_s2 + $0x21c] ss:$44 sps:$4 sm:$0xff]  }
 0x163   :  { %2623 = vmatpush1.bf16.msra.mxu0 %v9952_v57  ;;  %4924 = vmatpush1.bf16.msra.mxu1 %v9955_v58  ;;  %v10036_v57 = vld [vmem:[%s14527_s2 + $0x790] ss:$44 sps:$4 sm:$0xff]   ;;  %v10039_v58 = vld [vmem:[%s14527_s2 + $0x218] ss:$44 sps:$4 sm:$0xff]  }
 0x164   :  { %2624 = vmatprep.subr.bf16.mxu0 %v9960_v59  ;;  %4925 = vmatprep.subr.bf16.mxu1 %v9963_v60  ;;  %v10044_v59 = vld [vmem:[%s14527_s2 + $0x7ec] ss:$44 sps:$4 sm:$0xff]   ;;  %v10047_v60 = vld [vmem:[%s14527_s2 + $0x274] ss:$44 sps:$4 sm:$0xff]  }
 0x167   :  { %2625 = vmatpush1.bf16.msra.mxu0 %v9958_v61  ;;  %4926 = vmatpush1.bf16.msra.mxu1 %v9961_v62  ;;  %v10042_v61 = vld [vmem:[%s14527_s2 + $0x7e8] ss:$44 sps:$4 sm:$0xff]   ;;  %v10045_v62 = vld [vmem:[%s14527_s2 + $0x270] ss:$44 sps:$4 sm:$0xff]  }
 0x168   :  { %2626 = vmatprep.subr.bf16.mxu0 %v9966_v63  ;;  %4927 = vmatprep.subr.bf16.mxu1 %v9969_v0  ;;  %v10050_v63 = vld [vmem:[%s14527_s2 + $0x844] ss:$44 sps:$4 sm:$0xff]   ;;  %v10053_v0 = vld [vmem:[%s14527_s2 + $0x2cc] ss:$44 sps:$4 sm:$0xff]  }
 0x16b   :  { %2627 = vmatpush1.bf16.msra.mxu0 %v9964_v1  ;;  %4928 = vmatpush1.bf16.msra.mxu1 %v9967_v2  ;;  %v10048_v1 = vld [vmem:[%s14527_s2 + $0x840] ss:$44 sps:$4 sm:$0xff]   ;;  %v10051_v2 = vld [vmem:[%s14527_s2 + $0x2c8] ss:$44 sps:$4 sm:$0xff]  }
 0x16c   :  { %2628 = vmatprep.subr.bf16.mxu0 %v9972_v3  ;;  %4929 = vmatprep.subr.bf16.mxu1 %v9975_v4  ;;  %v10056_v3 = vld [vmem:[%s14527_s2 + $0x89c] ss:$44 sps:$4 sm:$0xff]   ;;  %v10059_v4 = vld [vmem:[%s14527_s2 + $0x324] ss:$44 sps:$4 sm:$0xff]  }
 0x16f   :  { %2629 = vmatpush1.bf16.msra.mxu0 %v9970_v6  ;;  %4930 = vmatpush1.bf16.msra.mxu1 %v9973_v8  ;;  %v10054_v6 = vld [vmem:[%s14527_s2 + $0x898] ss:$44 sps:$4 sm:$0xff]   ;;  %v10057_v8 = vld [vmem:[%s14527_s2 + $0x320] ss:$44 sps:$4 sm:$0xff]  }
 0x170   :  { %2630 = vmatprep.subr.bf16.mxu0 %v9978_v9  ;;  %4931 = vmatprep.subr.bf16.mxu1 %v9981_v10  ;;  %v10062_v9 = vld [vmem:[%s14527_s2 + $0x8f4] ss:$44 sps:$4 sm:$0xff]   ;;  %v10065_v10 = vld [vmem:[%s14527_s2 + $0x37c] ss:$44 sps:$4 sm:$0xff]  }
 0x173   :  { %2631 = vmatpush1.bf16.msra.mxu0 %v9976_v11  ;;  %4932 = vmatpush1.bf16.msra.mxu1 %v9979_v12  ;;  %v10060_v11 = vld [vmem:[%s14527_s2 + $0x8f0] ss:$44 sps:$4 sm:$0xff]   ;;  %v10063_v12 = vld [vmem:[%s14527_s2 + $0x378] ss:$44 sps:$4 sm:$0xff]  }
 0x174   :  { %2632 = vmatprep.subr.bf16.mxu0 %v9984_v13  ;;  %4933 = vmatprep.subr.bf16.mxu1 %v9987_v14  ;;  %v10068_v13 = vld [vmem:[%s14527_s2 + $0x94c] ss:$44 sps:$4 sm:$0xff]   ;;  %v10071_v14 = vld [vmem:[%s14527_s2 + $0x3d4] ss:$44 sps:$4 sm:$0xff]  }
 0x177   :  { %2633 = vmatpush1.bf16.msra.mxu0 %v9982_v15  ;;  %4934 = vmatpush1.bf16.msra.mxu1 %v9985_v16  ;;  %v10066_v15 = vld [vmem:[%s14527_s2 + $0x948] ss:$44 sps:$4 sm:$0xff]   ;;  %v10069_v16 = vld [vmem:[%s14527_s2 + $0x3d0] ss:$44 sps:$4 sm:$0xff]  }
 0x178   :  { %2634 = vmatprep.subr.bf16.mxu0 %v9990_v17  ;;  %4935 = vmatprep.subr.bf16.mxu1 %v9993_v5  ;;  %v10074_v17 = vld [vmem:[%s14527_s2 + $0x9a4] ss:$44 sps:$4 sm:$0xff]   ;;  %v10077_v5 = vld [vmem:[%s14527_s2 + $0x42c] ss:$44 sps:$4 sm:$0xff]  }
 0x17b   :  { %2635 = vmatpush1.bf16.msra.mxu0 %v9988_v47  ;;  %4936 = vmatpush1.bf16.msra.mxu1 %v9991_v19  ;;  %v10072_v47 = vld [vmem:[%s14527_s2 + $0x9a0] ss:$44 sps:$4 sm:$0xff]   ;;  %v10075_v19 = vld [vmem:[%s14527_s2 + $0x428] ss:$44 sps:$4 sm:$0xff]  }
 0x17c   :  { %2636 = vmatprep.subr.bf16.mxu0 %v9996_v20  ;;  %4937 = vmatprep.subr.bf16.mxu1 %v9999_v30  ;;  %v10080_v20 = vld [vmem:[%s14527_s2 + $0x9fc] ss:$44 sps:$4 sm:$0xff]   ;;  %v10083_v30 = vld [vmem:[%s14527_s2 + $0x484] ss:$44 sps:$4 sm:$0xff]  }
 0x17f   :  { %2637 = vmatpush1.bf16.msra.mxu0 %v9994_v21  ;;  %4938 = vmatpush1.bf16.msra.mxu1 %v9997_v22  ;;  %v10078_v21 = vld [vmem:[%s14527_s2 + $0x9f8] ss:$44 sps:$4 sm:$0xff]   ;;  %v10081_v22 = vld [vmem:[%s14527_s2 + $0x480] ss:$44 sps:$4 sm:$0xff]  }
 0x180   :  { %4950 = vmatprep.subr.bf16.mxu1 %v10002_v23  ;;  %4993 = vmatprep.subr.bf16.mxu0 %v10005_v24  ;;  %v10086_v23 = vld [vmem:[%s14527_s2 + $0xa54] ss:$44 sps:$4 sm:$0xff]   ;;  %v10089_v24 = vld [vmem:[%s14527_s2 + $0x4dc] ss:$44 sps:$4 sm:$0xff]  }
 0x182   :  { %2639 = vmatmul.mubr.bf16.vlgmr.msra.gmra.mrb[8].mxu0 %v12157_v7  ;;  %4940 = vmatmul.mubr.bf16.vlgmr.msra.gmra.mrb[16].mxu1 %v12049_v46  ;;  %v10017_v46 = vld [vmem:[%s14527_s2 + $0xbc] ss:$44 sps:$4 sm:$0xff]  }
 0x183   :  { %4951 = vmatpush1.bf16.msra.mxu1 %v10000_v25  ;;  %4994 = vmatpush1.bf16.msra.mxu0 %v10003_v26  ;;  %v10012_v7 = vld [vmem:[%s14527_s2 + $0x630] ss:$44 sps:$4 sm:$0xff]   ;;  %v10087_v26 = vld [vmem:[%s14527_s2 + $0x4d8] ss:$44 sps:$4 sm:$0xff]  }
 0x184   :  { %4952 = vmatprep.subr.bf16.mxu1 %v10008_v27  ;;  %4995 = vmatprep.subr.bf16.mxu0 %v10011_v28  ;;  %v10084_v25 = vld [vmem:[%s14527_s2 + $0xa50] ss:$44 sps:$4 sm:$0xff]   ;;  %v10092_v27 = vld [vmem:[%s14527_s2 + $0xaac] ss:$44 sps:$4 sm:$0xff]   ;;  %v10095_v28 = vld [vmem:[%s14527_s2 + $0x534] ss:$44 sps:$4 sm:$0xff]  }
 0x185   :  { %4982 = vmatprep.mubr.bf16.mxu1 %v12067_v52  ;;  %5025 = vmatprep.mubr.bf16.mxu0 %v11958_v18  ;;  %v10023_v18 = vld [vmem:[%s14527_s2 + $0x114] ss:$44 sps:$4 sm:$0xff]  }
 0x186   :  { %v10018_v52 = vld [vmem:[%s14527_s2 + $0x688] ss:$44 sps:$4 sm:$0xff]  }
 0x187   :  { %4953 = vmatpush1.bf16.msra.mxu1 %v10006_v29  ;;  %4996 = vmatpush1.bf16.msra.mxu0 %v10009_v31  ;;  %v10090_v29 = vld [vmem:[%s14527_s2 + $0xaa8] ss:$44 sps:$4 sm:$0xff]   ;;  %v10093_v31 = vld [vmem:[%s14527_s2 + $0x530] ss:$44 sps:$4 sm:$0xff]  }
 0x188   :  { %4954 = vmatprep.subr.bf16.mxu1 %v10014_v32  ;;  %4997 = vmatprep.subr.bf16.mxu0 %v10017_v46  ;;  %v10098_v32 = vld [vmem:[%s14527_s2 + $0x58c] ss:$44 sps:$4 sm:$0xff]   ;;  %v10101_v46 = vld [vmem:[%s14527_s2 + $0x14] ss:$44 sps:$4 sm:$0xff]  }
 0x18b   :  { %4955 = vmatpush1.bf16.msra.mxu1 %v10012_v7  ;;  %4998 = vmatpush1.bf16.msra.mxu0 %v10015_v33  ;;  %v10096_v7 = vld [vmem:[%s14527_s2 + $0x588] ss:$44 sps:$4 sm:$0xff]   ;;  %v10099_v33 = vld [vmem:[%s14527_s2 + $0x10] ss:$44 sps:$4 sm:$0xff]  }
 0x18c   :  { %4956 = vmatprep.subr.bf16.mxu1 %v10020_v34  ;;  %4999 = vmatprep.subr.bf16.mxu0 %v10023_v18  ;;  %v10104_v34 = vld [vmem:[%s14527_s2 + $0x5e4] ss:$44 sps:$4 sm:$0xff]   ;;  %v10107_v18 = vld [vmem:[%s14527_s2 + $0x6c] ss:$44 sps:$4 sm:$0xff]  }
 0x18f   :  { %4957 = vmatpush1.bf16.msra.mxu1 %v10018_v52  ;;  %5000 = vmatpush1.bf16.msra.mxu0 %v10021_v35  ;;  %v12570_v52 = vld [vmem:[%s14525_s0 + $0x8] ss:$16 sps:$4 sm:$0xff]   ;;  %v12576_v35 = vld [vmem:[%s14525_s0] ss:$16 sps:$4 sm:$0xff]  }
 0x190   :  { %4958 = vmatprep.subr.bf16.mxu1 %v10026_v36  ;;  %5001 = vmatprep.subr.bf16.mxu0 %v10029_v37  ;;  %v10102_v36 = vld [vmem:[%s14527_s2 + $0x5e0] ss:$44 sps:$4 sm:$0xff]   ;;  %v10105_v37 = vld [vmem:[%s14527_s2 + $0x68] ss:$44 sps:$4 sm:$0xff]  }
 0x193   :  { %4959 = vmatpush1.bf16.msra.mxu1 %v10024_v44  ;;  %5002 = vmatpush1.bf16.msra.mxu0 %v10027_v45  ;;  %v10110_v44 = vld [vmem:[%s14527_s2 + $0x63c] ss:$44 sps:$4 sm:$0xff]   ;;  %v10113_v45 = vld [vmem:[%s14527_s2 + $0xc4] ss:$44 sps:$4 sm:$0xff]  }
 0x194   :  { %4960 = vmatprep.subr.bf16.mxu1 %v10032_v50  ;;  %5003 = vmatprep.subr.bf16.mxu0 %v10035_v51  ;;  %v12594_v50 = vld [vmem:[%s14525_s0 + $0xc] ss:$16 sps:$4 sm:$0xff]   ;;  %v12600_v51 = vld [vmem:[%s14525_s0 + $0x4] ss:$16 sps:$4 sm:$0xff]  }
 0x197   :  { %4961 = vmatpush1.bf16.msra.mxu1 %v10030_v53  ;;  %5004 = vmatpush1.bf16.msra.mxu0 %v10033_v54  ;;  %v10108_v53 = vld [vmem:[%s14527_s2 + $0x638] ss:$44 sps:$4 sm:$0xff]   ;;  %v10111_v54 = vld [vmem:[%s14527_s2 + $0xc0] ss:$44 sps:$4 sm:$0xff]  }
 0x198   :  { %4962 = vmatprep.subr.bf16.mxu1 %v10038_v55  ;;  %5005 = vmatprep.subr.bf16.mxu0 %v10041_v56  ;;  %v10116_v55 = vld [vmem:[%s14527_s2 + $0x694] ss:$44 sps:$4 sm:$0xff]   ;;  %v10119_v56 = vld [vmem:[%s14527_s2 + $0x11c] ss:$44 sps:$4 sm:$0xff]  }
 0x19b   :  { %4963 = vmatpush1.bf16.msra.mxu1 %v10036_v57  ;;  %5006 = vmatpush1.bf16.msra.mxu0 %v10039_v58  ;;  %v10114_v57 = vld [vmem:[%s14527_s2 + $0x690] ss:$44 sps:$4 sm:$0xff]   ;;  %v10117_v58 = vld [vmem:[%s14527_s2 + $0x118] ss:$44 sps:$4 sm:$0xff]  }
 0x19c   :  { %4964 = vmatprep.subr.bf16.mxu1 %v10044_v59  ;;  %5007 = vmatprep.subr.bf16.mxu0 %v10047_v60  ;;  %v10122_v59 = vld [vmem:[%s14527_s2 + $0x6ec] ss:$44 sps:$4 sm:$0xff]   ;;  %v10125_v60 = vld [vmem:[%s14527_s2 + $0x174] ss:$44 sps:$4 sm:$0xff]  }
 0x19f   :  { %4965 = vmatpush1.bf16.msra.mxu1 %v10042_v61  ;;  %5008 = vmatpush1.bf16.msra.mxu0 %v10045_v62  ;;  %v10120_v61 = vld [vmem:[%s14527_s2 + $0x6e8] ss:$44 sps:$4 sm:$0xff]   ;;  %v10123_v62 = vld [vmem:[%s14527_s2 + $0x170] ss:$44 sps:$4 sm:$0xff]  }
 0x1a0   :  { %4966 = vmatprep.subr.bf16.mxu1 %v10050_v63  ;;  %5009 = vmatprep.subr.bf16.mxu0 %v10053_v0  ;;  %v10128_v63 = vld [vmem:[%s14527_s2 + $0x744] ss:$44 sps:$4 sm:$0xff]   ;;  %v10131_v0 = vld [vmem:[%s14527_s2 + $0x1cc] ss:$44 sps:$4 sm:$0xff]  }
 0x1a3   :  { %4967 = vmatpush1.bf16.msra.mxu1 %v10048_v1  ;;  %5010 = vmatpush1.bf16.msra.mxu0 %v10051_v2  ;;  %v10126_v1 = vld [vmem:[%s14527_s2 + $0x740] ss:$44 sps:$4 sm:$0xff]   ;;  %v10129_v2 = vld [vmem:[%s14527_s2 + $0x1c8] ss:$44 sps:$4 sm:$0xff]  }
 0x1a4   :  { %4968 = vmatprep.subr.bf16.mxu1 %v10056_v3  ;;  %5011 = vmatprep.subr.bf16.mxu0 %v10059_v4  ;;  %v10134_v3 = vld [vmem:[%s14527_s2 + $0x79c] ss:$44 sps:$4 sm:$0xff]   ;;  %v10137_v4 = vld [vmem:[%s14527_s2 + $0x224] ss:$44 sps:$4 sm:$0xff]  }
 0x1a7   :  { %4969 = vmatpush1.bf16.msra.mxu1 %v10054_v6  ;;  %5012 = vmatpush1.bf16.msra.mxu0 %v10057_v8 }
 0x1a8   :  { %4970 = vmatprep.subr.bf16.mxu1 %v10062_v9  ;;  %5013 = vmatprep.subr.bf16.mxu0 %v10065_v10 }
 0x1ab   :  { %4971 = vmatpush1.bf16.msra.mxu1 %v10060_v11  ;;  %5014 = vmatpush1.bf16.msra.mxu0 %v10063_v12 }
 0x1ac   :  { %4972 = vmatprep.subr.bf16.mxu1 %v10068_v13  ;;  %5015 = vmatprep.subr.bf16.mxu0 %v10071_v14  ;;  %v10132_v13 = vld [vmem:[%s14527_s2 + $0x798] ss:$44 sps:$4 sm:$0xff]   ;;  %v10135_v14 = vld [vmem:[%s14527_s2 + $0x220] ss:$44 sps:$4 sm:$0xff]  }
 0x1af   :  { %4973 = vmatpush1.bf16.msra.mxu1 %v10066_v15  ;;  %5016 = vmatpush1.bf16.msra.mxu0 %v10069_v16 }
 0x1b0   :  { %4974 = vmatprep.subr.bf16.mxu1 %v10074_v17  ;;  %5017 = vmatprep.subr.bf16.mxu0 %v10077_v5  ;;  %v10140_v17 = vld [vmem:[%s14527_s2 + $0x7f4] ss:$44 sps:$4 sm:$0xff]   ;;  %v10143_v5 = vld [vmem:[%s14527_s2 + $0x27c] ss:$44 sps:$4 sm:$0xff]  }
 0x1b3   :  { %4975 = vmatpush1.bf16.msra.mxu1 %v10072_v47  ;;  %5018 = vmatpush1.bf16.msra.mxu0 %v10075_v19  ;;  %v10138_v47 = vld [vmem:[%s14527_s2 + $0x7f0] ss:$44 sps:$4 sm:$0xff]   ;;  %v10141_v19 = vld [vmem:[%s14527_s2 + $0x278] ss:$44 sps:$4 sm:$0xff]  }
 0x1b4   :  { %4976 = vmatprep.subr.bf16.mxu1 %v10080_v20  ;;  %5019 = vmatprep.subr.bf16.mxu0 %v10083_v30  ;;  %v10146_v20 = vld [vmem:[%s14527_s2 + $0x84c] ss:$44 sps:$4 sm:$0xff]   ;;  %v10149_v30 = vld [vmem:[%s14527_s2 + $0x2d4] ss:$44 sps:$4 sm:$0xff]  }
 0x1b7   :  { %4977 = vmatpush1.bf16.msra.mxu1 %v10078_v21  ;;  %5020 = vmatpush1.bf16.msra.mxu0 %v10081_v22  ;;  %v10144_v21 = vld [vmem:[%s14527_s2 + $0x848] ss:$44 sps:$4 sm:$0xff]   ;;  %v10147_v22 = vld [vmem:[%s14527_s2 + $0x2d0] ss:$44 sps:$4 sm:$0xff]  }
 0x1b8   :  { %4978 = vmatprep.subr.bf16.mxu1 %v10086_v23  ;;  %5021 = vmatprep.subr.bf16.mxu0 %v10089_v24  ;;  %v10152_v23 = vld [vmem:[%s14527_s2 + $0x8a4] ss:$44 sps:$4 sm:$0xff]   ;;  %v10155_v24 = vld [vmem:[%s14527_s2 + $0x32c] ss:$44 sps:$4 sm:$0xff]  }
 0x1bb   :  { %4979 = vmatpush1.bf16.msra.mxu1 %v10084_v25  ;;  %5022 = vmatpush1.bf16.msra.mxu0 %v10087_v26  ;;  %v10150_v25 = vld [vmem:[%s14527_s2 + $0x8a0] ss:$44 sps:$4 sm:$0xff]   ;;  %v10153_v26 = vld [vmem:[%s14527_s2 + $0x328] ss:$44 sps:$4 sm:$0xff]  }
 0x1bc   :  { %4980 = vmatprep.subr.bf16.mxu1 %v10092_v27  ;;  %5023 = vmatprep.subr.bf16.mxu0 %v10095_v28  ;;  %v10158_v27 = vld [vmem:[%s14527_s2 + $0x8fc] ss:$44 sps:$4 sm:$0xff]   ;;  %v10161_v28 = vld [vmem:[%s14527_s2 + $0x384] ss:$44 sps:$4 sm:$0xff]  }
 0x1bf   :  { %4981 = vmatpush1.bf16.msra.mxu1 %v10090_v29  ;;  %5024 = vmatpush1.bf16.msra.mxu0 %v10093_v31  ;;  %v10156_v29 = vld [vmem:[%s14527_s2 + $0x8f8] ss:$44 sps:$4 sm:$0xff]   ;;  %v10159_v31 = vld [vmem:[%s14527_s2 + $0x380] ss:$44 sps:$4 sm:$0xff]  }
 0x1c0   :  { %5036 = vmatprep.subr.bf16.mxu0 %v10098_v32  ;;  %5079 = vmatprep.subr.bf16.mxu1 %v10101_v46  ;;  %v10164_v32 = vld [vmem:[%s14527_s2 + $0x954] ss:$44 sps:$4 sm:$0xff]   ;;  %v10167_v46 = vld [vmem:[%s14527_s2 + $0x3dc] ss:$44 sps:$4 sm:$0xff]  }
 0x1c2   :  { %4983 = vmatmul.mubr.bf16.vlgmr.msra.gmra.mrb[16].mxu1 %v12570_v52  ;;  %5026 = vmatmul.mubr.bf16.vlgmr.msra.gmra.mrb[12].mxu0 %v12576_v35 }
 0x1c3   :  { %5037 = vmatpush1.bf16.msra.mxu0 %v10096_v7  ;;  %5080 = vmatpush1.bf16.msra.mxu1 %v10099_v33  ;;  %v10162_v7 = vld [vmem:[%s14527_s2 + $0x950] ss:$44 sps:$4 sm:$0xff]   ;;  %v10165_v33 = vld [vmem:[%s14527_s2 + $0x3d8] ss:$44 sps:$4 sm:$0xff]  }
 0x1c4   :  { %5038 = vmatprep.subr.bf16.mxu0 %v10104_v34  ;;  %5081 = vmatprep.subr.bf16.mxu1 %v10107_v18  ;;  %v10170_v34 = vld [vmem:[%s14527_s2 + $0x9ac] ss:$44 sps:$4 sm:$0xff]   ;;  %v10173_v18 = vld [vmem:[%s14527_s2 + $0x434] ss:$44 sps:$4 sm:$0xff]  }
 0x1c5   :  { %5068 = vmatprep.mubr.bf16.mxu0 %v12594_v50  ;;  %5111 = vmatprep.mubr.bf16.mxu1 %v12600_v51 }
 0x1c7   :  { %5039 = vmatpush1.bf16.msra.mxu0 %v10102_v36  ;;  %5082 = vmatpush1.bf16.msra.mxu1 %v10105_v37  ;;  %v10168_v36 = vld [vmem:[%s14527_s2 + $0x9a8] ss:$44 sps:$4 sm:$0xff]   ;;  %v10171_v37 = vld [vmem:[%s14527_s2 + $0x430] ss:$44 sps:$4 sm:$0xff]  }
 0x1c8   :  { %5040 = vmatprep.subr.bf16.mxu0 %v10110_v44  ;;  %5083 = vmatprep.subr.bf16.mxu1 %v10113_v45  ;;  %v10176_v44 = vld [vmem:[%s14527_s2 + $0xa04] ss:$44 sps:$4 sm:$0xff]   ;;  %v10179_v45 = vld [vmem:[%s14527_s2 + $0x48c] ss:$44 sps:$4 sm:$0xff]  }
 0x1cb   :  { %5041 = vmatpush1.bf16.msra.mxu0 %v10108_v53  ;;  %5084 = vmatpush1.bf16.msra.mxu1 %v10111_v54  ;;  %v10174_v53 = vld [vmem:[%s14527_s2 + $0xa00] ss:$44 sps:$4 sm:$0xff]   ;;  %v10177_v54 = vld [vmem:[%s14527_s2 + $0x488] ss:$44 sps:$4 sm:$0xff]  }
 0x1cc   :  { %5042 = vmatprep.subr.bf16.mxu0 %v10116_v55  ;;  %5085 = vmatprep.subr.bf16.mxu1 %v10119_v56  ;;  %v10182_v55 = vld [vmem:[%s14527_s2 + $0xa5c] ss:$44 sps:$4 sm:$0xff]   ;;  %v10185_v56 = vld [vmem:[%s14527_s2 + $0x4e4] ss:$44 sps:$4 sm:$0xff]  }
 0x1cf   :  { %5043 = vmatpush1.bf16.msra.mxu0 %v10114_v57  ;;  %5086 = vmatpush1.bf16.msra.mxu1 %v10117_v58 }
 0x1d0   :  { %5044 = vmatprep.subr.bf16.mxu0 %v10122_v59  ;;  %5087 = vmatprep.subr.bf16.mxu1 %v10125_v60 }
 0x1d3   :  { %5045 = vmatpush1.bf16.msra.mxu0 %v10120_v61  ;;  %5088 = vmatpush1.bf16.msra.mxu1 %v10123_v62  ;;  %v10180_v61 = vld [vmem:[%s14527_s2 + $0xa58] ss:$44 sps:$4 sm:$0xff]   ;;  %v10183_v62 = vld [vmem:[%s14527_s2 + $0x4e0] ss:$44 sps:$4 sm:$0xff]  }
 0x1d4   :  { %5046 = vmatprep.subr.bf16.mxu0 %v10128_v63  ;;  %5089 = vmatprep.subr.bf16.mxu1 %v10131_v0  ;;  %v10188_v0 = vld [vmem:[%s14527_s2 + $0xab4] ss:$44 sps:$4 sm:$0xff]  }
 0x1d5   :  { %v12651_v6 = vpop.f32.mrb[4].mxu0  ;;  %v12653_v8 = vpop.f32.mrb[4].mxu1 }
 0x1d6   :  { %v12655_v9 = vpop.f32.mrb[5].mxu0  ;;  %v12657_v10 = vpop.f32.mrb[5].mxu1 }
 0x1d7   :  { %v12659_v11 = vpop.f32.mrb[6].mxu0  ;;  %v12661_v12 = vpop.f32.mrb[6].mxu1  ;;  %5047 = vmatpush1.bf16.msra.mxu0 %v10126_v1  ;;  %5090 = vmatpush1.bf16.msra.mxu1 %v10129_v2  ;;  %v10191_v1 = vld [vmem:[%s14527_s2 + $0x53c] ss:$44 sps:$4 sm:$0xff]  }
 0x1d8   :  { %v12669_v15 = vpop.f32.mrb[7].mxu0  ;;  %v12671_v16 = vpop.f32.mrb[7].mxu1  ;;  %5048 = vmatprep.subr.bf16.mxu0 %v10134_v3  ;;  %5091 = vmatprep.subr.bf16.mxu1 %v10137_v4  ;;  %v10186_v3 = vld [vmem:[%s14527_s2 + $0xab0] ss:$44 sps:$4 sm:$0xff]   ;;  %v10189_v4 = vld [vmem:[%s14527_s2 + $0x538] ss:$44 sps:$4 sm:$0xff]  }
 0x1db   :  { %5049 = vmatpush1.bf16.msra.mxu0 %v10132_v13  ;;  %5092 = vmatpush1.bf16.msra.mxu1 %v10135_v14  ;;  %v10194_v13 = vld [vmem:[%s14527_s2 + $0x594] ss:$44 sps:$4 sm:$0xff]   ;;  %v10197_v14 = vld [vmem:[%s14527_s2 + $0x1c] ss:$44 sps:$4 sm:$0xff]  }
 0x1dc   :  { %5050 = vmatprep.subr.bf16.mxu0 %v10140_v17  ;;  %5093 = vmatprep.subr.bf16.mxu1 %v10143_v5  ;;  %v10192_v17 = vld [vmem:[%s14527_s2 + $0x590] ss:$44 sps:$4 sm:$0xff]   ;;  %v10195_v5 = vld [vmem:[%s14527_s2 + $0x18] ss:$44 sps:$4 sm:$0xff]  }
 0x1df   :  { %5051 = vmatpush1.bf16.msra.mxu0 %v10138_v47  ;;  %5094 = vmatpush1.bf16.msra.mxu1 %v10141_v19  ;;  %v10200_v47 = vld [vmem:[%s14527_s2 + $0x5ec] ss:$44 sps:$4 sm:$0xff]   ;;  %v10203_v19 = vld [vmem:[%s14527_s2 + $0x74] ss:$44 sps:$4 sm:$0xff]  }
 0x1e0   :  { %5052 = vmatprep.subr.bf16.mxu0 %v10146_v20  ;;  %5095 = vmatprep.subr.bf16.mxu1 %v10149_v30  ;;  %v10198_v20 = vld [vmem:[%s14527_s2 + $0x5e8] ss:$44 sps:$4 sm:$0xff]   ;;  %v10201_v30 = vld [vmem:[%s14527_s2 + $0x70] ss:$44 sps:$4 sm:$0xff]  }
 0x1e3   :  { %5053 = vmatpush1.bf16.msra.mxu0 %v10144_v21  ;;  %5096 = vmatpush1.bf16.msra.mxu1 %v10147_v22  ;;  %v10206_v21 = vld [vmem:[%s14527_s2 + $0x644] ss:$44 sps:$4 sm:$0xff]   ;;  %v10207_v22 = vld [vmem:[%s14527_s2 + $0xc8] ss:$44 sps:$4 sm:$0xff]  }
 0x1e4   :  { %5054 = vmatprep.subr.bf16.mxu0 %v10152_v23  ;;  %5097 = vmatprep.subr.bf16.mxu1 %v10155_v24  ;;  %v10212_v23 = vld [vmem:[%s14527_s2 + $0x69c] ss:$44 sps:$4 sm:$0xff]   ;;  %v10213_v24 = vld [vmem:[%s14527_s2 + $0x120] ss:$44 sps:$4 sm:$0xff]  }
 0x1e7   :  { %5055 = vmatpush1.bf16.msra.mxu0 %v10150_v25  ;;  %5098 = vmatpush1.bf16.msra.mxu1 %v10153_v26  ;;  %v10218_v25 = vld [vmem:[%s14527_s2 + $0x6f4] ss:$44 sps:$4 sm:$0xff]   ;;  %v10221_v26 = vld [vmem:[%s14527_s2 + $0x17c] ss:$44 sps:$4 sm:$0xff]  }
 0x1e8   :  { %5056 = vmatprep.subr.bf16.mxu0 %v10158_v27  ;;  %5099 = vmatprep.subr.bf16.mxu1 %v10161_v28  ;;  %v10216_v27 = vld [vmem:[%s14527_s2 + $0x6f0] ss:$44 sps:$4 sm:$0xff]   ;;  %v10219_v28 = vld [vmem:[%s14527_s2 + $0x178] ss:$44 sps:$4 sm:$0xff]  }
 0x1eb   :  { %5057 = vmatpush1.bf16.msra.mxu0 %v10156_v29  ;;  %5100 = vmatpush1.bf16.msra.mxu1 %v10159_v31  ;;  %v10224_v29 = vld [vmem:[%s14527_s2 + $0x74c] ss:$44 sps:$4 sm:$0xff]   ;;  %v10227_v31 = vld [vmem:[%s14527_s2 + $0x1d4] ss:$44 sps:$4 sm:$0xff]  }
 0x1ec   :  { %5058 = vmatprep.subr.bf16.mxu0 %v10164_v32  ;;  %5101 = vmatprep.subr.bf16.mxu1 %v10167_v46  ;;  %v10222_v32 = vld [vmem:[%s14527_s2 + $0x748] ss:$44 sps:$4 sm:$0xff]   ;;  %v10225_v46 = vld [vmem:[%s14527_s2 + $0x1d0] ss:$44 sps:$4 sm:$0xff]  }
 0x1ef   :  { %5059 = vmatpush1.bf16.msra.mxu0 %v10162_v7  ;;  %5102 = vmatpush1.bf16.msra.mxu1 %v10165_v33  ;;  %v10230_v7 = vld [vmem:[%s14527_s2 + $0x7a4] ss:$44 sps:$4 sm:$0xff]   ;;  %v10233_v33 = vld [vmem:[%s14527_s2 + $0x22c] ss:$44 sps:$4 sm:$0xff]  }
 0x1f0   :  { %5060 = vmatprep.subr.bf16.mxu0 %v10170_v34  ;;  %5103 = vmatprep.subr.bf16.mxu1 %v10173_v18  ;;  %v10228_v18 = vld [vmem:[%s14527_s2 + $0x7a0] ss:$44 sps:$4 sm:$0xff]  }
 0x1f3   :  { %5061 = vmatpush1.bf16.msra.mxu0 %v10168_v36  ;;  %5104 = vmatpush1.bf16.msra.mxu1 %v10171_v37 }
 0x1f4   :  { %5062 = vmatprep.subr.bf16.mxu0 %v10176_v44  ;;  %5105 = vmatprep.subr.bf16.mxu1 %v10179_v45  ;;  %v10231_v45 = vld [vmem:[%s14527_s2 + $0x228] ss:$44 sps:$4 sm:$0xff]  }
 0x1f5   :  { %v9278_v57 = vpop.f32.mrb[8].mxu1 }
 0x1f6   :  { %v9279_v58 = vpop.f32.mrb[9].mxu1 }
 0x1f7   :  { %v12763_v59 = vadd.f32 %v9279_v58, %v9278_v57  ;;  %v9281_v60 = vpop.f32.mrb[10].mxu1  ;;  %5063 = vmatpush1.bf16.msra.mxu0 %v10174_v53  ;;  %5106 = vmatpush1.bf16.msra.mxu1 %v10177_v54  ;;  %v10236_v53 = vld [vmem:[%s14527_s2 + $0x7fc] ss:$44 sps:$4 sm:$0xff]  }
 0x1f8   :  { %v9282_v63 = vpop.f32.mrb[11].mxu1  ;;  %5064 = vmatprep.subr.bf16.mxu0 %v10182_v55  ;;  %5107 = vmatprep.subr.bf16.mxu1 %v10185_v56  ;;  %v10239_v55 = vld [vmem:[%s14527_s2 + $0x284] ss:$44 sps:$4 sm:$0xff]  }
 0x1f9   :  { %v12777_v2 = vadd.f32 %v9282_v63, %v9281_v60  ;;  %v10234_v60 = vld [vmem:[%s14527_s2 + $0x7f8] ss:$44 sps:$4 sm:$0xff]   ;;  %v10240_v63 = vld [vmem:[%s14527_s2 + $0x850] ss:$44 sps:$4 sm:$0xff]  }
 0x1fb   :  { %5065 = vmatpush1.bf16.msra.mxu0 %v10180_v61  ;;  %5108 = vmatpush1.bf16.msra.mxu1 %v10183_v62  ;;  %v10237_v61 = vld [vmem:[%s14527_s2 + $0x280] ss:$44 sps:$4 sm:$0xff]   ;;  %v10245_v62 = vld [vmem:[%s14527_s2 + $0x2dc] ss:$44 sps:$4 sm:$0xff]  }
 0x1fc   :  { %5066 = vmatprep.subr.bf16.mxu0 %v10188_v0  ;;  %5109 = vmatprep.subr.bf16.mxu1 %v10191_v1  ;;  %v10243_v0 = vld [vmem:[%s14527_s2 + $0x2d8] ss:$44 sps:$4 sm:$0xff]  }
 0x1fd   :  { %v10248_v1 = vld [vmem:[%s14527_s2 + $0x8ac] ss:$44 sps:$4 sm:$0xff]  }
 0x1ff   :  { %5067 = vmatpush1.bf16.msra.mxu0 %v10186_v3  ;;  %5110 = vmatpush1.bf16.msra.mxu1 %v10189_v4  ;;  %v10246_v3 = vld [vmem:[%s14527_s2 + $0x8a8] ss:$44 sps:$4 sm:$0xff]   ;;  %v10249_v4 = vld [vmem:[%s14527_s2 + $0x330] ss:$44 sps:$4 sm:$0xff]  }
 0x200   :  { %5122 = vmatprep.subr.bf16.mxu1 %v10194_v13  ;;  %5165 = vmatprep.subr.bf16.mxu0 %v10197_v14  ;;  %v10254_v13 = vld [vmem:[%s14527_s2 + $0x904] ss:$44 sps:$4 sm:$0xff]   ;;  %v10257_v14 = vld [vmem:[%s14527_s2 + $0x38c] ss:$44 sps:$4 sm:$0xff]  }
 0x202   :  { %5069 = vmatmul.mubr.bf16.vlgmr.msra.gmra.mrb[12].mxu0 %v12570_v52  ;;  %5112 = vmatmul.mubr.bf16.vlgmr.msra.gmra.mrb[20].mxu1 %v12576_v35  ;;  %v10209_v52 = vld [vmem:[%s14527_s2 + $0xcc] ss:$44 sps:$4 sm:$0xff]  }
 0x203   :  { %5123 = vmatpush1.bf16.msra.mxu1 %v10192_v17  ;;  %5166 = vmatpush1.bf16.msra.mxu0 %v10195_v5  ;;  %v10204_v35 = vld [vmem:[%s14527_s2 + $0x640] ss:$44 sps:$4 sm:$0xff]   ;;  %v10255_v5 = vld [vmem:[%s14527_s2 + $0x388] ss:$44 sps:$4 sm:$0xff]  }
 0x204   :  { %5124 = vmatprep.subr.bf16.mxu1 %v10200_v47  ;;  %5167 = vmatprep.subr.bf16.mxu0 %v10203_v19  ;;  %v10252_v17 = vld [vmem:[%s14527_s2 + $0x900] ss:$44 sps:$4 sm:$0xff]   ;;  %v10260_v47 = vld [vmem:[%s14527_s2 + $0x95c] ss:$44 sps:$4 sm:$0xff]   ;;  %v10263_v19 = vld [vmem:[%s14527_s2 + $0x3e4] ss:$44 sps:$4 sm:$0xff]  }
 0x205   :  { %5154 = vmatprep.mubr.bf16.mxu1 %v12594_v50  ;;  %5197 = vmatprep.mubr.bf16.mxu0 %v12600_v51  ;;  %v10215_v50 = vld [vmem:[%s14527_s2 + $0x124] ss:$44 sps:$4 sm:$0xff]  }
 0x206   :  { %v10210_v51 = vld [vmem:[%s14527_s2 + $0x698] ss:$44 sps:$4 sm:$0xff]  }
 0x207   :  { %5125 = vmatpush1.bf16.msra.mxu1 %v10198_v20  ;;  %5168 = vmatpush1.bf16.msra.mxu0 %v10201_v30  ;;  %v10258_v20 = vld [vmem:[%s14527_s2 + $0x958] ss:$44 sps:$4 sm:$0xff]   ;;  %v10261_v30 = vld [vmem:[%s14527_s2 + $0x3e0] ss:$44 sps:$4 sm:$0xff]  }
 0x208   :  { %5126 = vmatprep.subr.bf16.mxu1 %v10206_v21  ;;  %5169 = vmatprep.subr.bf16.mxu0 %v10209_v52  ;;  %v10266_v21 = vld [vmem:[%s14527_s2 + $0x9b4] ss:$44 sps:$4 sm:$0xff]   ;;  %v10269_v52 = vld [vmem:[%s14527_s2 + $0x43c] ss:$44 sps:$4 sm:$0xff]  }
 0x20b   :  { %5127 = vmatpush1.bf16.msra.mxu1 %v10204_v35  ;;  %5170 = vmatpush1.bf16.msra.mxu0 %v10207_v22  ;;  %v10264_v35 = vld [vmem:[%s14527_s2 + $0x9b0] ss:$44 sps:$4 sm:$0xff]   ;;  %v10267_v22 = vld [vmem:[%s14527_s2 + $0x438] ss:$44 sps:$4 sm:$0xff]  }
 0x20c   :  { %5128 = vmatprep.subr.bf16.mxu1 %v10212_v23  ;;  %5171 = vmatprep.subr.bf16.mxu0 %v10215_v50  ;;  %v10272_v23 = vld [vmem:[%s14527_s2 + $0xa0c] ss:$44 sps:$4 sm:$0xff]   ;;  %v10275_v50 = vld [vmem:[%s14527_s2 + $0x494] ss:$44 sps:$4 sm:$0xff]  }
 0x20f   :  { %5129 = vmatpush1.bf16.msra.mxu1 %v10210_v51  ;;  %5172 = vmatpush1.bf16.msra.mxu0 %v10213_v24  ;;  %v10270_v51 = vld [vmem:[%s14527_s2 + $0xa08] ss:$44 sps:$4 sm:$0xff]   ;;  %v10273_v24 = vld [vmem:[%s14527_s2 + $0x490] ss:$44 sps:$4 sm:$0xff]  }
 0x210   :  { %5130 = vmatprep.subr.bf16.mxu1 %v10218_v25  ;;  %5173 = vmatprep.subr.bf16.mxu0 %v10221_v26  ;;  %v10278_v25 = vld [vmem:[%s14527_s2 + $0xa64] ss:$44 sps:$4 sm:$0xff]   ;;  %v10281_v26 = vld [vmem:[%s14527_s2 + $0x4ec] ss:$44 sps:$4 sm:$0xff]  }
 0x213   :  { %5131 = vmatpush1.bf16.msra.mxu1 %v10216_v27  ;;  %5174 = vmatpush1.bf16.msra.mxu0 %v10219_v28  ;;  %v10276_v27 = vld [vmem:[%s14527_s2 + $0xa60] ss:$44 sps:$4 sm:$0xff]   ;;  %v10279_v28 = vld [vmem:[%s14527_s2 + $0x4e8] ss:$44 sps:$4 sm:$0xff]  }
 0x214   :  { %5132 = vmatprep.subr.bf16.mxu1 %v10224_v29  ;;  %5175 = vmatprep.subr.bf16.mxu0 %v10227_v31  ;;  %v10284_v29 = vld [vmem:[%s14527_s2 + $0xabc] ss:$44 sps:$4 sm:$0xff]   ;;  %v10287_v31 = vld [vmem:[%s14527_s2 + $0x544] ss:$44 sps:$4 sm:$0xff]  }
 0x215   :  { %v9300_v34 = vpop.f32.mrb[12].mxu1 }
 0x216   :  { %v9301_v36 = vpop.f32.mrb[13].mxu1 }
 0x217   :  { %v9302_v37 = vadd.f32 %v9301_v36, %v9300_v34  ;;  %v9303_v44 = vpop.f32.mrb[14].mxu1  ;;  %5133 = vmatpush1.bf16.msra.mxu1 %v10222_v32  ;;  %5176 = vmatpush1.bf16.msra.mxu0 %v10225_v46  ;;  %v10282_v32 = vld [vmem:[%s14527_s2 + $0xab8] ss:$44 sps:$4 sm:$0xff]   ;;  %v10285_v46 = vld [vmem:[%s14527_s2 + $0x540] ss:$44 sps:$4 sm:$0xff]  }
 0x218   :  { %v9304_v54 = vpop.f32.mrb[15].mxu1  ;;  %5134 = vmatprep.subr.bf16.mxu1 %v10230_v7  ;;  %5177 = vmatprep.subr.bf16.mxu0 %v10233_v33  ;;  %v10290_v7 = vld [vmem:[%s14527_s2 + $0x59c] ss:$44 sps:$4 sm:$0xff]   ;;  %v10293_v33 = vld [vmem:[%s14527_s2 + $0x24] ss:$44 sps:$4 sm:$0xff]  }
 0x219   :  { %v12880_v56 = vadd.f32 %v9302_v37, %v12763_v59  ;;  %v9305_v57 = vadd.f32 %v9304_v54, %v9303_v44  ;;  %v10242_v59 = vld [vmem:[%s14527_s2 + $0x854] ss:$44 sps:$4 sm:$0xff]   ;;  %v10288_v34 = vld [vmem:[%s14527_s2 + $0x598] ss:$44 sps:$4 sm:$0xff]   ;;  %v10299_v37 = vld [vmem:[%s14527_s2 + $0x7c] ss:$44 sps:$4 sm:$0xff]  }
 0x21a   :  { %v10296_v36 = vld [vmem:[%s14527_s2 + $0x5f4] ss:$44 sps:$4 sm:$0xff]   ;;  %v13008_v44 = vld [vmem:[%s14525_s0 + $0x8] ss:$16 sps:$4 sm:$0xff]  }
 0x21b   :  { %v12883_v58 = vadd.f32 %v9305_v57, %v12777_v2  ;;  %5135 = vmatpush1.bf16.msra.mxu1 %v10228_v18  ;;  %5178 = vmatpush1.bf16.msra.mxu0 %v10231_v45  ;;  %v10251_v2 = vld [vmem:[%s14527_s2 + $0x334] ss:$44 sps:$4 sm:$0xff]   ;;  %v10297_v54 = vld [vmem:[%s14527_s2 + $0x78] ss:$44 sps:$4 sm:$0xff]  }
 0x21c   :  { %5136 = vmatprep.subr.bf16.mxu1 %v10236_v53  ;;  %5179 = vmatprep.subr.bf16.mxu0 %v10239_v55  ;;  %v10291_v18 = vld [vmem:[%s14527_s2 + $0x20] ss:$44 sps:$4 sm:$0xff]   ;;  %v10294_v53 = vld [vmem:[%s14527_s2 + $0x5f0] ss:$44 sps:$4 sm:$0xff]  }
 0x21d   :  { %v13014_v45 = vld [vmem:[%s14525_s0] ss:$16 sps:$4 sm:$0xff]   ;;  %v10302_v55 = vld [vmem:[%s14527_s2 + $0x64c] ss:$44 sps:$4 sm:$0xff]  }
 0x21e   :  { %v10305_v57 = vld [vmem:[%s14527_s2 + $0xd4] ss:$44 sps:$4 sm:$0xff]  }
 0x21f   :  { %5137 = vmatpush1.bf16.msra.mxu1 %v10234_v60  ;;  %5180 = vmatpush1.bf16.msra.mxu0 %v10237_v61  ;;  %v10300_v60 = vld [vmem:[%s14527_s2 + $0x648] ss:$44 sps:$4 sm:$0xff]   ;;  %v10303_v61 = vld [vmem:[%s14527_s2 + $0xd0] ss:$44 sps:$4 sm:$0xff]  }
 0x220   :  { %5138 = vmatprep.subr.bf16.mxu1 %v10242_v59  ;;  %5181 = vmatprep.subr.bf16.mxu0 %v10245_v62  ;;  %v13038_v59 = vld [vmem:[%s14525_s0 + $0xc] ss:$16 sps:$4 sm:$0xff]   ;;  %v13044_v62 = vld [vmem:[%s14525_s0 + $0x4] ss:$16 sps:$4 sm:$0xff]  }
 0x223   :  { %5139 = vmatpush1.bf16.msra.mxu1 %v10240_v63  ;;  %5182 = vmatpush1.bf16.msra.mxu0 %v10243_v0  ;;  %v10308_v63 = vld [vmem:[%s14527_s2 + $0x6a4] ss:$44 sps:$4 sm:$0xff]   ;;  %v10311_v0 = vld [vmem:[%s14527_s2 + $0x12c] ss:$44 sps:$4 sm:$0xff]  }
 0x224   :  { %5140 = vmatprep.subr.bf16.mxu1 %v10248_v1  ;;  %5183 = vmatprep.subr.bf16.mxu0 %v10251_v2  ;;  %v10306_v1 = vld [vmem:[%s14527_s2 + $0x6a0] ss:$44 sps:$4 sm:$0xff]   ;;  %v10309_v2 = vld [vmem:[%s14527_s2 + $0x128] ss:$44 sps:$4 sm:$0xff]  }
 0x227   :  { %5141 = vmatpush1.bf16.msra.mxu1 %v10246_v3  ;;  %5184 = vmatpush1.bf16.msra.mxu0 %v10249_v4  ;;  %v10314_v3 = vld [vmem:[%s14527_s2 + $0x6fc] ss:$44 sps:$4 sm:$0xff]   ;;  %v10317_v4 = vld [vmem:[%s14527_s2 + $0x184] ss:$44 sps:$4 sm:$0xff]  }
 0x228   :  { %5142 = vmatprep.subr.bf16.mxu1 %v10254_v13  ;;  %5185 = vmatprep.subr.bf16.mxu0 %v10257_v14  ;;  %v10312_v13 = vld [vmem:[%s14527_s2 + $0x6f8] ss:$44 sps:$4 sm:$0xff]   ;;  %v10315_v14 = vld [vmem:[%s14527_s2 + $0x180] ss:$44 sps:$4 sm:$0xff]  }
 0x22b   :  { %5143 = vmatpush1.bf16.msra.mxu1 %v10252_v17  ;;  %5186 = vmatpush1.bf16.msra.mxu0 %v10255_v5  ;;  %v10320_v17 = vld [vmem:[%s14527_s2 + $0x754] ss:$44 sps:$4 sm:$0xff]   ;;  %v10323_v5 = vld [vmem:[%s14527_s2 + $0x1dc] ss:$44 sps:$4 sm:$0xff]  }
 0x22c   :  { %5144 = vmatprep.subr.bf16.mxu1 %v10260_v47  ;;  %5187 = vmatprep.subr.bf16.mxu0 %v10263_v19  ;;  %v10318_v47 = vld [vmem:[%s14527_s2 + $0x750] ss:$44 sps:$4 sm:$0xff]   ;;  %v10321_v19 = vld [vmem:[%s14527_s2 + $0x1d8] ss:$44 sps:$4 sm:$0xff]  }
 0x22f   :  { %5145 = vmatpush1.bf16.msra.mxu1 %v10258_v20  ;;  %5188 = vmatpush1.bf16.msra.mxu0 %v10261_v30  ;;  %v10326_v20 = vld [vmem:[%s14527_s2 + $0x7ac] ss:$44 sps:$4 sm:$0xff]   ;;  %v10329_v30 = vld [vmem:[%s14527_s2 + $0x234] ss:$44 sps:$4 sm:$0xff]  }
 0x230   :  { %5146 = vmatprep.subr.bf16.mxu1 %v10266_v21  ;;  %5189 = vmatprep.subr.bf16.mxu0 %v10269_v52 }
 0x233   :  { %5147 = vmatpush1.bf16.msra.mxu1 %v10264_v35  ;;  %5190 = vmatpush1.bf16.msra.mxu0 %v10267_v22  ;;  %v10324_v22 = vld [vmem:[%s14527_s2 + $0x7a8] ss:$44 sps:$4 sm:$0xff]  }
 0x234   :  { %5148 = vmatprep.subr.bf16.mxu1 %v10272_v23  ;;  %5191 = vmatprep.subr.bf16.mxu0 %v10275_v50  ;;  %v10327_v23 = vld [vmem:[%s14527_s2 + $0x230] ss:$44 sps:$4 sm:$0xff]  }
 0x237   :  { %5149 = vmatpush1.bf16.msra.mxu1 %v10270_v51  ;;  %5192 = vmatpush1.bf16.msra.mxu0 %v10273_v24  ;;  %v10332_v51 = vld [vmem:[%s14527_s2 + $0x804] ss:$44 sps:$4 sm:$0xff]   ;;  %v10335_v24 = vld [vmem:[%s14527_s2 + $0x28c] ss:$44 sps:$4 sm:$0xff]  }
 0x238   :  { %5150 = vmatprep.subr.bf16.mxu1 %v10278_v25  ;;  %5193 = vmatprep.subr.bf16.mxu0 %v10281_v26  ;;  %v10330_v25 = vld [vmem:[%s14527_s2 + $0x800] ss:$44 sps:$4 sm:$0xff]   ;;  %v10333_v26 = vld [vmem:[%s14527_s2 + $0x288] ss:$44 sps:$4 sm:$0xff]  }
 0x23b   :  { %5151 = vmatpush1.bf16.msra.mxu1 %v10276_v27  ;;  %5194 = vmatpush1.bf16.msra.mxu0 %v10279_v28  ;;  %v10338_v27 = vld [vmem:[%s14527_s2 + $0x85c] ss:$44 sps:$4 sm:$0xff]   ;;  %v10341_v28 = vld [vmem:[%s14527_s2 + $0x2e4] ss:$44 sps:$4 sm:$0xff]  }
 0x23c   :  { %5152 = vmatprep.subr.bf16.mxu1 %v10284_v29  ;;  %5195 = vmatprep.subr.bf16.mxu0 %v10287_v31  ;;  %v10336_v29 = vld [vmem:[%s14527_s2 + $0x858] ss:$44 sps:$4 sm:$0xff]   ;;  %v10339_v31 = vld [vmem:[%s14527_s2 + $0x2e0] ss:$44 sps:$4 sm:$0xff]  }
 0x23f   :  { %5153 = vmatpush1.bf16.msra.mxu1 %v10282_v32  ;;  %5196 = vmatpush1.bf16.msra.mxu0 %v10285_v46  ;;  %v10344_v32 = vld [vmem:[%s14527_s2 + $0x8b4] ss:$44 sps:$4 sm:$0xff]   ;;  %v10347_v46 = vld [vmem:[%s14527_s2 + $0x33c] ss:$44 sps:$4 sm:$0xff]  }
 0x240   :  { %5208 = vmatprep.subr.bf16.mxu0 %v10290_v7  ;;  %5251 = vmatprep.subr.bf16.mxu1 %v10293_v33  ;;  %v10342_v7 = vld [vmem:[%s14527_s2 + $0x8b0] ss:$44 sps:$4 sm:$0xff]   ;;  %v10345_v33 = vld [vmem:[%s14527_s2 + $0x338] ss:$44 sps:$4 sm:$0xff]  }
 0x242   :  { %5155 = vmatmul.mubr.bf16.vlgmr.msra.gmra.mrb[20].mxu1 %v13008_v44  ;;  %5198 = vmatmul.mubr.bf16.vlgmr.msra.gmra.mrb[16].mxu0 %v13014_v45 }
 0x243   :  { %5209 = vmatpush1.bf16.msra.mxu0 %v10288_v34  ;;  %5252 = vmatpush1.bf16.msra.mxu1 %v10291_v18  ;;  %v10350_v34 = vld [vmem:[%s14527_s2 + $0x90c] ss:$44 sps:$4 sm:$0xff]   ;;  %v10353_v18 = vld [vmem:[%s14527_s2 + $0x394] ss:$44 sps:$4 sm:$0xff]  }
 0x244   :  { %5210 = vmatprep.subr.bf16.mxu0 %v10296_v36  ;;  %5253 = vmatprep.subr.bf16.mxu1 %v10299_v37  ;;  %v10348_v36 = vld [vmem:[%s14527_s2 + $0x908] ss:$44 sps:$4 sm:$0xff]   ;;  %v10351_v37 = vld [vmem:[%s14527_s2 + $0x390] ss:$44 sps:$4 sm:$0xff]  }
 0x245   :  { %5240 = vmatprep.mubr.bf16.mxu0 %v13038_v59  ;;  %5283 = vmatprep.mubr.bf16.mxu1 %v13044_v62 }
 0x247   :  { %5211 = vmatpush1.bf16.msra.mxu0 %v10294_v53  ;;  %5254 = vmatpush1.bf16.msra.mxu1 %v10297_v54  ;;  %v10356_v53 = vld [vmem:[%s14527_s2 + $0x964] ss:$44 sps:$4 sm:$0xff]   ;;  %v10359_v54 = vld [vmem:[%s14527_s2 + $0x3ec] ss:$44 sps:$4 sm:$0xff]  }
 0x248   :  { %5212 = vmatprep.subr.bf16.mxu0 %v10302_v55  ;;  %5255 = vmatprep.subr.bf16.mxu1 %v10305_v57  ;;  %v10354_v55 = vld [vmem:[%s14527_s2 + $0x960] ss:$44 sps:$4 sm:$0xff]   ;;  %v10357_v57 = vld [vmem:[%s14527_s2 + $0x3e8] ss:$44 sps:$4 sm:$0xff]  }
 0x24b   :  { %5213 = vmatpush1.bf16.msra.mxu0 %v10300_v60  ;;  %5256 = vmatpush1.bf16.msra.mxu1 %v10303_v61  ;;  %v10362_v60 = vld [vmem:[%s14527_s2 + $0x9bc] ss:$44 sps:$4 sm:$0xff]   ;;  %v10365_v61 = vld [vmem:[%s14527_s2 + $0x444] ss:$44 sps:$4 sm:$0xff]  }
 0x24c   :  { %5214 = vmatprep.subr.bf16.mxu0 %v10308_v63  ;;  %5257 = vmatprep.subr.bf16.mxu1 %v10311_v0  ;;  %v10360_v63 = vld [vmem:[%s14527_s2 + $0x9b8] ss:$44 sps:$4 sm:$0xff]   ;;  %v10363_v0 = vld [vmem:[%s14527_s2 + $0x440] ss:$44 sps:$4 sm:$0xff]  }
 0x24f   :  { %5215 = vmatpush1.bf16.msra.mxu0 %v10306_v1  ;;  %5258 = vmatpush1.bf16.msra.mxu1 %v10309_v2  ;;  %v10368_v1 = vld [vmem:[%s14527_s2 + $0xa14] ss:$44 sps:$4 sm:$0xff]   ;;  %v10371_v2 = vld [vmem:[%s14527_s2 + $0x49c] ss:$44 sps:$4 sm:$0xff]  }
 0x250   :  { %5216 = vmatprep.subr.bf16.mxu0 %v10314_v3  ;;  %5259 = vmatprep.subr.bf16.mxu1 %v10317_v4  ;;  %v10366_v3 = vld [vmem:[%s14527_s2 + $0xa10] ss:$44 sps:$4 sm:$0xff]   ;;  %v10369_v4 = vld [vmem:[%s14527_s2 + $0x498] ss:$44 sps:$4 sm:$0xff]  }
 0x253   :  { %5217 = vmatpush1.bf16.msra.mxu0 %v10312_v13  ;;  %5260 = vmatpush1.bf16.msra.mxu1 %v10315_v14  ;;  %v8894_v13 = vmul.f32 -1.442695, %v12223_v38  ;;  %v8895_v14 = vmul.f32 -1.442695, %v12227_v40 }
 0x254   :  { %5218 = vmatprep.subr.bf16.mxu0 %v10320_v17  ;;  %5261 = vmatprep.subr.bf16.mxu1 %v10323_v5  ;;  %v8905_v17 = vmul.f32 -1.442695, %v12231_v42  ;;  %v10374_v5 = vld [vmem:[%s14527_s2 + $0xa6c] ss:$44 sps:$4 sm:$0xff]  }
 0x255   :  { %v13089_v21 = vpop.f32.mrb[8].mxu0  ;;  %10968 = vpow2.f32 %v8894_v13 }
 0x256   :  { %v13091_v52 = vpop.f32.mrb[9].mxu0  ;;  %10970 = vpow2.f32 %v8895_v14 }
 0x257   :  { %v13093_v35 = vpop.f32.mrb[10].mxu0  ;;  %5219 = vmatpush1.bf16.msra.mxu0 %v10318_v47  ;;  %5262 = vmatpush1.bf16.msra.mxu1 %v10321_v19  ;;  %v10377_v47 = vld [vmem:[%s14527_s2 + $0x4f4] ss:$44 sps:$4 sm:$0xff]   ;;  %v8906_v19 = vmul.f32 -1.442695, %v12241_v48  ;;  %10972 = vpow2.f32 %v8905_v17 }
 0x258   :  { %v13101_v50 = vpop.f32.mrb[11].mxu0  ;;  %5220 = vmatprep.subr.bf16.mxu0 %v10326_v20  ;;  %5263 = vmatprep.subr.bf16.mxu1 %v10329_v30  ;;  %v10372_v20 = vld [vmem:[%s14527_s2 + $0xa68] ss:$44 sps:$4 sm:$0xff]   ;;  %v10375_v30 = vld [vmem:[%s14527_s2 + $0x4f0] ss:$44 sps:$4 sm:$0xff]  }
 0x259   :  { %10974 = vpow2.f32 %v8906_v19 }
 0x25b   :  { %5221 = vmatpush1.bf16.msra.mxu0 %v10324_v22  ;;  %5264 = vmatpush1.bf16.msra.mxu1 %v10327_v23  ;;  %v10380_v22 = vld [vmem:[%s14527_s2 + $0xac4] ss:$44 sps:$4 sm:$0xff]   ;;  %v10383_v23 = vld [vmem:[%s14527_s2 + $0x54c] ss:$44 sps:$4 sm:$0xff]  }
 0x25c   :  { %5222 = vmatprep.subr.bf16.mxu0 %v10332_v51  ;;  %5265 = vmatprep.subr.bf16.mxu1 %v10335_v24 }
 0x25f   :  { %5223 = vmatpush1.bf16.msra.mxu0 %v10330_v25  ;;  %5266 = vmatpush1.bf16.msra.mxu1 %v10333_v26 }
 0x260   :  { %5224 = vmatprep.subr.bf16.mxu0 %v10338_v27  ;;  %5267 = vmatprep.subr.bf16.mxu1 %v10341_v28 }
 0x263   :  { %5225 = vmatpush1.bf16.msra.mxu0 %v10336_v29  ;;  %5268 = vmatpush1.bf16.msra.mxu1 %v10339_v31 }
 0x264   :  { %5226 = vmatprep.subr.bf16.mxu0 %v10344_v32  ;;  %5269 = vmatprep.subr.bf16.mxu1 %v10347_v46 }
 0x267   :  { %5227 = vmatpush1.bf16.msra.mxu0 %v10342_v7  ;;  %5270 = vmatpush1.bf16.msra.mxu1 %v10345_v33 }
 0x268   :  { %5228 = vmatprep.subr.bf16.mxu0 %v10350_v34  ;;  %5271 = vmatprep.subr.bf16.mxu1 %v10353_v18 }
 0x26b   :  { %5229 = vmatpush1.bf16.msra.mxu0 %v10348_v36  ;;  %5272 = vmatpush1.bf16.msra.mxu1 %v10351_v37 }
 0x26c   :  { %5230 = vmatprep.subr.bf16.mxu0 %v10356_v53  ;;  %5273 = vmatprep.subr.bf16.mxu1 %v10359_v54 }
 0x26f   :  { %5231 = vmatpush1.bf16.msra.mxu0 %v10354_v55  ;;  %5274 = vmatpush1.bf16.msra.mxu1 %v10357_v57 }
 0x270   :  { %5232 = vmatprep.subr.bf16.mxu0 %v10362_v60  ;;  %5275 = vmatprep.subr.bf16.mxu1 %v10365_v61 }
 0x273   :  { %5233 = vmatpush1.bf16.msra.mxu0 %v10360_v63  ;;  %5276 = vmatpush1.bf16.msra.mxu1 %v10363_v0 }
 0x274   :  { %5234 = vmatprep.subr.bf16.mxu0 %v10368_v1  ;;  %5277 = vmatprep.subr.bf16.mxu1 %v10371_v2 }
 0x277   :  { %5235 = vmatpush1.bf16.msra.mxu0 %v10366_v3  ;;  %5278 = vmatpush1.bf16.msra.mxu1 %v10369_v4 }
 0x278   :  { %5236 = vmatprep.subr.bf16.mxu0 %v10374_v5  ;;  %5279 = vmatprep.subr.bf16.mxu1 %v10377_v47 }
 0x279   :  { %9 = vsyncpa [#allocation3], 0  ;;  %v10378_v51 = vld [vmem:[%s14527_s2 + $0xac0] ss:$44 sps:$4 sm:$0xff]   ;;  %v10381_v24 = vld [vmem:[%s14527_s2 + $0x548] ss:$44 sps:$4 sm:$0xff]   ;;  %v10969_v29 = vpop.eup %10968 }
 0x27a   :  { %v10386_v25 = vld [vmem:[%s14527_s2 + $0x5a4] ss:$44 sps:$4 sm:$0xff]   ;;  %v10387_v26 = vld [vmem:[%s14527_s2 + $0x2e8] ss:$44 sps:$4 sm:$0xff]   ;;  %v10384_v27 = vld [vmem:[%s14527_s2 + $0x5a0] ss:$44 sps:$4 sm:$0xff]   ;;  %v10971_v46 = vpop.eup %10970 }
 0x27b   :  { %5237 = vmatpush1.bf16.msra.mxu0 %v10372_v20  ;;  %5280 = vmatpush1.bf16.msra.mxu1 %v10375_v30  ;;  %v10388_v28 = vld [vmem:[%s14527_s2 + $0x28] ss:$44 sps:$4 sm:$0xff]   ;;  %v10392_v32 = vld [vmem:[%s14527_s2 + $0x340] ss:$44 sps:$4 sm:$0xff]   ;;  %v10973_v7 = vpop.eup %10972  ;;  %v5485_v34 = vadd.f32 1.0, %v10969_v29  ;;  %v5486_v37 = vadd.f32 1.0, %v10971_v46 }
 0x27c   :  { %5238 = vmatprep.subr.bf16.mxu0 %v10380_v22  ;;  %5281 = vmatprep.subr.bf16.mxu1 %v10383_v23  ;;  %v10391_v31 = vld [vmem:[%s14527_s2 + $0x5fc] ss:$44 sps:$4 sm:$0xff]   ;;  %v10975_v33 = vpop.eup %10974  ;;  %v10389_v18 = vld [vmem:[%s14527_s2 + $0x5f8] ss:$44 sps:$4 sm:$0xff]   ;;  %v10393_v36 = vld [vmem:[%s14527_s2 + $0x80] ss:$44 sps:$4 sm:$0xff]  }
 0x27d   :  { %v10396_v53 = vld [vmem:[%s14527_s2 + $0x654] ss:$44 sps:$4 sm:$0xff]   ;;  %v10397_v54 = vld [vmem:[%s14527_s2 + $0x398] ss:$44 sps:$4 sm:$0xff]   ;;  %v5496_v55 = vadd.f32 1.0, %v10973_v7  ;;  %v5497_v57 = vadd.f32 1.0, %v10975_v33  ;;  %10976 = vrcp.f32 %v5485_v34 }
 0x27e   :  { %v10394_v60 = vld [vmem:[%s14527_s2 + $0x650] ss:$44 sps:$4 sm:$0xff]   ;;  %v10398_v61 = vld [vmem:[%s14527_s2 + $0xd8] ss:$44 sps:$4 sm:$0xff]   ;;  %10978 = vrcp.f32 %v5486_v37  ;;  %v10399_v0 = vld [vmem:[%s14527_s2 + $0x6a8] ss:$44 sps:$4 sm:$0xff]  }
 0x27f   :  { %5239 = vmatpush1.bf16.msra.mxu0 %v10378_v51  ;;  %5282 = vmatpush1.bf16.msra.mxu1 %v10381_v24  ;;  %v10402_v63 = vld [vmem:[%s14527_s2 + $0x3f0] ss:$44 sps:$4 sm:$0xff]   ;;  %10980 = vrcp.f32 %v5496_v55  ;;  %v10407_v3 = vld [vmem:[%s14527_s2 + $0x448] ss:$44 sps:$4 sm:$0xff]   ;;  %v10404_v4 = vld [vmem:[%s14527_s2 + $0x700] ss:$44 sps:$4 sm:$0xff]  }
 0x280   :  { %5294 = vmatprep.subr.bf16.mxu1 %v10386_v25  ;;  %9306 = vmatprep.subr.bf16.mxu0 %v10387_v26  ;;  %10982 = vrcp.f32 %v5497_v57  ;;  %v10403_v1 = vld [vmem:[%s14527_s2 + $0x130] ss:$44 sps:$4 sm:$0xff]   ;;  %v10408_v13 = vld [vmem:[%s14527_s2 + $0x188] ss:$44 sps:$4 sm:$0xff]   ;;  %v10412_v17 = vld [vmem:[%s14527_s2 + $0x4a0] ss:$44 sps:$4 sm:$0xff]  }
 0x281   :  { %v10406_v2 = vld [vmem:[%s14527_s2 + $0x704] ss:$44 sps:$4 sm:$0xff]   ;;  %v10411_v14 = vld [vmem:[%s14527_s2 + $0x75c] ss:$44 sps:$4 sm:$0xff]   ;;  %v10413_v30 = vld [vmem:[%s14527_s2 + $0x1e0] ss:$44 sps:$4 sm:$0xff]  }
 0x282   :  { %5241 = vmatmul.mubr.bf16.vlgmr.msra.gmra.mrb[16].mxu0 %v13008_v44  ;;  %5284 = vmatmul.mubr.bf16.vlgmr.msra.gmra.mrb[24].mxu1 %v13014_v45  ;;  %v10409_v20 = vld [vmem:[%s14527_s2 + $0x758] ss:$44 sps:$4 sm:$0xff]   ;;  %v10416_v51 = vld [vmem:[%s14527_s2 + $0x7b4] ss:$44 sps:$4 sm:$0xff]   ;;  %v10414_v46 = vld [vmem:[%s14527_s2 + $0x7b0] ss:$44 sps:$4 sm:$0xff]  }
 0x283   :  { %5295 = vmatpush1.bf16.msra.mxu1 %v10384_v27  ;;  %9307 = vmatpush3.bf16.msra.mxu0 %v10388_v28  ;;  %v10417_v24 = vld [vmem:[%s14527_s2 + $0x4f8] ss:$44 sps:$4 sm:$0xff]   ;;  %v10419_v37 = vld [vmem:[%s14527_s2 + $0x808] ss:$44 sps:$4 sm:$0xff]   ;;  %v10424_v57 = vld [vmem:[%s14527_s2 + $0x860] ss:$44 sps:$4 sm:$0xff]  }
 0x284   :  { %5296 = vmatprep.subr.bf16.mxu1 %v10391_v31  ;;  %9308 = vmatprep.subr.bf16.mxu0 %v10392_v32  ;;  %v10418_v7 = vld [vmem:[%s14527_s2 + $0x238] ss:$44 sps:$4 sm:$0xff]   ;;  %v10427_v55 = vld [vmem:[%s14527_s2 + $0x868] ss:$44 sps:$4 sm:$0xff]   ;;  %vm7622_vm0 = vcmask 523264   ;;  %s11093_s23 = smov [#allocation2]  }
 0x285   :  { %5369 = vmatprep.mubr.bf16.mxu0 %v13044_v62  ;;  %5326 = vmatprep.mubr.bf16.mxu1 %v13038_v59  ;;  %v10401_v62 = vld [vmem:[%s14527_s2 + $0x6ac] ss:$44 sps:$4 sm:$0xff]   ;;  %s8175_s24 = sshll.u32 %s11093_s23, 4  ;;  %s8176_s24 = int_to_ptr.vmem [resolvable:$true] %s8175_s24 }
 0x286   :  { %p11073_p1 = scmp.lt.s32.totalorder %s8176_s24, %s8176_s24 }
 0x287   :  { %5297 = vmatpush1.bf16.msra.mxu1 %v10389_v18  ;;  %9309 = vmatpush3.bf16.msra.mxu0 %v10393_v36  ;;  %v10977_v5 = vpop.eup %10976 }
 0x288   :  { %5298 = vmatprep.subr.bf16.mxu1 %v10396_v53  ;;  %9310 = vmatprep.subr.bf16.mxu0 %v10397_v54  ;;  %v10979_v47 = vpop.eup %10978  ;;  %v5551_v23 = vmul.f32 %v10977_v5, %v12223_v38  ;;  %v10423_v53 = vld [vmem:[%s14527_s2 + $0x290] ss:$44 sps:$4 sm:$0xff]   ;;  %v10447_v5 = vld [vmem:[%s14527_s2 + $0x9c8] ss:$44 sps:$4 sm:$0xff]  }
 0x289   :  { %v10981_v19 = vpop.eup %10980  ;;  %v5552_v25 = vmul.f32 %v10979_v47, %v12227_v40  ;;  %v10426_v54 = vld [vmem:[%s14527_s2 + $0x864] ss:$44 sps:$4 sm:$0xff]   ;;  %v10444_v47 = vld [vmem:[%s14527_s2 + $0x9c0] ss:$44 sps:$4 sm:$0xff]  }
 0x28a   :  { %v10983_v22 = vpop.eup %10982  ;;  %v5562_v27 = vmul.f32 %v10981_v19, %v12231_v42  ;;  %v10421_v42 = vld [vmem:[%s14527_s2 + $0x80c] ss:$44 sps:$4 sm:$0xff]   ;;  %v10448_v19 = vld [vmem:[%s14527_s2 + $0x708] ss:$44 sps:$4 sm:$0xff]  }
 0x28b   :  { %5299 = vmatpush1.bf16.msra.mxu1 %v10394_v60  ;;  %9311 = vmatpush3.bf16.msra.mxu0 %v10398_v61  ;;  %v5563_v31 = vmul.f32 %v10983_v22, %v12241_v48  ;;  %v10422_v48 = vld [vmem:[%s14527_s2 + $0x550] ss:$44 sps:$4 sm:$0xff]   ;;  %v10428_v60 = vld [vmem:[%s14527_s2 + $0x5a8] ss:$44 sps:$4 sm:$0xff]   ;;  %v8896_v22 = vmul.f32 -1.442695, %v12225_v39 }
 0x28c   :  { %5300 = vmatprep.subr.bf16.mxu1 %v10401_v62  ;;  %9312 = vmatprep.subr.bf16.mxu0 %v10402_v63  ;;  %v10431_v61 = vld [vmem:[%s14527_s2 + $0x8bc] ss:$44 sps:$4 sm:$0xff]   ;;  %v10432_v62 = vld [vmem:[%s14527_s2 + $0x8c0] ss:$44 sps:$4 sm:$0xff]   ;;  %v10429_v63 = vld [vmem:[%s14527_s2 + $0x8b8] ss:$44 sps:$4 sm:$0xff]  }
 0x28d   :  { %10984 = vpow2.f32 %v8896_v22 }
 0x28f   :  { %5301 = vmatpush1.bf16.msra.mxu1 %v10399_v0  ;;  %9313 = vmatpush3.bf16.msra.mxu0 %v10403_v1  ;;  %v10433_v0 = vld [vmem:[%s14527_s2 + $0x600] ss:$44 sps:$4 sm:$0xff]  }
 0x290   :  { %5302 = vmatprep.subr.bf16.mxu1 %v10406_v2  ;;  %9314 = vmatprep.subr.bf16.mxu0 %v10407_v3  ;;  %v10436_v1 = vld [vmem:[%s14527_s2 + $0x914] ss:$44 sps:$4 sm:$0xff]   ;;  %v10434_v2 = vld [vmem:[%s14527_s2 + $0x910] ss:$44 sps:$4 sm:$0xff]   ;;  %v10438_v3 = vld [vmem:[%s14527_s2 + $0x658] ss:$44 sps:$4 sm:$0xff]  }
 0x293   :  { %5303 = vmatpush1.bf16.msra.mxu1 %v10404_v4  ;;  %9315 = vmatpush3.bf16.msra.mxu0 %v10408_v13  ;;  %v10441_v4 = vld [vmem:[%s14527_s2 + $0x96c] ss:$44 sps:$4 sm:$0xff]   ;;  %v10439_v13 = vld [vmem:[%s14527_s2 + $0x968] ss:$44 sps:$4 sm:$0xff]  }
 0x294   :  { %5304 = vmatprep.subr.bf16.mxu1 %v10411_v14  ;;  %9316 = vmatprep.subr.bf16.mxu0 %v10412_v17  ;;  %v10443_v14 = vld [vmem:[%s14527_s2 + $0x6b0] ss:$44 sps:$4 sm:$0xff]  }
 0x295   :  { %v4984_v26 = vpop.f32.mrb[16].mxu1  ;;  %v10446_v17 = vld [vmem:[%s14527_s2 + $0x9c4] ss:$44 sps:$4 sm:$0xff]  }
 0x296   :  { %v5573_v28 = vmul.f32 %v5551_v23, %v4984_v26  ;;  %v4986_v29 = vpop.f32.mrb[17].mxu1  ;;  %v8897_v23 = vmul.f32 -1.442695, %v12229_v41  ;;  %v10456_v26 = vld [vmem:[%s14527_s2 + $0xa74] ss:$44 sps:$4 sm:$0xff]  }
 0x297   :  { %v5574_v38 = vmul.f32 %v5552_v25, %v4986_v29  ;;  %v4988_v32 = vpop.f32.mrb[18].mxu1  ;;  %5305 = vmatpush1.bf16.msra.mxu1 %v10409_v20  ;;  %9317 = vmatpush3.bf16.msra.mxu0 %v10413_v30  ;;  %v10451_v20 = vld [vmem:[%s14527_s2 + $0xa1c] ss:$44 sps:$4 sm:$0xff]   ;;  %v10452_v30 = vld [vmem:[%s14527_s2 + $0xa20] ss:$44 sps:$4 sm:$0xff]  }
 0x298   :  { %v5584_v40 = vmul.f32 %v5562_v27, %v4988_v32  ;;  %v4990_v33 = vpop.f32.mrb[19].mxu1  ;;  %5306 = vmatprep.subr.bf16.mxu1 %v10416_v51  ;;  %9318 = vmatprep.subr.bf16.mxu0 %v10417_v24  ;;  %v10449_v51 = vld [vmem:[%s14527_s2 + $0xa18] ss:$44 sps:$4 sm:$0xff]   ;;  %v10453_v24 = vld [vmem:[%s14527_s2 + $0x760] ss:$44 sps:$4 sm:$0xff]   ;;  %10986 = vpow2.f32 %v8897_v23 }
 0x299   :  { %v5585_v34 = vmul.f32 %v5563_v31, %v4990_v33  ;;  %v8907_v25 = vmul.f32 -1.442695, %v12233_v43  ;;  %v10457_v27 = vld [vmem:[%s14527_s2 + $0xa78] ss:$44 sps:$4 sm:$0xff]   ;;  %v10454_v29 = vld [vmem:[%s14527_s2 + $0xa70] ss:$44 sps:$4 sm:$0xff]  }
 0x29a   :  { %v13313_v18 = vpack.c.bf16 %v5584_v40, %v5573_v28  ;;  %v8908_v28 = vmul.f32 -1.442695, %v12243_v49  ;;  %v10458_v31 = vld [vmem:[%s14527_s2 + $0x7b8] ss:$44 sps:$4 sm:$0xff]   ;;  %v10462_v32 = vld [vmem:[%s14527_s2 + $0xad0] ss:$44 sps:$4 sm:$0xff]  }
 0x29b   :  { %v13315_v36 = vpack.c.bf16 %v5585_v34, %v5574_v38  ;;  %5307 = vmatpush1.bf16.msra.mxu1 %v10414_v46  ;;  %9319 = vmatpush3.bf16.msra.mxu0 %v10418_v7  ;;  %10988 = vpow2.f32 %v8907_v25  ;;  %v10461_v38 = vld [vmem:[%s14527_s2 + $0xacc] ss:$44 sps:$4 sm:$0xff]   ;;  %v10459_v46 = vld [vmem:[%s14527_s2 + $0xac8] ss:$44 sps:$4 sm:$0xff]   ;;  %v10463_v7 = vld [vmem:[%s14527_s2 + $0x810] ss:$44 sps:$4 sm:$0xff]  }
 0x29c   :  { %5308 = vmatprep.subr.bf16.mxu1 %v10421_v42  ;;  %9320 = vmatprep.subr.bf16.mxu0 %v10422_v48  ;;  %10990 = vpow2.f32 %v8908_v28  ;;  %v10466_v40 = vld [vmem:[%s14528_s3 + $0x4] ss:$16 sps:$4 sm:$0xff]   ;;  %v10469_v33 = vld [vmem:[%s14528_s3 + $0xc] ss:$16 sps:$4 sm:$0xff]   ;;  %v10464_v42 = vld [vmem:[%s14528_s3] ss:$16 sps:$4 sm:$0xff]   ;;  %v10985_v48 = vpop.eup %10984 }
 0x29d   :  { %v10467_v34 = vld [vmem:[%s14528_s3 + $0x8] ss:$16 sps:$4 sm:$0xff]  }
 0x29f   :  { %5309 = vmatpush1.bf16.msra.mxu1 %v10419_v37  ;;  %9321 = vmatpush3.bf16.msra.mxu0 %v10423_v53  ;;  %v10472_v53 = vld [vmem:[%s14528_s3 + $0x24] ss:$16 sps:$4 sm:$0xff]  }
 0x2a0   :  { %5310 = vmatprep.subr.bf16.mxu1 %v10426_v54  ;;  %9328 = vmatprep.subr.bf16.mxu0 %v10427_v55  ;;  %v10475_v54 = vld [vmem:[%s14528_s3 + $0x2c] ss:$16 sps:$4 sm:$0xff]  }
 0x2a2   :  { %5370 = vmatmul.mubr.bf16.vlgmr.msra.gmra.mrb[20].mxu0 %v13014_v45  ;;  %v10437_v45 = vld [vmem:[%s14527_s2 + $0x918] ss:$44 sps:$4 sm:$0xff]   ;;  %v10987_v37 = vpop.eup %10986 }
 0x2a3   :  { %5311 = vmatpush1.bf16.msra.mxu1 %v10424_v57  ;;  %9329 = vmatpush3.bf16.msra.mxu0 %v10428_v60  ;;  %v5487_v60 = vadd.f32 1.0, %v10985_v48  ;;  %v10503_v48 = vld [vmem:[%s14528_s3 + $0xc8] ss:$16 sps:$4 sm:$0xff]  }
 0x2a4   :  { %5312 = vmatprep.subr.bf16.mxu1 %v10431_v61  ;;  %9330 = vmatprep.subr.bf16.mxu0 %v10432_v62  ;;  %v10470_v61 = vld [vmem:[%s14528_s3 + $0x20] ss:$16 sps:$4 sm:$0xff]   ;;  %v5488_v62 = vadd.f32 1.0, %v10987_v37 }
 0x2a5   :  { %5410 = vmatprep.mubr.bf16.mxu0 %v13038_v59  ;;  %v10442_v59 = vld [vmem:[%s14527_s2 + $0x970] ss:$44 sps:$4 sm:$0xff]   ;;  %v10989_v55 = vpop.eup %10988  ;;  %10992 = vrcp.f32 %v5487_v60 }
 0x2a6   :  { %v10991_v57 = vpop.eup %10990  ;;  %10994 = vrcp.f32 %v5488_v62  ;;  %v10517_v60 = vld [vmem:[%s14528_s3 + $0x10c] ss:$16 sps:$4 sm:$0xff]   ;;  %v10515_v62 = vld [vmem:[%s14528_s3 + $0x108] ss:$16 sps:$4 sm:$0xff]  }
 0x2a7   :  { %5313 = vmatpush1.bf16.msra.mxu1 %v10429_v63  ;;  %9331 = vmatpush3.bf16.msra.mxu0 %v10433_v0  ;;  %v10473_v63 = vld [vmem:[%s14528_s3 + $0x28] ss:$16 sps:$4 sm:$0xff]   ;;  %v5498_v0 = vadd.f32 1.0, %v10989_v55 }
 0x2a8   :  { %5314 = vmatprep.subr.bf16.mxu1 %v10436_v1  ;;  %9332 = vmatprep.subr.bf16.mxu0 %v10437_v45  ;;  %v10481_v1 = vld [vmem:[%s14528_s3 + $0x4c] ss:$16 sps:$4 sm:$0xff]   ;;  %v5499_v45 = vadd.f32 1.0, %v10991_v57  ;;  %v10509_v55 = vld [vmem:[%s14528_s3 + $0xe8] ss:$16 sps:$4 sm:$0xff]  }
 0x2a9   :  { %10996 = vrcp.f32 %v5498_v0  ;;  %v10514_v57 = vld [vmem:[%s14528_s3 + $0x104] ss:$16 sps:$4 sm:$0xff]   ;;  %v10518_v0 = vld [vmem:[%s14528_s3 + $0x120] ss:$16 sps:$4 sm:$0xff]  }
 0x2aa   :  { %10998 = vrcp.f32 %v5499_v45  ;;  %v10526_v45 = vld [vmem:[%s14528_s3 + $0x144] ss:$16 sps:$4 sm:$0xff]  }
 0x2ab   :  { %5315 = vmatpush1.bf16.msra.mxu1 %v10434_v2  ;;  %9333 = vmatpush3.bf16.msra.mxu0 %v10438_v3  ;;  %v10479_v2 = vld [vmem:[%s14528_s3 + $0x48] ss:$16 sps:$4 sm:$0xff]   ;;  %v10484_v3 = vld [vmem:[%s14528_s3 + $0x64] ss:$16 sps:$4 sm:$0xff]  }
 0x2ac   :  { %5316 = vmatprep.subr.bf16.mxu1 %v10441_v4  ;;  %9334 = vmatprep.subr.bf16.mxu0 %v10442_v59  ;;  %v10487_v4 = vld [vmem:[%s14528_s3 + $0x6c] ss:$16 sps:$4 sm:$0xff]   ;;  %v10482_v59 = vld [vmem:[%s14528_s3 + $0x60] ss:$16 sps:$4 sm:$0xff]  }
 0x2af   :  { %5317 = vmatpush1.bf16.msra.mxu1 %v10439_v13  ;;  %9335 = vmatpush3.bf16.msra.mxu0 %v10443_v14  ;;  %v10485_v13 = vld [vmem:[%s14528_s3 + $0x68] ss:$16 sps:$4 sm:$0xff]   ;;  %v10490_v14 = vld [vmem:[%s14528_s3 + $0x84] ss:$16 sps:$4 sm:$0xff]  }
 0x2b0   :  { %5318 = vmatprep.subr.bf16.mxu1 %v10446_v17  ;;  %9336 = vmatprep.subr.bf16.mxu0 %v10447_v5  ;;  %v10493_v17 = vld [vmem:[%s14528_s3 + $0x8c] ss:$16 sps:$4 sm:$0xff]   ;;  %v10488_v5 = vld [vmem:[%s14528_s3 + $0x80] ss:$16 sps:$4 sm:$0xff]  }
 0x2b3   :  { %5319 = vmatpush1.bf16.msra.mxu1 %v10444_v47  ;;  %9337 = vmatpush3.bf16.msra.mxu0 %v10448_v19  ;;  %v10491_v47 = vld [vmem:[%s14528_s3 + $0x88] ss:$16 sps:$4 sm:$0xff]   ;;  %v10496_v19 = vld [vmem:[%s14528_s3 + $0xa4] ss:$16 sps:$4 sm:$0xff]  }
 0x2b4   :  { %5320 = vmatprep.subr.bf16.mxu1 %v10451_v20  ;;  %9338 = vmatprep.subr.bf16.mxu0 %v10452_v30  ;;  %v10993_v20 = vpop.eup %10992  ;;  %v10499_v30 = vld [vmem:[%s14528_s3 + $0xac] ss:$16 sps:$4 sm:$0xff]  }
 0x2b5   :  { %v10995_v22 = vpop.eup %10994  ;;  %v5553_v25 = vmul.f32 %v10993_v20, %v12225_v39  ;;  %v10544_v20 = vld [vmem:[%s14528_s3 + $0x1a4] ss:$16 sps:$4 sm:$0xff]  }
 0x2b6   :  { %v10997_v23 = vpop.eup %10996  ;;  %v5554_v28 = vmul.f32 %v10995_v22, %v12229_v41  ;;  %v8898_v22 = vmul.f32 -1.442695, %v12651_v6 }
 0x2b7   :  { %5321 = vmatpush1.bf16.msra.mxu1 %v10449_v51  ;;  %9339 = vmatpush3.bf16.msra.mxu0 %v10453_v24  ;;  %v10494_v51 = vld [vmem:[%s14528_s3 + $0xa0] ss:$16 sps:$4 sm:$0xff]   ;;  %v10999_v24 = vpop.eup %10998  ;;  %v5564_v39 = vmul.f32 %v10997_v23, %v12233_v43  ;;  %v10508_v43 = vld [vmem:[%s14528_s3 + $0xe4] ss:$16 sps:$4 sm:$0xff]   ;;  %v8899_v23 = vmul.f32 -1.442695, %v12655_v9 }
 0x2b8   :  { %5322 = vmatprep.subr.bf16.mxu1 %v10456_v26  ;;  %9340 = vmatprep.subr.bf16.mxu0 %v10457_v27  ;;  %v10497_v26 = vld [vmem:[%s14528_s3 + $0xa8] ss:$16 sps:$4 sm:$0xff]   ;;  %v10502_v27 = vld [vmem:[%s14528_s3 + $0xc4] ss:$16 sps:$4 sm:$0xff]   ;;  %11000 = vpow2.f32 %v8898_v22 }
 0x2b9   :  { %11002 = vpow2.f32 %v8899_v23  ;;  %v10593_v23 = vld [vmem:[%s14528_s3 + $0x2a8] ss:$16 sps:$4 sm:$0xff]  }
 0x2bb   :  { %5323 = vmatpush1.bf16.msra.mxu1 %v10454_v29  ;;  %9341 = vmatpush3.bf16.msra.mxu0 %v10458_v31  ;;  %v10505_v31 = vld [vmem:[%s14528_s3 + $0xcc] ss:$16 sps:$4 sm:$0xff]  }
 0x2bc   :  { %5324 = vmatprep.subr.bf16.mxu1 %v10461_v38  ;;  %9342 = vmatprep.subr.bf16.mxu0 %v10462_v32 }
 0x2bf   :  { %5325 = vmatpush1.bf16.msra.mxu1 %v10459_v46  ;;  %9343 = vmatpush3.bf16.msra.mxu0 %v10463_v7  ;;  %v5565_v46 = vmul.f32 %v10999_v24, %v12243_v49  ;;  %v8909_v24 = vmul.f32 -1.442695, %v12659_v11 }
 0x2c0   :  { %7626 = vmatprep.subr.bf16.mxu0 %v10466_v40  ;;  %7884 = vmatprep.subr.bf16.mxu1 %v10469_v33  ;;  %v10500_v33 = vld [vmem:[%s14528_s3 + $0xc0] ss:$16 sps:$4 sm:$0xff]  }
 0x2c1   :  { %11004 = vpow2.f32 %v8909_v24 }
 0x2c2   :  { %5327 = vmatmul.mubr.bf16.vlgmr.msra.gmra.mrb[24].mxu1 %v13008_v44  ;;  %5411 = vmatmul.mubr.bf16.vlgmr.msra.gmra.mrb[24].mxu0 %v13008_v44  ;;  %v10478_v44 = vld [vmem:[%s14528_s3 + $0x44] ss:$16 sps:$4 sm:$0xff]  }
 0x2c3   :  { %7627 = vmatpush1.bf16.msra.mxu0 %v10464_v42  ;;  %7658 = vmatprep.mubr.bf16.mxu0 %v13315_v36 }
 0x2c4   :  { %7885 = vmatpush1.bf16.msra.mxu1 %v10467_v34  ;;  %7916 = vmatprep.mubr.bf16.mxu1 %v13315_v36  ;;  %v10476_v36 = vld [vmem:[%s14528_s3 + $0x40] ss:$16 sps:$4 sm:$0xff]   ;;  %v10511_v34 = vld [vmem:[%s14528_s3 + $0xec] ss:$16 sps:$4 sm:$0xff]  }
 0x2c5   :  { %7628 = vmatprep.subr.bf16.mxu0 %v10472_v53  ;;  %7886 = vmatprep.subr.bf16.mxu1 %v10475_v54  ;;  %v10506_v54 = vld [vmem:[%s14528_s3 + $0xe0] ss:$16 sps:$4 sm:$0xff]  }
 0x2c7   :  { %7629 = vmatpush1.bf16.msra.mxu0 %v10470_v61  ;;  %v10512_v61 = vld [vmem:[%s14528_s3 + $0x100] ss:$16 sps:$4 sm:$0xff]  }
 0x2c8   :  { %7887 = vmatpush1.bf16.msra.mxu1 %v10473_v63  ;;  %7630 = vmatprep.subr.bf16.mxu0 %v10478_v44  ;;  %v10520_v63 = vld [vmem:[%s14528_s3 + $0x124] ss:$16 sps:$4 sm:$0xff]   ;;  %v10523_v44 = vld [vmem:[%s14528_s3 + $0x12c] ss:$16 sps:$4 sm:$0xff]  }
 0x2c9   :  { %7888 = vmatprep.subr.bf16.mxu1 %v10481_v1  ;;  %v10521_v1 = vld [vmem:[%s14528_s3 + $0x128] ss:$16 sps:$4 sm:$0xff]  }
 0x2cb   :  { %7631 = vmatpush1.bf16.msra.mxu0 %v10476_v36  ;;  %v10529_v36 = vld [vmem:[%s14528_s3 + $0x14c] ss:$16 sps:$4 sm:$0xff]  }
 0x2cc   :  { %7889 = vmatpush1.bf16.msra.mxu1 %v10479_v2  ;;  %7632 = vmatprep.subr.bf16.mxu0 %v10484_v3  ;;  %v10524_v2 = vld [vmem:[%s14528_s3 + $0x140] ss:$16 sps:$4 sm:$0xff]   ;;  %v10527_v3 = vld [vmem:[%s14528_s3 + $0x148] ss:$16 sps:$4 sm:$0xff]  }
 0x2cd   :  { %7890 = vmatprep.subr.bf16.mxu1 %v10487_v4  ;;  %v10532_v4 = vld [vmem:[%s14528_s3 + $0x164] ss:$16 sps:$4 sm:$0xff]  }
 0x2cf   :  { %7633 = vmatpush1.bf16.msra.mxu0 %v10482_v59  ;;  %v10535_v59 = vld [vmem:[%s14528_s3 + $0x16c] ss:$16 sps:$4 sm:$0xff]  }
 0x2d0   :  { %7891 = vmatpush1.bf16.msra.mxu1 %v10485_v13  ;;  %7634 = vmatprep.subr.bf16.mxu0 %v10490_v14  ;;  %v10530_v13 = vld [vmem:[%s14528_s3 + $0x160] ss:$16 sps:$4 sm:$0xff]   ;;  %v10533_v14 = vld [vmem:[%s14528_s3 + $0x168] ss:$16 sps:$4 sm:$0xff]  }
 0x2d1   :  { %7892 = vmatprep.subr.bf16.mxu1 %v10493_v17  ;;  %v10538_v17 = vld [vmem:[%s14528_s3 + $0x184] ss:$16 sps:$4 sm:$0xff]  }
 0x2d3   :  { %7635 = vmatpush1.bf16.msra.mxu0 %v10488_v5  ;;  %v10541_v5 = vld [vmem:[%s14528_s3 + $0x18c] ss:$16 sps:$4 sm:$0xff]  }
 0x2d4   :  { %7893 = vmatpush1.bf16.msra.mxu1 %v10491_v47  ;;  %7636 = vmatprep.subr.bf16.mxu0 %v10496_v19  ;;  %v10536_v47 = vld [vmem:[%s14528_s3 + $0x180] ss:$16 sps:$4 sm:$0xff]   ;;  %v10539_v19 = vld [vmem:[%s14528_s3 + $0x188] ss:$16 sps:$4 sm:$0xff]  }
 0x2d5   :  { %v5070_v29 = vpop.f32.mrb[12].mxu0  ;;  %7894 = vmatprep.subr.bf16.mxu1 %v10499_v30  ;;  %v10547_v30 = vld [vmem:[%s14528_s3 + $0x1ac] ss:$16 sps:$4 sm:$0xff]  }
 0x2d6   :  { %v5575_v38 = vmul.f32 %v5553_v25, %v5070_v29  ;;  %v5072_v32 = vpop.f32.mrb[13].mxu0  ;;  %v10545_v25 = vld [vmem:[%s14528_s3 + $0x1a8] ss:$16 sps:$4 sm:$0xff]   ;;  %v10548_v29 = vld [vmem:[%s14528_s3 + $0x1c0] ss:$16 sps:$4 sm:$0xff]  }
 0x2d7   :  { %v5576_v7 = vmul.f32 %v5554_v28, %v5072_v32  ;;  %v5074_v40 = vpop.f32.mrb[14].mxu0  ;;  %7637 = vmatpush1.bf16.msra.mxu0 %v10494_v51  ;;  %v10542_v51 = vld [vmem:[%s14528_s3 + $0x1a0] ss:$16 sps:$4 sm:$0xff]   ;;  %v10553_v28 = vld [vmem:[%s14528_s3 + $0x1cc] ss:$16 sps:$4 sm:$0xff]  }
 0x2d8   :  { %v5586_v41 = vmul.f32 %v5564_v39, %v5074_v40  ;;  %7895 = vmatpush1.bf16.msra.mxu1 %v10497_v26  ;;  %v5076_v42 = vpop.f32.mrb[15].mxu0  ;;  %7638 = vmatprep.subr.bf16.mxu0 %v10502_v27  ;;  %v10550_v26 = vld [vmem:[%s14528_s3 + $0x1c4] ss:$16 sps:$4 sm:$0xff]   ;;  %v8910_v27 = vmul.f32 -1.442695, %v12669_v15 }
 0x2d9   :  { %v5587_v49 = vmul.f32 %v5565_v46, %v5076_v42  ;;  %7896 = vmatprep.subr.bf16.mxu1 %v10505_v31  ;;  %v10551_v31 = vld [vmem:[%s14528_s3 + $0x1c8] ss:$16 sps:$4 sm:$0xff]   ;;  %v10556_v39 = vld [vmem:[%s14528_s3 + $0x1e4] ss:$16 sps:$4 sm:$0xff]   ;;  %v10554_v32 = vld [vmem:[%s14528_s3 + $0x1e0] ss:$16 sps:$4 sm:$0xff]  }
 0x2da   :  { %v13523_v37 = vpack.c.bf16 %v5586_v41, %v5575_v38  ;;  %11006 = vpow2.f32 %v8910_v27  ;;  %v10559_v38 = vld [vmem:[%s14528_s3 + $0x1ec] ss:$16 sps:$4 sm:$0xff]   ;;  %v10557_v46 = vld [vmem:[%s14528_s3 + $0x1e8] ss:$16 sps:$4 sm:$0xff]   ;;  %v11001_v41 = vpop.eup %11000 }
 0x2db   :  { %v13525_v53 = vpack.c.bf16 %v5587_v49, %v5576_v7  ;;  %7639 = vmatpush1.bf16.msra.mxu0 %v10500_v33  ;;  %v10562_v7 = vld [vmem:[%s14528_s3 + $0x204] ss:$16 sps:$4 sm:$0xff]   ;;  %v10565_v40 = vld [vmem:[%s14528_s3 + $0x20c] ss:$16 sps:$4 sm:$0xff]   ;;  %v10560_v33 = vld [vmem:[%s14528_s3 + $0x200] ss:$16 sps:$4 sm:$0xff]  }
 0x2dc   :  { %7897 = vmatpush1.bf16.msra.mxu1 %v10503_v48  ;;  %7640 = vmatprep.subr.bf16.mxu0 %v10508_v43  ;;  %v10563_v42 = vld [vmem:[%s14528_s3 + $0x208] ss:$16 sps:$4 sm:$0xff]   ;;  %v11003_v48 = vpop.eup %11002  ;;  %v10568_v43 = vld [vmem:[%s14528_s3 + $0x224] ss:$16 sps:$4 sm:$0xff]  }
 0x2dd   :  { %7898 = vmatprep.subr.bf16.mxu1 %v10511_v34  ;;  %v11005_v49 = vpop.eup %11004  ;;  %v10571_v34 = vld [vmem:[%s14528_s3 + $0x22c] ss:$16 sps:$4 sm:$0xff]  }
 0x2df   :  { %7641 = vmatpush1.bf16.msra.mxu0 %v10506_v54 }
 0x2e0   :  { %7899 = vmatpush1.bf16.msra.mxu1 %v10509_v55  ;;  %7642 = vmatprep.subr.bf16.mxu0 %v10514_v57  ;;  %v5489_v55 = vadd.f32 1.0, %v11001_v41  ;;  %v10566_v57 = vld [vmem:[%s14528_s3 + $0x220] ss:$16 sps:$4 sm:$0xff]  }
 0x2e1   :  { %7900 = vmatprep.subr.bf16.mxu1 %v10517_v60  ;;  %v5490_v60 = vadd.f32 1.0, %v11003_v48  ;;  %v10602_v41 = vld [vmem:[%s14528_s3 + $0x2e0] ss:$16 sps:$4 sm:$0xff]   ;;  %v10610_v48 = vld [vmem:[%s14528_s3 + $0x304] ss:$16 sps:$4 sm:$0xff]  }
 0x2e2   :  { %11008 = vrcp.f32 %v5489_v55  ;;  %v10619_v55 = vld [vmem:[%s14528_s3 + $0x32c] ss:$16 sps:$4 sm:$0xff]  }
 0x2e3   :  { %7643 = vmatpush1.bf16.msra.mxu0 %v10512_v61  ;;  %v10569_v61 = vld [vmem:[%s14528_s3 + $0x228] ss:$16 sps:$4 sm:$0xff]   ;;  %11010 = vrcp.f32 %v5490_v60 }
 0x2e4   :  { %7901 = vmatpush1.bf16.msra.mxu1 %v10515_v62  ;;  %7644 = vmatprep.subr.bf16.mxu0 %v10520_v63  ;;  %v11007_v54 = vpop.eup %11006  ;;  %v10574_v62 = vld [vmem:[%s14528_s3 + $0x244] ss:$16 sps:$4 sm:$0xff]   ;;  %v5500_v63 = vadd.f32 1.0, %v11005_v49  ;;  %v10608_v49 = vld [vmem:[%s14528_s3 + $0x300] ss:$16 sps:$4 sm:$0xff]  }
 0x2e5   :  { %7902 = vmatprep.subr.bf16.mxu1 %v10523_v44  ;;  %v5501_v44 = vadd.f32 1.0, %v11007_v54  ;;  %v10616_v54 = vld [vmem:[%s14528_s3 + $0x324] ss:$16 sps:$4 sm:$0xff]   ;;  %v10617_v60 = vld [vmem:[%s14528_s3 + $0x328] ss:$16 sps:$4 sm:$0xff]  }
 0x2e6   :  { %11012 = vrcp.f32 %v5500_v63  ;;  %v10620_v63 = vld [vmem:[%s14528_s3 + $0x340] ss:$16 sps:$4 sm:$0xff]  }
 0x2e7   :  { %7645 = vmatpush1.bf16.msra.mxu0 %v10518_v0  ;;  %v10572_v0 = vld [vmem:[%s14528_s3 + $0x240] ss:$16 sps:$4 sm:$0xff]   ;;  %11014 = vrcp.f32 %v5501_v44  ;;  %v10628_v44 = vld [vmem:[%s14528_s3 + $0x364] ss:$16 sps:$4 sm:$0xff]  }
 0x2e8   :  { %7903 = vmatpush1.bf16.msra.mxu1 %v10521_v1  ;;  %7646 = vmatprep.subr.bf16.mxu0 %v10526_v45  ;;  %v10580_v1 = vld [vmem:[%s14528_s3 + $0x264] ss:$16 sps:$4 sm:$0xff]   ;;  %v10583_v45 = vld [vmem:[%s14528_s3 + $0x26c] ss:$16 sps:$4 sm:$0xff]  }
 0x2e9   :  { %7904 = vmatprep.subr.bf16.mxu1 %v10529_v36  ;;  %v10578_v36 = vld [vmem:[%s14528_s3 + $0x260] ss:$16 sps:$4 sm:$0xff]  }
 0x2eb   :  { %7647 = vmatpush1.bf16.msra.mxu0 %v10524_v2  ;;  %v10581_v2 = vld [vmem:[%s14528_s3 + $0x268] ss:$16 sps:$4 sm:$0xff]  }
 0x2ec   :  { %7905 = vmatpush1.bf16.msra.mxu1 %v10527_v3  ;;  %7648 = vmatprep.subr.bf16.mxu0 %v10532_v4  ;;  %v10586_v3 = vld [vmem:[%s14528_s3 + $0x284] ss:$16 sps:$4 sm:$0xff]   ;;  %v10589_v4 = vld [vmem:[%s14528_s3 + $0x28c] ss:$16 sps:$4 sm:$0xff]  }
 0x2ed   :  { %7906 = vmatprep.subr.bf16.mxu1 %v10535_v59  ;;  %v10584_v59 = vld [vmem:[%s14528_s3 + $0x280] ss:$16 sps:$4 sm:$0xff]  }
 0x2ef   :  { %7649 = vmatpush1.bf16.msra.mxu0 %v10530_v13  ;;  %v10587_v13 = vld [vmem:[%s14528_s3 + $0x288] ss:$16 sps:$4 sm:$0xff]  }
 0x2f0   :  { %7907 = vmatpush1.bf16.msra.mxu1 %v10533_v14  ;;  %7650 = vmatprep.subr.bf16.mxu0 %v10538_v17  ;;  %v10592_v14 = vld [vmem:[%s14528_s3 + $0x2a4] ss:$16 sps:$4 sm:$0xff]   ;;  %v11009_v17 = vpop.eup %11008 }
 0x2f1   :  { %7908 = vmatprep.subr.bf16.mxu1 %v10541_v5  ;;  %v10595_v5 = vld [vmem:[%s14528_s3 + $0x2ac] ss:$16 sps:$4 sm:$0xff]   ;;  %v5555_v22 = vmul.f32 %v11009_v17, %v12651_v6  ;;  %v10638_v17 = vld [vmem:[%s14528_s3 + $0x3a0] ss:$16 sps:$4 sm:$0xff]  }
 0x2f3   :  { %7651 = vmatpush1.bf16.msra.mxu0 %v10536_v47  ;;  %v11011_v47 = vpop.eup %11010 }
 0x2f4   :  { %7909 = vmatpush1.bf16.msra.mxu1 %v10539_v19  ;;  %7652 = vmatprep.subr.bf16.mxu0 %v10544_v20  ;;  %v11013_v19 = vpop.eup %11012  ;;  %v10590_v20 = vld [vmem:[%s14528_s3 + $0x2a0] ss:$16 sps:$4 sm:$0xff]   ;;  %v5556_v24 = vmul.f32 %v11011_v47, %v12655_v9  ;;  %v10641_v47 = vld [vmem:[%s14528_s3 + $0x3a8] ss:$16 sps:$4 sm:$0xff]  }
 0x2f5   :  { %7910 = vmatprep.subr.bf16.mxu1 %v10547_v30  ;;  %v11015_v30 = vpop.eup %11014  ;;  %v5566_v6 = vmul.f32 %v11013_v19, %v12659_v11  ;;  %v10604_v11 = vld [vmem:[%s14528_s3 + $0x2e4] ss:$16 sps:$4 sm:$0xff]  }
 0x2f6   :  { %v10646_v19 = vld [vmem:[%s14528_s3 + $0x3c4] ss:$16 sps:$4 sm:$0xff]  }
 0x2f7   :  { %7653 = vmatpush1.bf16.msra.mxu0 %v10542_v51  ;;  %v10598_v51 = vld [vmem:[%s14528_s3 + $0x2c4] ss:$16 sps:$4 sm:$0xff]  }
 0x2f8   :  { %7911 = vmatpush1.bf16.msra.mxu1 %v10545_v25  ;;  %7654 = vmatprep.subr.bf16.mxu0 %v10550_v26  ;;  %v10601_v26 = vld [vmem:[%s14528_s3 + $0x2cc] ss:$16 sps:$4 sm:$0xff]  }
 0x2f9   :  { %7912 = vmatprep.subr.bf16.mxu1 %v10553_v28 }
 0x2fb   :  { %7655 = vmatpush1.bf16.msra.mxu0 %v10548_v29  ;;  %v5567_v29 = vmul.f32 %v11015_v30, %v12669_v15  ;;  %v10649_v30 = vld [vmem:[%s14528_s3 + $0x3cc] ss:$16 sps:$4 sm:$0xff]  }
 0x2fc   :  { %7913 = vmatpush1.bf16.msra.mxu1 %v10551_v31  ;;  %7656 = vmatprep.subr.bf16.mxu0 %v10556_v39 }
 0x2fd   :  { %7914 = vmatprep.subr.bf16.mxu1 %v10559_v38  ;;  %v10596_v38 = vld [vmem:[%s14528_s3 + $0x2c0] ss:$16 sps:$4 sm:$0xff]  }
 0x2ff   :  { %7657 = vmatpush1.bf16.msra.mxu0 %v10554_v32 }
 0x300   :  { %7915 = vmatpush1.bf16.msra.mxu1 %v10557_v46  ;;  %7669 = vmatprep.subr.bf16.mxu0 %v10562_v7  ;;  %v10599_v46 = vld [vmem:[%s14528_s3 + $0x2c8] ss:$16 sps:$4 sm:$0xff]   ;;  %v10607_v7 = vld [vmem:[%s14528_s3 + $0x2ec] ss:$16 sps:$4 sm:$0xff]  }
 0x301   :  { %7927 = vmatprep.subr.bf16.mxu1 %v10565_v40 }
 0x302   :  { %7659 = vmatmul.mubr.bf16.vlgmr.msra.gmra.mrb[28].mxu0 %v13313_v18 }
 0x303   :  { %7917 = vmatmul.mubr.bf16.vlgmr.msra.gmra.mrb[28].mxu1 %v13313_v18  ;;  %7670 = vmatpush1.bf16.msra.mxu0 %v10560_v33  ;;  %v10577_v18 = vld [vmem:[%s14528_s3 + $0x24c] ss:$16 sps:$4 sm:$0xff]  }
 0x304   :  { %7701 = vmatprep.mubr.bf16.mxu0 %v13525_v53  ;;  %7928 = vmatpush1.bf16.msra.mxu1 %v10563_v42  ;;  %v10605_v42 = vld [vmem:[%s14528_s3 + $0x2e8] ss:$16 sps:$4 sm:$0xff]  }
 0x305   :  { %7959 = vmatprep.mubr.bf16.mxu1 %v13525_v53  ;;  %7671 = vmatprep.subr.bf16.mxu0 %v10568_v43  ;;  %v10575_v53 = vld [vmem:[%s14528_s3 + $0x248] ss:$16 sps:$4 sm:$0xff]   ;;  %v10613_v43 = vld [vmem:[%s14528_s3 + $0x30c] ss:$16 sps:$4 sm:$0xff]  }
 0x306   :  { %7929 = vmatprep.subr.bf16.mxu1 %v10571_v34  ;;  %v10611_v34 = vld [vmem:[%s14528_s3 + $0x308] ss:$16 sps:$4 sm:$0xff]  }
 0x307   :  { %7672 = vmatpush1.bf16.msra.mxu0 %v10566_v57  ;;  %v10614_v57 = vld [vmem:[%s14528_s3 + $0x320] ss:$16 sps:$4 sm:$0xff]  }
 0x308   :  { %7930 = vmatpush1.bf16.msra.mxu1 %v10569_v61  ;;  %7673 = vmatprep.subr.bf16.mxu0 %v10574_v62  ;;  %v10622_v61 = vld [vmem:[%s14528_s3 + $0x344] ss:$16 sps:$4 sm:$0xff]   ;;  %v10625_v62 = vld [vmem:[%s14528_s3 + $0x34c] ss:$16 sps:$4 sm:$0xff]  }
 0x309   :  { %7931 = vmatprep.subr.bf16.mxu1 %v10577_v18  ;;  %v10623_v18 = vld [vmem:[%s14528_s3 + $0x348] ss:$16 sps:$4 sm:$0xff]  }
 0x30b   :  { %7674 = vmatpush1.bf16.msra.mxu0 %v10572_v0  ;;  %v10631_v0 = vld [vmem:[%s14528_s3 + $0x36c] ss:$16 sps:$4 sm:$0xff]  }
 0x30c   :  { %7932 = vmatpush1.bf16.msra.mxu1 %v10575_v53  ;;  %7675 = vmatprep.subr.bf16.mxu0 %v10580_v1  ;;  %v10626_v53 = vld [vmem:[%s14528_s3 + $0x360] ss:$16 sps:$4 sm:$0xff]   ;;  %v10629_v1 = vld [vmem:[%s14528_s3 + $0x368] ss:$16 sps:$4 sm:$0xff]  }
 0x30d   :  { %7933 = vmatprep.subr.bf16.mxu1 %v10583_v45  ;;  %v10634_v45 = vld [vmem:[%s14528_s3 + $0x384] ss:$16 sps:$4 sm:$0xff]  }
 0x30f   :  { %7676 = vmatpush1.bf16.msra.mxu0 %v10578_v36  ;;  %v10637_v36 = vld [vmem:[%s14528_s3 + $0x38c] ss:$16 sps:$4 sm:$0xff]  }
 0x310   :  { %7934 = vmatpush1.bf16.msra.mxu1 %v10581_v2  ;;  %7677 = vmatprep.subr.bf16.mxu0 %v10586_v3  ;;  %v10632_v2 = vld [vmem:[%s14528_s3 + $0x380] ss:$16 sps:$4 sm:$0xff]   ;;  %v10635_v3 = vld [vmem:[%s14528_s3 + $0x388] ss:$16 sps:$4 sm:$0xff]  }
 0x311   :  { %7935 = vmatprep.subr.bf16.mxu1 %v10589_v4  ;;  %v10640_v4 = vld [vmem:[%s14528_s3 + $0x3a4] ss:$16 sps:$4 sm:$0xff]  }
 0x313   :  { %7678 = vmatpush1.bf16.msra.mxu0 %v10584_v59  ;;  %v10643_v59 = vld [vmem:[%s14528_s3 + $0x3ac] ss:$16 sps:$4 sm:$0xff]  }
 0x314   :  { %7936 = vmatpush1.bf16.msra.mxu1 %v10587_v13  ;;  %7679 = vmatprep.subr.bf16.mxu0 %v10592_v14  ;;  %v8900_v13 = vmul.f32 -1.442695, %v12653_v8  ;;  %v8901_v14 = vmul.f32 -1.442695, %v12657_v10 }
 0x315   :  { %v5156_v25 = vpop.f32.mrb[20].mxu1  ;;  %7937 = vmatprep.subr.bf16.mxu1 %v10595_v5  ;;  %v8911_v5 = vmul.f32 -1.442695, %v12661_v12 }
 0x316   :  { %v5577_v27 = vmul.f32 %v5555_v22, %v5156_v25  ;;  %v5158_v28 = vpop.f32.mrb[21].mxu1  ;;  %11016 = vpow2.f32 %v8900_v13  ;;  %v10644_v22 = vld [vmem:[%s14528_s3 + $0x3c0] ss:$16 sps:$4 sm:$0xff]  }
 0x317   :  { %v5578_v31 = vmul.f32 %v5556_v24, %v5158_v28  ;;  %v5160_v39 = vpop.f32.mrb[22].mxu1  ;;  %7680 = vmatpush1.bf16.msra.mxu0 %v10590_v20  ;;  %v8912_v20 = vmul.f32 -1.442695, %v12671_v16  ;;  %11018 = vpow2.f32 %v8901_v14  ;;  %v10655_v24 = vld [vmem:[%s14528_s3 + $0x3ec] ss:$16 sps:$4 sm:$0xff]  }
 0x318   :  { %v5588_v9 = vmul.f32 %v5566_v6, %v5160_v39  ;;  %7938 = vmatpush1.bf16.msra.mxu1 %v10593_v23  ;;  %v5162_v32 = vpop.f32.mrb[23].mxu1  ;;  %7681 = vmatprep.subr.bf16.mxu0 %v10598_v51  ;;  %11020 = vpow2.f32 %v8911_v5  ;;  %v10647_v23 = vld [vmem:[%s14528_s3 + $0x3c8] ss:$16 sps:$4 sm:$0xff]   ;;  %v10652_v51 = vld [vmem:[%s14528_s3 + $0x3e4] ss:$16 sps:$4 sm:$0xff]  }
 0x319   :  { %v5589_v15 = vmul.f32 %v5567_v29, %v5162_v32  ;;  %7939 = vmatprep.subr.bf16.mxu1 %v10601_v26  ;;  %11022 = vpow2.f32 %v8912_v20  ;;  %v10650_v25 = vld [vmem:[%s14528_s3 + $0x3e0] ss:$16 sps:$4 sm:$0xff]   ;;  %v10653_v26 = vld [vmem:[%s14528_s3 + $0x3e8] ss:$16 sps:$4 sm:$0xff]   ;;  %v10658_v6 = vld [vmem:[%s14528_s3 + $0x404] ss:$16 sps:$4 sm:$0xff]  }
 0x31a   :  { %v13731_v40 = vpack.c.bf16 %v5588_v9, %v5577_v27  ;;  %v10661_v27 = vld [vmem:[%s14528_s3 + $0x40c] ss:$16 sps:$4 sm:$0xff]   ;;  %v10656_v28 = vld [vmem:[%s14528_s3 + $0x400] ss:$16 sps:$4 sm:$0xff]  }
 0x31b   :  { %v13733_v33 = vpack.c.bf16 %v5589_v15, %v5578_v31  ;;  %7682 = vmatpush1.bf16.msra.mxu0 %v10596_v38  ;;  %v10659_v31 = vld [vmem:[%s14528_s3 + $0x408] ss:$16 sps:$4 sm:$0xff]   ;;  %v10664_v38 = vld [vmem:[%s14528_s3 + $0x424] ss:$16 sps:$4 sm:$0xff]   ;;  %v10667_v32 = vld [vmem:[%s14528_s3 + $0x42c] ss:$16 sps:$4 sm:$0xff]  }
 0x31c   :  { %7940 = vmatpush1.bf16.msra.mxu1 %v10599_v46  ;;  %7683 = vmatprep.subr.bf16.mxu0 %v10604_v11  ;;  %v10662_v15 = vld [vmem:[%s14528_s3 + $0x420] ss:$16 sps:$4 sm:$0xff]   ;;  %v10697_v14 = vld [vmem:[%s14528_s3 + $0x4cc] ss:$16 sps:$4 sm:$0xff]  }
 0x31d   :  { %7941 = vmatprep.subr.bf16.mxu1 %v10607_v7 }
 0x31f   :  { %7684 = vmatpush1.bf16.msra.mxu0 %v10602_v41  ;;  %v10665_v41 = vld [vmem:[%s14528_s3 + $0x428] ss:$16 sps:$4 sm:$0xff]  }
 0x320   :  { %7942 = vmatpush1.bf16.msra.mxu1 %v10605_v42  ;;  %7685 = vmatprep.subr.bf16.mxu0 %v10610_v48  ;;  %v11017_v29 = vpop.eup %11016  ;;  %v10670_v42 = vld [vmem:[%s14528_s3 + $0x444] ss:$16 sps:$4 sm:$0xff]  }
 0x321   :  { %7943 = vmatprep.subr.bf16.mxu1 %v10613_v43  ;;  %v11019_v39 = vpop.eup %11018  ;;  %v5491_v11 = vadd.f32 1.0, %v11017_v29  ;;  %v10704_v29 = vld [vmem:[%s14528_s3 + $0x500] ss:$16 sps:$4 sm:$0xff]  }
 0x322   :  { %v11021_v9 = vpop.eup %11020  ;;  %v5492_v7 = vadd.f32 1.0, %v11019_v39  ;;  %v10712_v39 = vld [vmem:[%s14528_s3 + $0x524] ss:$16 sps:$4 sm:$0xff]  }
 0x323   :  { %7686 = vmatpush1.bf16.msra.mxu0 %v10608_v49  ;;  %v11023_v46 = vpop.eup %11022  ;;  %v5502_v48 = vadd.f32 1.0, %v11021_v9  ;;  %11024 = vrcp.f32 %v5491_v11  ;;  %v10668_v49 = vld [vmem:[%s14528_s3 + $0x440] ss:$16 sps:$4 sm:$0xff]   ;;  %v10721_v11 = vld [vmem:[%s14528_s3 + $0x54c] ss:$16 sps:$4 sm:$0xff]  }
 0x324   :  { %7944 = vmatpush1.bf16.msra.mxu1 %v10611_v34  ;;  %7687 = vmatprep.subr.bf16.mxu0 %v10616_v54  ;;  %v5503_v43 = vadd.f32 1.0, %v11023_v46  ;;  %11026 = vrcp.f32 %v5492_v7  ;;  %v10676_v34 = vld [vmem:[%s14528_s3 + $0x464] ss:$16 sps:$4 sm:$0xff]   ;;  %v10679_v54 = vld [vmem:[%s14528_s3 + $0x46c] ss:$16 sps:$4 sm:$0xff]  }
 0x325   :  { %7945 = vmatprep.subr.bf16.mxu1 %v10619_v55  ;;  %11028 = vrcp.f32 %v5502_v48  ;;  %v10674_v55 = vld [vmem:[%s14528_s3 + $0x460] ss:$16 sps:$4 sm:$0xff]   ;;  %v10718_v46 = vld [vmem:[%s14528_s3 + $0x544] ss:$16 sps:$4 sm:$0xff]   ;;  %v10719_v7 = vld [vmem:[%s14528_s3 + $0x548] ss:$16 sps:$4 sm:$0xff]  }
 0x326   :  { %11030 = vrcp.f32 %v5503_v43  ;;  %v10710_v9 = vld [vmem:[%s14528_s3 + $0x520] ss:$16 sps:$4 sm:$0xff]   ;;  %v10730_v43 = vld [vmem:[%s14528_s3 + $0x584] ss:$16 sps:$4 sm:$0xff]  }
 0x327   :  { %7688 = vmatpush1.bf16.msra.mxu0 %v10614_v57  ;;  %v10677_v57 = vld [vmem:[%s14528_s3 + $0x468] ss:$16 sps:$4 sm:$0xff]   ;;  %v10722_v48 = vld [vmem:[%s14528_s3 + $0x560] ss:$16 sps:$4 sm:$0xff]  }
 0x328   :  { %7946 = vmatpush1.bf16.msra.mxu1 %v10617_v60  ;;  %7689 = vmatprep.subr.bf16.mxu0 %v10622_v61  ;;  %v10682_v60 = vld [vmem:[%s14528_s3 + $0x484] ss:$16 sps:$4 sm:$0xff]   ;;  %v10685_v61 = vld [vmem:[%s14528_s3 + $0x48c] ss:$16 sps:$4 sm:$0xff]  }
 0x329   :  { %7947 = vmatprep.subr.bf16.mxu1 %v10625_v62  ;;  %v10680_v62 = vld [vmem:[%s14528_s3 + $0x480] ss:$16 sps:$4 sm:$0xff]  }
 0x32b   :  { %7690 = vmatpush1.bf16.msra.mxu0 %v10620_v63  ;;  %v10683_v63 = vld [vmem:[%s14528_s3 + $0x488] ss:$16 sps:$4 sm:$0xff]  }
 0x32c   :  { %7948 = vmatpush1.bf16.msra.mxu1 %v10623_v18  ;;  %7691 = vmatprep.subr.bf16.mxu0 %v10628_v44  ;;  %v10688_v18 = vld [vmem:[%s14528_s3 + $0x4a4] ss:$16 sps:$4 sm:$0xff]  }
 0x32d   :  { %7949 = vmatprep.subr.bf16.mxu1 %v10631_v0  ;;  %v11025_v44 = vpop.eup %11024  ;;  %v10691_v0 = vld [vmem:[%s14528_s3 + $0x4ac] ss:$16 sps:$4 sm:$0xff]  }
 0x32f   :  { %7692 = vmatpush1.bf16.msra.mxu0 %v10626_v53  ;;  %v11027_v53 = vpop.eup %11026 }
 0x330   :  { %7950 = vmatpush1.bf16.msra.mxu1 %v10629_v1  ;;  %7693 = vmatprep.subr.bf16.mxu0 %v10634_v45  ;;  %v11029_v1 = vpop.eup %11028  ;;  %v10686_v45 = vld [vmem:[%s14528_s3 + $0x4a0] ss:$16 sps:$4 sm:$0xff]  }
 0x331   :  { %7951 = vmatprep.subr.bf16.mxu1 %v10637_v36  ;;  %v11031_v36 = vpop.eup %11030 }
 0x333   :  { %7694 = vmatpush1.bf16.msra.mxu0 %v10632_v2  ;;  %v5557_v2 = vmul.f32 %v11025_v44, %v12653_v8  ;;  %v5568_v8 = vmul.f32 %v11029_v1, %v12661_v12  ;;  %v10700_v12 = vld [vmem:[%s14528_s3 + $0x4e4] ss:$16 sps:$4 sm:$0xff]   ;;  %v8914_v44 = vmul.f32 -1.442695, %v13101_v50 }
 0x334   :  { %7952 = vmatpush1.bf16.msra.mxu1 %v10635_v3  ;;  %7695 = vmatprep.subr.bf16.mxu0 %v10640_v4  ;;  %v10689_v3 = vld [vmem:[%s14528_s3 + $0x4a8] ss:$16 sps:$4 sm:$0xff]   ;;  %v10694_v4 = vld [vmem:[%s14528_s3 + $0x4c4] ss:$16 sps:$4 sm:$0xff]  }
 0x335   :  { %7953 = vmatprep.subr.bf16.mxu1 %v10643_v59  ;;  %v5558_v59 = vmul.f32 %v11027_v53, %v12657_v10  ;;  %v10745_v53 = vld [vmem:[%s14528_s3 + $0x5cc] ss:$16 sps:$4 sm:$0xff]  }
 0x337   :  { %7696 = vmatpush1.bf16.msra.mxu0 %v10638_v17 }
 0x338   :  { %7954 = vmatpush1.bf16.msra.mxu1 %v10641_v47  ;;  %7697 = vmatprep.subr.bf16.mxu0 %v10646_v19  ;;  %v5569_v47 = vmul.f32 %v11031_v36, %v12671_v16 }
 0x339   :  { %7955 = vmatprep.subr.bf16.mxu1 %v10649_v30  ;;  %v10692_v30 = vld [vmem:[%s14528_s3 + $0x4c0] ss:$16 sps:$4 sm:$0xff]  }
 0x33b   :  { %7698 = vmatpush1.bf16.msra.mxu0 %v10644_v22 }
 0x33c   :  { %7956 = vmatpush1.bf16.msra.mxu1 %v10647_v23  ;;  %7699 = vmatprep.subr.bf16.mxu0 %v10652_v51  ;;  %v10695_v23 = vld [vmem:[%s14528_s3 + $0x4c8] ss:$16 sps:$4 sm:$0xff]   ;;  %v10703_v51 = vld [vmem:[%s14528_s3 + $0x4ec] ss:$16 sps:$4 sm:$0xff]  }
 0x33d   :  { %7957 = vmatprep.subr.bf16.mxu1 %v10655_v24 }
 0x33f   :  { %7700 = vmatpush1.bf16.msra.mxu0 %v10650_v25 }
 0x340   :  { %7958 = vmatpush1.bf16.msra.mxu1 %v10653_v26  ;;  %7712 = vmatprep.subr.bf16.mxu0 %v10658_v6  ;;  %v10698_v26 = vld [vmem:[%s14528_s3 + $0x4e0] ss:$16 sps:$4 sm:$0xff]   ;;  %v10701_v6 = vld [vmem:[%s14528_s3 + $0x4e8] ss:$16 sps:$4 sm:$0xff]  }
 0x341   :  { %7970 = vmatprep.subr.bf16.mxu1 %v10661_v27  ;;  %v10706_v27 = vld [vmem:[%s14528_s3 + $0x504] ss:$16 sps:$4 sm:$0xff]  }
 0x342   :  { %7702 = vmatmul.mubr.bf16.vlgmr.msra.gmra.mrb[28].mxu0 %v13523_v37 }
 0x343   :  { %7960 = vmatmul.mubr.bf16.vlgmr.msra.gmra.mrb[28].mxu1 %v13523_v37  ;;  %7713 = vmatpush1.bf16.msra.mxu0 %v10656_v28  ;;  %v10673_v37 = vld [vmem:[%s14528_s3 + $0x44c] ss:$16 sps:$4 sm:$0xff]  }
 0x344   :  { %7744 = vmatprep.mubr.bf16.mxu0 %v13733_v33  ;;  %7971 = vmatpush1.bf16.msra.mxu1 %v10659_v31  ;;  %v10709_v28 = vld [vmem:[%s14528_s3 + $0x50c] ss:$16 sps:$4 sm:$0xff]   ;;  %v10707_v31 = vld [vmem:[%s14528_s3 + $0x508] ss:$16 sps:$4 sm:$0xff]  }
 0x345   :  { %8002 = vmatprep.mubr.bf16.mxu1 %v13733_v33  ;;  %7714 = vmatprep.subr.bf16.mxu0 %v10664_v38  ;;  %v10671_v33 = vld [vmem:[%s14528_s3 + $0x448] ss:$16 sps:$4 sm:$0xff]   ;;  %v10715_v38 = vld [vmem:[%s14528_s3 + $0x52c] ss:$16 sps:$4 sm:$0xff]  }
 0x346   :  { %7972 = vmatprep.subr.bf16.mxu1 %v10667_v32  ;;  %v10713_v32 = vld [vmem:[%s14528_s3 + $0x528] ss:$16 sps:$4 sm:$0xff]  }
 0x347   :  { %7715 = vmatpush1.bf16.msra.mxu0 %v10662_v15  ;;  %v10716_v15 = vld [vmem:[%s14528_s3 + $0x540] ss:$16 sps:$4 sm:$0xff]  }
 0x348   :  { %7973 = vmatpush1.bf16.msra.mxu1 %v10665_v41  ;;  %7716 = vmatprep.subr.bf16.mxu0 %v10670_v42  ;;  %v10724_v41 = vld [vmem:[%s14528_s3 + $0x564] ss:$16 sps:$4 sm:$0xff]   ;;  %v10727_v42 = vld [vmem:[%s14528_s3 + $0x56c] ss:$16 sps:$4 sm:$0xff]  }
 0x349   :  { %7974 = vmatprep.subr.bf16.mxu1 %v10673_v37  ;;  %v10725_v37 = vld [vmem:[%s14528_s3 + $0x568] ss:$16 sps:$4 sm:$0xff]  }
 0x34b   :  { %7717 = vmatpush1.bf16.msra.mxu0 %v10668_v49  ;;  %v10733_v49 = vld [vmem:[%s14528_s3 + $0x58c] ss:$16 sps:$4 sm:$0xff]  }
 0x34c   :  { %7975 = vmatpush1.bf16.msra.mxu1 %v10671_v33  ;;  %7718 = vmatprep.subr.bf16.mxu0 %v10676_v34  ;;  %v10728_v33 = vld [vmem:[%s14528_s3 + $0x580] ss:$16 sps:$4 sm:$0xff]   ;;  %v10731_v34 = vld [vmem:[%s14528_s3 + $0x588] ss:$16 sps:$4 sm:$0xff]  }
 0x34d   :  { %7976 = vmatprep.subr.bf16.mxu1 %v10679_v54  ;;  %v10736_v54 = vld [vmem:[%s14528_s3 + $0x5a4] ss:$16 sps:$4 sm:$0xff]  }
 0x34f   :  { %7719 = vmatpush1.bf16.msra.mxu0 %v10674_v55  ;;  %v10739_v55 = vld [vmem:[%s14528_s3 + $0x5ac] ss:$16 sps:$4 sm:$0xff]  }
 0x350   :  { %7977 = vmatpush1.bf16.msra.mxu1 %v10677_v57  ;;  %7720 = vmatprep.subr.bf16.mxu0 %v10682_v60  ;;  %v8902_v57 = vmul.f32 -1.442695, %v13089_v21  ;;  %v8903_v60 = vmul.f32 -1.442695, %v13091_v52 }
 0x351   :  { %7978 = vmatprep.subr.bf16.mxu1 %v10685_v61  ;;  %v10734_v61 = vld [vmem:[%s14528_s3 + $0x5a0] ss:$16 sps:$4 sm:$0xff]  }
 0x352   :  { %11032 = vpow2.f32 %v8902_v57 }
 0x353   :  { %7721 = vmatpush1.bf16.msra.mxu0 %v10680_v62  ;;  %v8913_v62 = vmul.f32 -1.442695, %v13093_v35  ;;  %11034 = vpow2.f32 %v8903_v60 }
 0x354   :  { %7979 = vmatpush1.bf16.msra.mxu1 %v10683_v63  ;;  %7722 = vmatprep.subr.bf16.mxu0 %v10688_v18  ;;  %v10737_v63 = vld [vmem:[%s14528_s3 + $0x5a8] ss:$16 sps:$4 sm:$0xff]   ;;  %v10742_v18 = vld [vmem:[%s14528_s3 + $0x5c4] ss:$16 sps:$4 sm:$0xff]  }
 0x355   :  { %v5242_v13 = vpop.f32.mrb[16].mxu0  ;;  %7980 = vmatprep.subr.bf16.mxu1 %v10691_v0  ;;  %11036 = vpow2.f32 %v8913_v62 }
 0x356   :  { %v5579_v17 = vmul.f32 %v5557_v2, %v5242_v13  ;;  %v5244_v5 = vpop.f32.mrb[17].mxu0  ;;  %v10748_v13 = vld [vmem:[%s14528_s3 + $0x5e4] ss:$16 sps:$4 sm:$0xff]   ;;  %11038 = vpow2.f32 %v8914_v44 }
 0x357   :  { %v5580_v19 = vmul.f32 %v5558_v59, %v5244_v5  ;;  %v5246_v20 = vpop.f32.mrb[18].mxu0  ;;  %7723 = vmatpush1.bf16.msra.mxu0 %v10686_v45  ;;  %v8904_v45 = vmul.f32 -1.442695, %v12880_v56  ;;  %v10743_v59 = vld [vmem:[%s14528_s3 + $0x5c8] ss:$16 sps:$4 sm:$0xff]  }
 0x358   :  { %v5590_v10 = vmul.f32 %v5568_v8, %v5246_v20  ;;  %7981 = vmatpush1.bf16.msra.mxu1 %v10689_v3  ;;  %v5248_v22 = vpop.f32.mrb[19].mxu0  ;;  %7724 = vmatprep.subr.bf16.mxu0 %v10694_v4  ;;  %v10740_v3 = vld [vmem:[%s14528_s3 + $0x5c0] ss:$16 sps:$4 sm:$0xff]   ;;  %v10757_v20 = vld [vmem:[%s14528_s3 + $0x60c] ss:$16 sps:$4 sm:$0xff]  }
 0x359   :  { %v5591_v16 = vmul.f32 %v5569_v47, %v5248_v22  ;;  %7982 = vmatprep.subr.bf16.mxu1 %v10697_v14  ;;  %v8915_v14 = vmul.f32 -1.442695, %v12883_v58  ;;  %11040 = vpow2.f32 %v8904_v45  ;;  %v10746_v5 = vld [vmem:[%s14528_s3 + $0x5e0] ss:$16 sps:$4 sm:$0xff]   ;;  %v10749_v47 = vld [vmem:[%s14528_s3 + $0x5e8] ss:$16 sps:$4 sm:$0xff]  }
 0x35a   :  { %v13939_v24 = vpack.c.bf16 %v5590_v10, %v5579_v17  ;;  %v10751_v17 = vld [vmem:[%s14528_s3 + $0x5ec] ss:$16 sps:$4 sm:$0xff]   ;;  %v10755_v22 = vld [vmem:[%s14528_s3 + $0x608] ss:$16 sps:$4 sm:$0xff]   ;;  %v10790_v44 = vld [vmem:[%s14528_s3 + $0x6c4] ss:$16 sps:$4 sm:$0xff]  }
 0x35b   :  { %v13941_v25 = vpack.c.bf16 %v5591_v16, %v5580_v19  ;;  %7725 = vmatpush1.bf16.msra.mxu0 %v10692_v30  ;;  %v10754_v19 = vld [vmem:[%s14528_s3 + $0x604] ss:$16 sps:$4 sm:$0xff]   ;;  %11042 = vpow2.f32 %v8915_v14  ;;  %v10752_v30 = vld [vmem:[%s14528_s3 + $0x600] ss:$16 sps:$4 sm:$0xff]   ;;  %v10793_v45 = vld [vmem:[%s14528_s3 + $0x6cc] ss:$16 sps:$4 sm:$0xff]  }
 0x35c   :  { %7983 = vmatpush1.bf16.msra.mxu1 %v10695_v23  ;;  %7726 = vmatprep.subr.bf16.mxu0 %v10700_v12  ;;  %v11033_v10 = vpop.eup %11032  ;;  %v10760_v12 = vld [vmem:[%s14528_s3 + $0x624] ss:$16 sps:$4 sm:$0xff]  }
 0x35d   :  { %7984 = vmatprep.subr.bf16.mxu1 %v10703_v51  ;;  %v11035_v23 = vpop.eup %11034  ;;  %v10763_v51 = vld [vmem:[%s14528_s3 + $0x62c] ss:$16 sps:$4 sm:$0xff]  }
 0x35f   :  { %7727 = vmatpush1.bf16.msra.mxu0 %v10698_v26  ;;  %v11037_v16 = vpop.eup %11036 }
 0x360   :  { %7985 = vmatpush1.bf16.msra.mxu1 %v10701_v6  ;;  %7728 = vmatprep.subr.bf16.mxu0 %v10706_v27  ;;  %v11039_v26 = vpop.eup %11038  ;;  %v5493_v6 = vadd.f32 1.0, %v11033_v10  ;;  %v10758_v27 = vld [vmem:[%s14528_s3 + $0x620] ss:$16 sps:$4 sm:$0xff]  }
 0x361   :  { %7986 = vmatprep.subr.bf16.mxu1 %v10709_v28  ;;  %v5494_v28 = vadd.f32 1.0, %v11035_v23 }
 0x362   :  { %11044 = vrcp.f32 %v5493_v6 }
 0x363   :  { %7729 = vmatpush1.bf16.msra.mxu0 %v10704_v29  ;;  %v10761_v29 = vld [vmem:[%s14528_s3 + $0x628] ss:$16 sps:$4 sm:$0xff]   ;;  %11046 = vrcp.f32 %v5494_v28 }
 0x364   :  { %7987 = vmatpush1.bf16.msra.mxu1 %v10707_v31  ;;  %7730 = vmatprep.subr.bf16.mxu0 %v10712_v39  ;;  %v10766_v31 = vld [vmem:[%s14528_s3 + $0x644] ss:$16 sps:$4 sm:$0xff]   ;;  %v11041_v39 = vpop.eup %11040 }
 0x365   :  { %7988 = vmatprep.subr.bf16.mxu1 %v10715_v38  ;;  %v5504_v38 = vadd.f32 1.0, %v11037_v16 }
 0x367   :  { %7731 = vmatpush1.bf16.msra.mxu0 %v10710_v9  ;;  %v5505_v9 = vadd.f32 1.0, %v11039_v26  ;;  %11048 = vrcp.f32 %v5504_v38  ;;  %v10800_v38 = vld [vmem:[%s14528_s3 + $0x700] ss:$16 sps:$4 sm:$0xff]  }
 0x368   :  { %7989 = vmatpush1.bf16.msra.mxu1 %v10713_v32  ;;  %7732 = vmatprep.subr.bf16.mxu0 %v10718_v46  ;;  %v11043_v32 = vpop.eup %11042  ;;  %v10764_v46 = vld [vmem:[%s14528_s3 + $0x640] ss:$16 sps:$4 sm:$0xff]  }
 0x369   :  { %7990 = vmatprep.subr.bf16.mxu1 %v10721_v11  ;;  %v5495_v11 = vadd.f32 1.0, %v11041_v39  ;;  %11050 = vrcp.f32 %v5505_v9  ;;  %v10808_v9 = vld [vmem:[%s14528_s3 + $0x724] ss:$16 sps:$4 sm:$0xff]  }
 0x36b   :  { %7733 = vmatpush1.bf16.msra.mxu0 %v10716_v15  ;;  %v10772_v15 = vld [vmem:[%s14528_s3 + $0x664] ss:$16 sps:$4 sm:$0xff]   ;;  %11052 = vrcp.f32 %v5495_v11  ;;  %v10809_v11 = vld [vmem:[%s14528_s3 + $0x728] ss:$16 sps:$4 sm:$0xff]  }
 0x36c   :  { %7991 = vmatpush1.bf16.msra.mxu1 %v10719_v7  ;;  %7734 = vmatprep.subr.bf16.mxu0 %v10724_v41  ;;  %v10775_v7 = vld [vmem:[%s14528_s3 + $0x66c] ss:$16 sps:$4 sm:$0xff]   ;;  %v5506_v41 = vadd.f32 1.0, %v11043_v32 }
 0x36d   :  { %7992 = vmatprep.subr.bf16.mxu1 %v10727_v42  ;;  %v10770_v42 = vld [vmem:[%s14528_s3 + $0x660] ss:$16 sps:$4 sm:$0xff]   ;;  %v10811_v32 = vld [vmem:[%s14528_s3 + $0x72c] ss:$16 sps:$4 sm:$0xff]  }
 0x36e   :  { %11054 = vrcp.f32 %v5506_v41  ;;  %v10815_v41 = vld [vmem:[%s14528_s3 + $0x748] ss:$16 sps:$4 sm:$0xff]  }
 0x36f   :  { %7735 = vmatpush1.bf16.msra.mxu0 %v10722_v48  ;;  %v10773_v48 = vld [vmem:[%s14528_s3 + $0x668] ss:$16 sps:$4 sm:$0xff]  }
 0x370   :  { %7993 = vmatpush1.bf16.msra.mxu1 %v10725_v37  ;;  %7736 = vmatprep.subr.bf16.mxu0 %v10730_v43  ;;  %v10778_v37 = vld [vmem:[%s14528_s3 + $0x684] ss:$16 sps:$4 sm:$0xff]   ;;  %v10781_v43 = vld [vmem:[%s14528_s3 + $0x68c] ss:$16 sps:$4 sm:$0xff]  }
 0x371   :  { %7994 = vmatprep.subr.bf16.mxu1 %v10733_v49  ;;  %v10776_v49 = vld [vmem:[%s14528_s3 + $0x680] ss:$16 sps:$4 sm:$0xff]  }
 0x373   :  { %7737 = vmatpush1.bf16.msra.mxu0 %v10728_v33  ;;  %v10779_v33 = vld [vmem:[%s14528_s3 + $0x688] ss:$16 sps:$4 sm:$0xff]  }
 0x374   :  { %7995 = vmatpush1.bf16.msra.mxu1 %v10731_v34  ;;  %7738 = vmatprep.subr.bf16.mxu0 %v10736_v54  ;;  %v10784_v34 = vld [vmem:[%s14528_s3 + $0x6a4] ss:$16 sps:$4 sm:$0xff]   ;;  %v11045_v54 = vpop.eup %11044 }
 0x375   :  { %v9322_v0 = vpop.f32.mrb[20].mxu0  ;;  %7996 = vmatprep.subr.bf16.mxu1 %v10739_v55  ;;  %v10787_v55 = vld [vmem:[%s14528_s3 + $0x6ac] ss:$16 sps:$4 sm:$0xff]   ;;  %v11047_v57 = vpop.eup %11046 }
 0x376   :  { %v9323_v1 = vpop.f32.mrb[21].mxu0  ;;  %v11049_v60 = vpop.eup %11048 }
 0x377   :  { %v14032_v36 = vadd.f32 %v9323_v1, %v9322_v0  ;;  %v9325_v2 = vpop.f32.mrb[22].mxu0  ;;  %7739 = vmatpush1.bf16.msra.mxu0 %v10734_v61  ;;  %v10782_v61 = vld [vmem:[%s14528_s3 + $0x6a0] ss:$16 sps:$4 sm:$0xff]   ;;  %v11051_v62 = vpop.eup %11050  ;;  %v5560_v0 = vmul.f32 %v11047_v57, %v13091_v52  ;;  %v10835_v57 = vld [vmem:[%s14528_s3 + $0x7ac] ss:$16 sps:$4 sm:$0xff]  }
 0x378   :  { %7997 = vmatpush1.bf16.msra.mxu1 %v10737_v63  ;;  %v9326_v4 = vpop.f32.mrb[23].mxu0  ;;  %7740 = vmatprep.subr.bf16.mxu0 %v10742_v18  ;;  %v5559_v63 = vmul.f32 %v11045_v54, %v13089_v21  ;;  %v10785_v18 = vld [vmem:[%s14528_s3 + $0x6a8] ss:$16 sps:$4 sm:$0xff]   ;;  %v11053_v21 = vpop.eup %11052  ;;  %v10788_v52 = vld [vmem:[%s14528_s3 + $0x6c0] ss:$16 sps:$4 sm:$0xff]  }
 0x379   :  { %v14044_v8 = vadd.f32 %v9326_v4, %v9325_v2  ;;  %7998 = vmatprep.subr.bf16.mxu1 %v10745_v53  ;;  %v5570_v2 = vmul.f32 %v11049_v60, %v13093_v35  ;;  %v10791_v35 = vld [vmem:[%s14528_s3 + $0x6c8] ss:$16 sps:$4 sm:$0xff]   ;;  %v10830_v60 = vld [vmem:[%s14528_s3 + $0x7a0] ss:$16 sps:$4 sm:$0xff]  }
 0x37a   :  { %v10827_v54 = vld [vmem:[%s14528_s3 + $0x788] ss:$16 sps:$4 sm:$0xff]  }
 0x37b   :  { %7741 = vmatpush1.bf16.msra.mxu0 %v10740_v3 }
 0x37c   :  { %7999 = vmatpush1.bf16.msra.mxu1 %v10743_v59  ;;  %7742 = vmatprep.subr.bf16.mxu0 %v10748_v13  ;;  %v5571_v13 = vmul.f32 %v11051_v62, %v13101_v50  ;;  %v10796_v50 = vld [vmem:[%s14528_s3 + $0x6e4] ss:$16 sps:$4 sm:$0xff]  }
 0x37d   :  { %8000 = vmatprep.subr.bf16.mxu1 %v10751_v17  ;;  %v10838_v62 = vld [vmem:[%s14528_s3 + $0x7c4] ss:$16 sps:$4 sm:$0xff]  }
 0x37f   :  { %7743 = vmatpush1.bf16.msra.mxu0 %v10746_v5 }
 0x380   :  { %8001 = vmatpush1.bf16.msra.mxu1 %v10749_v47  ;;  %7755 = vmatprep.subr.bf16.mxu0 %v10754_v19  ;;  %v11055_v19 = vpop.eup %11054 }
 0x381   :  { %8013 = vmatprep.subr.bf16.mxu1 %v10757_v20  ;;  %v5572_v6 = vmul.f32 %v11055_v19, %v12883_v58  ;;  %v10802_v58 = vld [vmem:[%s14528_s3 + $0x704] ss:$16 sps:$4 sm:$0xff]  }
 0x382   :  { %7745 = vmatmul.mubr.bf16.vlgmr.msra.gmra.mrb[28].mxu0 %v13731_v40  ;;  %v10868_v19 = vld [vmem:[%s14528_s3 + $0x864] ss:$16 sps:$4 sm:$0xff]  }
 0x383   :  { %8003 = vmatmul.mubr.bf16.vlgmr.msra.gmra.mrb[28].mxu1 %v13731_v40  ;;  %7756 = vmatpush1.bf16.msra.mxu0 %v10752_v30  ;;  %v10769_v40 = vld [vmem:[%s14528_s3 + $0x64c] ss:$16 sps:$4 sm:$0xff]  }
 0x384   :  { %7787 = vmatprep.mubr.bf16.mxu0 %v13941_v25  ;;  %8014 = vmatpush1.bf16.msra.mxu1 %v10755_v22  ;;  %v5561_v22 = vmul.f32 %v11053_v21, %v12880_v56  ;;  %v10794_v56 = vld [vmem:[%s14528_s3 + $0x6e0] ss:$16 sps:$4 sm:$0xff]   ;;  %v10850_v21 = vld [vmem:[%s14528_s3 + $0x804] ss:$16 sps:$4 sm:$0xff]  }
 0x385   :  { %8045 = vmatprep.mubr.bf16.mxu1 %v13941_v25  ;;  %7757 = vmatprep.subr.bf16.mxu0 %v10760_v12  ;;  %v10767_v25 = vld [vmem:[%s14528_s3 + $0x648] ss:$16 sps:$4 sm:$0xff]  }
 0x386   :  { %8015 = vmatprep.subr.bf16.mxu1 %v10763_v51  ;;  %v10799_v51 = vld [vmem:[%s14528_s3 + $0x6ec] ss:$16 sps:$4 sm:$0xff]  }
 0x387   :  { %7758 = vmatpush1.bf16.msra.mxu0 %v10758_v27 }
 0x388   :  { %8016 = vmatpush1.bf16.msra.mxu1 %v10761_v29  ;;  %7759 = vmatprep.subr.bf16.mxu0 %v10766_v31 }
 0x389   :  { %8017 = vmatprep.subr.bf16.mxu1 %v10769_v40  ;;  %v10803_v40 = vld [vmem:[%s14528_s3 + $0x708] ss:$16 sps:$4 sm:$0xff]  }
 0x38b   :  { %7760 = vmatpush1.bf16.msra.mxu0 %v10764_v46  ;;  %v10806_v46 = vld [vmem:[%s14528_s3 + $0x720] ss:$16 sps:$4 sm:$0xff]  }
 0x38c   :  { %8018 = vmatpush1.bf16.msra.mxu1 %v10767_v25  ;;  %7761 = vmatprep.subr.bf16.mxu0 %v10772_v15  ;;  %v10814_v25 = vld [vmem:[%s14528_s3 + $0x744] ss:$16 sps:$4 sm:$0xff]   ;;  %v10817_v15 = vld [vmem:[%s14528_s3 + $0x74c] ss:$16 sps:$4 sm:$0xff]  }
 0x38d   :  { %8019 = vmatprep.subr.bf16.mxu1 %v10775_v7  ;;  %v10812_v7 = vld [vmem:[%s14528_s3 + $0x740] ss:$16 sps:$4 sm:$0xff]  }
 0x38f   :  { %7762 = vmatpush1.bf16.msra.mxu0 %v10770_v42  ;;  %v10820_v42 = vld [vmem:[%s14528_s3 + $0x764] ss:$16 sps:$4 sm:$0xff]  }
 0x390   :  { %8020 = vmatpush1.bf16.msra.mxu1 %v10773_v48  ;;  %7763 = vmatprep.subr.bf16.mxu0 %v10778_v37  ;;  %v10823_v48 = vld [vmem:[%s14528_s3 + $0x76c] ss:$16 sps:$4 sm:$0xff]   ;;  %v10818_v37 = vld [vmem:[%s14528_s3 + $0x760] ss:$16 sps:$4 sm:$0xff]  }
 0x391   :  { %8021 = vmatprep.subr.bf16.mxu1 %v10781_v43  ;;  %v10821_v43 = vld [vmem:[%s14528_s3 + $0x768] ss:$16 sps:$4 sm:$0xff]  }
 0x393   :  { %7764 = vmatpush1.bf16.msra.mxu0 %v10776_v49  ;;  %v10826_v49 = vld [vmem:[%s14528_s3 + $0x784] ss:$16 sps:$4 sm:$0xff]  }
 0x394   :  { %8022 = vmatpush1.bf16.msra.mxu1 %v10779_v33  ;;  %7765 = vmatprep.subr.bf16.mxu0 %v10784_v34  ;;  %v10829_v33 = vld [vmem:[%s14528_s3 + $0x78c] ss:$16 sps:$4 sm:$0xff]   ;;  %v10824_v34 = vld [vmem:[%s14528_s3 + $0x780] ss:$16 sps:$4 sm:$0xff]  }
 0x395   :  { %v5328_v53 = vpop.f32.mrb[24].mxu1  ;;  %v9344_v1 = vpop.f32.mrb[24].mxu0  ;;  %8023 = vmatprep.subr.bf16.mxu1 %v10787_v55  ;;  %v10832_v55 = vld [vmem:[%s14528_s3 + $0x7a4] ss:$16 sps:$4 sm:$0xff]  }
 0x396   :  { %v5581_v3 = vmul.f32 %v5559_v63, %v5328_v53  ;;  %v5330_v4 = vpop.f32.mrb[25].mxu1  ;;  %v9345_v59 = vpop.f32.mrb[25].mxu0  ;;  %v10841_v63 = vld [vmem:[%s14528_s3 + $0x7cc] ss:$16 sps:$4 sm:$0xff]  }
 0x397   :  { %v5582_v14 = vmul.f32 %v5560_v0, %v5330_v4  ;;  %v9346_v17 = vadd.f32 %v9345_v59, %v9344_v1  ;;  %v5332_v5 = vpop.f32.mrb[26].mxu1  ;;  %v9347_v47 = vpop.f32.mrb[26].mxu0  ;;  %7766 = vmatpush1.bf16.msra.mxu0 %v10782_v61  ;;  %v10833_v61 = vld [vmem:[%s14528_s3 + $0x7a8] ss:$16 sps:$4 sm:$0xff]   ;;  %v10844_v0 = vld [vmem:[%s14528_s3 + $0x7e4] ss:$16 sps:$4 sm:$0xff]  }
 0x398   :  { %v5592_v20 = vmul.f32 %v5570_v2, %v5332_v5  ;;  %8024 = vmatpush1.bf16.msra.mxu1 %v10785_v18  ;;  %v5334_v30 = vpop.f32.mrb[27].mxu1  ;;  %v9348_v10 = vpop.f32.mrb[27].mxu0  ;;  %7767 = vmatprep.subr.bf16.mxu0 %v10790_v44  ;;  %v10836_v18 = vld [vmem:[%s14528_s3 + $0x7c0] ss:$16 sps:$4 sm:$0xff]   ;;  %v10839_v44 = vld [vmem:[%s14528_s3 + $0x7c8] ss:$16 sps:$4 sm:$0xff]  }
 0x399   :  { %v5413_v23 = vadd.f32 %v9346_v17, %v14032_v36  ;;  %v5593_v12 = vmul.f32 %v5571_v13, %v5334_v30  ;;  %v9349_v16 = vadd.f32 %v9348_v10, %v9347_v47  ;;  %8025 = vmatprep.subr.bf16.mxu1 %v10793_v45  ;;  %v10797_v36 = vld [vmem:[%s14528_s3 + $0x6e8] ss:$16 sps:$4 sm:$0xff]   ;;  %v10847_v53 = vld [vmem:[%s14528_s3 + $0x7ec] ss:$16 sps:$4 sm:$0xff]   ;;  %v10842_v1 = vld [vmem:[%s14528_s3 + $0x7e0] ss:$16 sps:$4 sm:$0xff]  }
 0x39a   :  { %v14155_v26 = vpack.c.bf16 %v5592_v20, %v5581_v3  ;;  %v10845_v45 = vld [vmem:[%s14528_s3 + $0x7e8] ss:$16 sps:$4 sm:$0xff]   ;;  %v10853_v2 = vld [vmem:[%s14528_s3 + $0x80c] ss:$16 sps:$4 sm:$0xff]   ;;  %v10848_v3 = vld [vmem:[%s14528_s3 + $0x800] ss:$16 sps:$4 sm:$0xff]  }
 0x39b   :  { %v5583_v27 = vmul.f32 %v5561_v22, %v5413_v23  ;;  %v14158_v28 = vpack.c.bf16 %v5593_v12, %v5582_v14  ;;  %v5416_v29 = vadd.f32 %v9349_v16, %v14044_v8  ;;  %7768 = vmatpush1.bf16.msra.mxu0 %v10788_v52  ;;  %v10805_v8 = vld [vmem:[%s14528_s3 + $0x70c] ss:$16 sps:$4 sm:$0xff]   ;;  %v10851_v4 = vld [vmem:[%s14528_s3 + $0x808] ss:$16 sps:$4 sm:$0xff]   ;;  %v10856_v59 = vld [vmem:[%s14528_s3 + $0x824] ss:$16 sps:$4 sm:$0xff]  }
 0x39c   :  { %8026 = vmatpush1.bf16.msra.mxu1 %v10791_v35  ;;  %7769 = vmatprep.subr.bf16.mxu0 %v10796_v50  ;;  %v10859_v13 = vld [vmem:[%s14528_s3 + $0x82c] ss:$16 sps:$4 sm:$0xff]   ;;  %v10854_v14 = vld [vmem:[%s14528_s3 + $0x820] ss:$16 sps:$4 sm:$0xff]   ;;  %v10857_v17 = vld [vmem:[%s14528_s3 + $0x828] ss:$16 sps:$4 sm:$0xff]  }
 0x39d   :  { %v5594_v31 = vmul.f32 %v5572_v6, %v5416_v29  ;;  %8027 = vmatprep.subr.bf16.mxu1 %v10799_v51  ;;  %v10862_v5 = vld [vmem:[%s14528_s3 + $0x844] ss:$16 sps:$4 sm:$0xff]   ;;  %v10860_v47 = vld [vmem:[%s14528_s3 + $0x840] ss:$16 sps:$4 sm:$0xff]   ;;  %v10863_v52 = vld [vmem:[%s14528_s3 + $0x848] ss:$16 sps:$4 sm:$0xff]  }
 0x39e   :  { %v10871_v20 = vld [vmem:[%s14528_s3 + $0x86c] ss:$16 sps:$4 sm:$0xff]   ;;  %v10866_v30 = vld [vmem:[%s14528_s3 + $0x860] ss:$16 sps:$4 sm:$0xff]   ;;  %v10869_v10 = vld [vmem:[%s14528_s3 + $0x868] ss:$16 sps:$4 sm:$0xff]  }
 0x39f   :  { %v14173_v39 = vpack.c.bf16 %v5594_v31, %v5583_v27  ;;  %7770 = vmatpush1.bf16.msra.mxu0 %v10794_v56  ;;  %v10874_v35 = vld [vmem:[%s14528_s3 + $0x884] ss:$16 sps:$4 sm:$0xff]   ;;  %v10877_v50 = vld [vmem:[%s14528_s3 + $0x88c] ss:$16 sps:$4 sm:$0xff]   ;;  %v10872_v22 = vld [vmem:[%s14528_s3 + $0x880] ss:$16 sps:$4 sm:$0xff]  }
 0x3a0   :  { %8028 = vmatpush1.bf16.msra.mxu1 %v10797_v36  ;;  %7771 = vmatprep.subr.bf16.mxu0 %v10802_v58  ;;  %v10875_v23 = vld [vmem:[%s14528_s3 + $0x888] ss:$16 sps:$4 sm:$0xff]   ;;  %v10880_v12 = vld [vmem:[%s14528_s3 + $0x8a4] ss:$16 sps:$4 sm:$0xff]   ;;  %v10883_v16 = vld [vmem:[%s14528_s3 + $0x8ac] ss:$16 sps:$4 sm:$0xff]  }
 0x3a1   :  { %8029 = vmatprep.subr.bf16.mxu1 %v10805_v8  ;;  %v10878_v51 = vld [vmem:[%s14528_s3 + $0x8a0] ss:$16 sps:$4 sm:$0xff]   ;;  %v10881_v6 = vld [vmem:[%s14528_s3 + $0x8a8] ss:$16 sps:$4 sm:$0xff]   ;;  %v10886_v27 = vld [vmem:[%s14528_s3 + $0x8c4] ss:$16 sps:$4 sm:$0xff]  }
 0x3a2   :  { %v10884_v29 = vld [vmem:[%s14528_s3 + $0x8c0] ss:$16 sps:$4 sm:$0xff]   ;;  %v10887_v56 = vld [vmem:[%s14528_s3 + $0x8c8] ss:$16 sps:$4 sm:$0xff]   ;;  %v10892_v36 = vld [vmem:[%s14528_s3 + $0x8e4] ss:$16 sps:$4 sm:$0xff]  }
 0x3a3   :  { %7772 = vmatpush1.bf16.msra.mxu0 %v10800_v38  ;;  %v10895_v58 = vld [vmem:[%s14528_s3 + $0x8ec] ss:$16 sps:$4 sm:$0xff]   ;;  %v10890_v31 = vld [vmem:[%s14528_s3 + $0x8e0] ss:$16 sps:$4 sm:$0xff]   ;;  %v10893_v8 = vld [vmem:[%s14528_s3 + $0x8e8] ss:$16 sps:$4 sm:$0xff]  }
 0x3a4   :  { %8030 = vmatpush1.bf16.msra.mxu1 %v10803_v40  ;;  %7773 = vmatprep.subr.bf16.mxu0 %v10808_v9  ;;  %v10898_v38 = vld [vmem:[%s14528_s3 + $0x904] ss:$16 sps:$4 sm:$0xff]   ;;  %v10901_v40 = vld [vmem:[%s14528_s3 + $0x90c] ss:$16 sps:$4 sm:$0xff]   ;;  %v10896_v9 = vld [vmem:[%s14528_s3 + $0x900] ss:$16 sps:$4 sm:$0xff]  }
 0x3a5   :  { %8031 = vmatprep.subr.bf16.mxu1 %v10811_v32  ;;  %v10899_v32 = vld [vmem:[%s14528_s3 + $0x908] ss:$16 sps:$4 sm:$0xff]  }
 0x3a7   :  { %7774 = vmatpush1.bf16.msra.mxu0 %v10806_v46  ;;  %v10904_v46 = vld [vmem:[%s14528_s3 + $0x924] ss:$16 sps:$4 sm:$0xff]  }
 0x3a8   :  { %8032 = vmatpush1.bf16.msra.mxu1 %v10809_v11  ;;  %7775 = vmatprep.subr.bf16.mxu0 %v10814_v25  ;;  %v10907_v11 = vld [vmem:[%s14528_s3 + $0x92c] ss:$16 sps:$4 sm:$0xff]   ;;  %v10902_v25 = vld [vmem:[%s14528_s3 + $0x920] ss:$16 sps:$4 sm:$0xff]  }
 0x3a9   :  { %8033 = vmatprep.subr.bf16.mxu1 %v10817_v15  ;;  %v10905_v15 = vld [vmem:[%s14528_s3 + $0x928] ss:$16 sps:$4 sm:$0xff]  }
 0x3ab   :  { %7776 = vmatpush1.bf16.msra.mxu0 %v10812_v7  ;;  %v10910_v7 = vld [vmem:[%s14528_s3 + $0x944] ss:$16 sps:$4 sm:$0xff]  }
 0x3ac   :  { %8034 = vmatpush1.bf16.msra.mxu1 %v10815_v41  ;;  %7777 = vmatprep.subr.bf16.mxu0 %v10820_v42  ;;  %v10913_v41 = vld [vmem:[%s14528_s3 + $0x94c] ss:$16 sps:$4 sm:$0xff]   ;;  %v10908_v42 = vld [vmem:[%s14528_s3 + $0x940] ss:$16 sps:$4 sm:$0xff]  }
 0x3ad   :  { %8035 = vmatprep.subr.bf16.mxu1 %v10823_v48  ;;  %v10911_v48 = vld [vmem:[%s14528_s3 + $0x948] ss:$16 sps:$4 sm:$0xff]  }
 0x3af   :  { %7778 = vmatpush1.bf16.msra.mxu0 %v10818_v37  ;;  %v10916_v37 = vld [vmem:[%s14528_s3 + $0x964] ss:$16 sps:$4 sm:$0xff]  }
 0x3b0   :  { %8036 = vmatpush1.bf16.msra.mxu1 %v10821_v43  ;;  %7779 = vmatprep.subr.bf16.mxu0 %v10826_v49  ;;  %v10919_v43 = vld [vmem:[%s14528_s3 + $0x96c] ss:$16 sps:$4 sm:$0xff]   ;;  %v10914_v49 = vld [vmem:[%s14528_s3 + $0x960] ss:$16 sps:$4 sm:$0xff]  }
 0x3b1   :  { %8037 = vmatprep.subr.bf16.mxu1 %v10829_v33  ;;  %v10917_v33 = vld [vmem:[%s14528_s3 + $0x968] ss:$16 sps:$4 sm:$0xff]  }
 0x3b3   :  { %7780 = vmatpush1.bf16.msra.mxu0 %v10824_v34  ;;  %v10922_v34 = vld [vmem:[%s14528_s3 + $0x984] ss:$16 sps:$4 sm:$0xff]  }
 0x3b4   :  { %8038 = vmatpush1.bf16.msra.mxu1 %v10827_v54  ;;  %7781 = vmatprep.subr.bf16.mxu0 %v10832_v55  ;;  %v10925_v54 = vld [vmem:[%s14528_s3 + $0x98c] ss:$16 sps:$4 sm:$0xff]   ;;  %v10920_v55 = vld [vmem:[%s14528_s3 + $0x980] ss:$16 sps:$4 sm:$0xff]  }
 0x3b5   :  { %8039 = vmatprep.subr.bf16.mxu1 %v10835_v57  ;;  %v10923_v57 = vld [vmem:[%s14528_s3 + $0x988] ss:$16 sps:$4 sm:$0xff]  }
 0x3b7   :  { %7782 = vmatpush1.bf16.msra.mxu0 %v10830_v60  ;;  %v10928_v60 = vld [vmem:[%s14528_s3 + $0x9a4] ss:$16 sps:$4 sm:$0xff]  }
 0x3b8   :  { %8040 = vmatpush1.bf16.msra.mxu1 %v10833_v61  ;;  %7783 = vmatprep.subr.bf16.mxu0 %v10838_v62  ;;  %v10931_v61 = vld [vmem:[%s14528_s3 + $0x9ac] ss:$16 sps:$4 sm:$0xff]   ;;  %v10926_v62 = vld [vmem:[%s14528_s3 + $0x9a0] ss:$16 sps:$4 sm:$0xff]  }
 0x3b9   :  { %8041 = vmatprep.subr.bf16.mxu1 %v10841_v63  ;;  %v10929_v63 = vld [vmem:[%s14528_s3 + $0x9a8] ss:$16 sps:$4 sm:$0xff]  }
 0x3bb   :  { %7784 = vmatpush1.bf16.msra.mxu0 %v10836_v18  ;;  %v10934_v18 = vld [vmem:[%s14528_s3 + $0x9c4] ss:$16 sps:$4 sm:$0xff]  }
 0x3bc   :  { %8042 = vmatpush1.bf16.msra.mxu1 %v10839_v44  ;;  %7785 = vmatprep.subr.bf16.mxu0 %v10844_v0  ;;  %v10937_v44 = vld [vmem:[%s14528_s3 + $0x9cc] ss:$16 sps:$4 sm:$0xff]   ;;  %v10932_v0 = vld [vmem:[%s14528_s3 + $0x9c0] ss:$16 sps:$4 sm:$0xff]  }
 0x3bd   :  { %8043 = vmatprep.subr.bf16.mxu1 %v10847_v53  ;;  %v10935_v53 = vld [vmem:[%s14528_s3 + $0x9c8] ss:$16 sps:$4 sm:$0xff]  }
 0x3bf   :  { %7786 = vmatpush1.bf16.msra.mxu0 %v10842_v1  ;;  %v10940_v1 = vld [vmem:[%s14528_s3 + $0x9e4] ss:$16 sps:$4 sm:$0xff]  }
 0x3c0   :  { %8044 = vmatpush1.bf16.msra.mxu1 %v10845_v45  ;;  %7798 = vmatprep.subr.bf16.mxu0 %v10850_v21  ;;  %v10943_v45 = vld [vmem:[%s14528_s3 + $0x9ec] ss:$16 sps:$4 sm:$0xff]   ;;  %v10938_v21 = vld [vmem:[%s14528_s3 + $0x9e0] ss:$16 sps:$4 sm:$0xff]  }
 0x3c1   :  { %8056 = vmatprep.subr.bf16.mxu1 %v10853_v2  ;;  %v10941_v2 = vld [vmem:[%s14528_s3 + $0x9e8] ss:$16 sps:$4 sm:$0xff]  }
 0x3c2   :  { %7788 = vmatmul.mubr.bf16.vlgmr.msra.gmra.mrb[28].mxu0 %v13939_v24 }
 0x3c3   :  { %8046 = vmatmul.mubr.bf16.vlgmr.msra.gmra.mrb[28].mxu1 %v13939_v24  ;;  %7799 = vmatpush1.bf16.msra.mxu0 %v10848_v3  ;;  %v10865_v24 = vld [vmem:[%s14528_s3 + $0x84c] ss:$16 sps:$4 sm:$0xff]   ;;  %v10946_v3 = vld [vmem:[%s14528_s3 + $0xa04] ss:$16 sps:$4 sm:$0xff]  }
 0x3c4   :  { %7830 = vmatprep.mubr.bf16.mxu0 %v14158_v28  ;;  %8057 = vmatpush1.bf16.msra.mxu1 %v10851_v4  ;;  %v10949_v4 = vld [vmem:[%s14528_s3 + $0xa0c] ss:$16 sps:$4 sm:$0xff]  }
 0x3c5   :  { %8088 = vmatprep.mubr.bf16.mxu1 %v14158_v28  ;;  %7800 = vmatprep.subr.bf16.mxu0 %v10856_v59  ;;  %v10889_v28 = vld [vmem:[%s14528_s3 + $0x8cc] ss:$16 sps:$4 sm:$0xff]   ;;  %v10944_v59 = vld [vmem:[%s14528_s3 + $0xa00] ss:$16 sps:$4 sm:$0xff]  }
 0x3c6   :  { %8058 = vmatprep.subr.bf16.mxu1 %v10859_v13  ;;  %v10947_v13 = vld [vmem:[%s14528_s3 + $0xa08] ss:$16 sps:$4 sm:$0xff]  }
 0x3c7   :  { %7801 = vmatpush1.bf16.msra.mxu0 %v10854_v14  ;;  %v10952_v14 = vld [vmem:[%s14528_s3 + $0xa24] ss:$16 sps:$4 sm:$0xff]  }
 0x3c8   :  { %8059 = vmatpush1.bf16.msra.mxu1 %v10857_v17  ;;  %7802 = vmatprep.subr.bf16.mxu0 %v10862_v5  ;;  %v10955_v17 = vld [vmem:[%s14528_s3 + $0xa2c] ss:$16 sps:$4 sm:$0xff]   ;;  %v10950_v5 = vld [vmem:[%s14528_s3 + $0xa20] ss:$16 sps:$4 sm:$0xff]  }
 0x3c9   :  { %8060 = vmatprep.subr.bf16.mxu1 %v10865_v24  ;;  %v10953_v24 = vld [vmem:[%s14528_s3 + $0xa28] ss:$16 sps:$4 sm:$0xff]  }
 0x3cb   :  { %7803 = vmatpush1.bf16.msra.mxu0 %v10860_v47  ;;  %v10958_v47 = vld [vmem:[%s14528_s3 + $0xa44] ss:$16 sps:$4 sm:$0xff]  }
 0x3cc   :  { %8061 = vmatpush1.bf16.msra.mxu1 %v10863_v52  ;;  %7804 = vmatprep.subr.bf16.mxu0 %v10868_v19  ;;  %v11092_v52 = vmov 0   ;;  %v10956_v19 = vld [vmem:[%s14528_s3 + $0xa40] ss:$16 sps:$4 sm:$0xff]  }
 0x3cd   :  { %8062 = vmatprep.subr.bf16.mxu1 %v10871_v20  ;;  %v10959_v20 = vld [vmem:[%s14528_s3 + $0xa48] ss:$16 sps:$4 sm:$0xff]  }
 0x3cf   :  { %7805 = vmatpush1.bf16.msra.mxu0 %v10866_v30  ;;  %v10964_v30 = vld [vmem:[%s14528_s3 + $0xa64] ss:$16 sps:$4 sm:$0xff]  }
 0x3d0   :  { %8063 = vmatpush1.bf16.msra.mxu1 %v10869_v10  ;;  %7806 = vmatprep.subr.bf16.mxu0 %v10874_v35  ;;  %v10967_v10 = vld [vmem:[%s14528_s3 + $0xa6c] ss:$16 sps:$4 sm:$0xff]   ;;  %v10962_v35 = vld [vmem:[%s14528_s3 + $0xa60] ss:$16 sps:$4 sm:$0xff]  }
 0x3d1   :  { %8064 = vmatprep.subr.bf16.mxu1 %v10877_v50  ;;  %v10965_v50 = vld [vmem:[%s14528_s3 + $0xa68] ss:$16 sps:$4 sm:$0xff]  }
 0x3d3   :  { %7807 = vmatpush1.bf16.msra.mxu0 %v10872_v22 }
 0x3d4   :  { %8065 = vmatpush1.bf16.msra.mxu1 %v10875_v23  ;;  %7808 = vmatprep.subr.bf16.mxu0 %v10880_v12 }
 0x3d5   :  { %8066 = vmatprep.subr.bf16.mxu1 %v10883_v16 }
 0x3d7   :  { %7809 = vmatpush1.bf16.msra.mxu0 %v10878_v51 }
 0x3d8   :  { %8067 = vmatpush1.bf16.msra.mxu1 %v10881_v6  ;;  %7810 = vmatprep.subr.bf16.mxu0 %v10886_v27 }
 0x3d9   :  { %8068 = vmatprep.subr.bf16.mxu1 %v10889_v28 }
 0x3db   :  { %7811 = vmatpush1.bf16.msra.mxu0 %v10884_v29 }
 0x3dc   :  { %8069 = vmatpush1.bf16.msra.mxu1 %v10887_v56  ;;  %7812 = vmatprep.subr.bf16.mxu0 %v10892_v36 }
 0x3dd   :  { %8070 = vmatprep.subr.bf16.mxu1 %v10895_v58 }
 0x3df   :  { %7813 = vmatpush1.bf16.msra.mxu0 %v10890_v31 }
 0x3e0   :  { %8071 = vmatpush1.bf16.msra.mxu1 %v10893_v8  ;;  %7814 = vmatprep.subr.bf16.mxu0 %v10898_v38 }
 0x3e1   :  { %8072 = vmatprep.subr.bf16.mxu1 %v10901_v40 }
 0x3e3   :  { %7815 = vmatpush1.bf16.msra.mxu0 %v10896_v9 }
 0x3e4   :  { %8073 = vmatpush1.bf16.msra.mxu1 %v10899_v32  ;;  %7816 = vmatprep.subr.bf16.mxu0 %v10904_v46 }
 0x3e5   :  { %8074 = vmatprep.subr.bf16.mxu1 %v10907_v11 }
 0x3e7   :  { %7817 = vmatpush1.bf16.msra.mxu0 %v10902_v25 }
 0x3e8   :  { %8075 = vmatpush1.bf16.msra.mxu1 %v10905_v15  ;;  %7818 = vmatprep.subr.bf16.mxu0 %v10910_v7 }
 0x3e9   :  { %8076 = vmatprep.subr.bf16.mxu1 %v10913_v41 }
 0x3eb   :  { %7819 = vmatpush1.bf16.msra.mxu0 %v10908_v42 }
 0x3ec   :  { %8077 = vmatpush1.bf16.msra.mxu1 %v10911_v48  ;;  %7820 = vmatprep.subr.bf16.mxu0 %v10916_v37 }
 0x3ed   :  { %8078 = vmatprep.subr.bf16.mxu1 %v10919_v43 }
 0x3ef   :  { %7821 = vmatpush1.bf16.msra.mxu0 %v10914_v49 }
 0x3f0   :  { %8079 = vmatpush1.bf16.msra.mxu1 %v10917_v33  ;;  %7822 = vmatprep.subr.bf16.mxu0 %v10922_v34 }
 0x3f1   :  { %8080 = vmatprep.subr.bf16.mxu1 %v10925_v54 }
 0x3f3   :  { %7823 = vmatpush1.bf16.msra.mxu0 %v10920_v55 }
 0x3f4   :  { %8081 = vmatpush1.bf16.msra.mxu1 %v10923_v57  ;;  %7824 = vmatprep.subr.bf16.mxu0 %v10928_v60 }
 0x3f5   :  { %8082 = vmatprep.subr.bf16.mxu1 %v10931_v61 }
 0x3f7   :  { %7825 = vmatpush1.bf16.msra.mxu0 %v10926_v62 }
 0x3f8   :  { %8083 = vmatpush1.bf16.msra.mxu1 %v10929_v63  ;;  %7826 = vmatprep.subr.bf16.mxu0 %v10934_v18 }
 0x3f9   :  { %8084 = vmatprep.subr.bf16.mxu1 %v10937_v44 }
 0x3fb   :  { %7827 = vmatpush1.bf16.msra.mxu0 %v10932_v0 }
 0x3fc   :  { %8085 = vmatpush1.bf16.msra.mxu1 %v10935_v53  ;;  %7828 = vmatprep.subr.bf16.mxu0 %v10940_v1 }
 0x3fd   :  { %8086 = vmatprep.subr.bf16.mxu1 %v10943_v45 }
 0x3ff   :  { %7829 = vmatpush1.bf16.msra.mxu0 %v10938_v21 }
 0x400   :  { %8087 = vmatpush1.bf16.msra.mxu1 %v10941_v2  ;;  %7841 = vmatprep.subr.bf16.mxu0 %v10946_v3 }
 0x401   :  { %8099 = vmatprep.subr.bf16.mxu1 %v10949_v4 }
 0x402   :  { %7831 = vmatmul.mubr.bf16.vlgmr.msra.gmra.mrb[28].mxu0 %v14155_v26 }
 0x403   :  { %8089 = vmatmul.mubr.bf16.vlgmr.msra.gmra.mrb[28].mxu1 %v14155_v26  ;;  %7842 = vmatpush1.bf16.msra.mxu0 %v10944_v59  ;;  %v10961_v26 = vld [vmem:[%s14528_s3 + $0xa4c] ss:$16 sps:$4 sm:$0xff]   ;;  %s11068_s3 = scalar_lea.vmem %s8176_s24, 512 }
 0x404   :  { %8100 = vmatpush1.bf16.msra.mxu1 %v10947_v13  ;;  %7843 = vmatprep.subr.bf16.mxu0 %v10952_v14  ;;  %p11069_p0 = scmp.ne.s32.totalorder %s8176_s24, %s11068_s3  ;;  %p11074_p2 = scmp.lt.s32.totalorder %s11068_s3, %s11068_s3 }
 0x405   :  { %8101 = vmatprep.subr.bf16.mxu1 %v10955_v17  ;;  %7873 = vmatprep.mubr.bf16.mxu0 %v11092_v52 }
 0x406   :  { %8131 = vmatprep.mubr.bf16.mxu1 %v11092_v52  ;;  %p11075_p3 = por %p11074_p2, %p11073_p1 }
 0x407   :  { %7844 = vmatpush1.bf16.msra.mxu0 %v10950_v5 }
 0x408   :  { %8102 = vmatpush1.bf16.msra.mxu1 %v10953_v24  ;;  %7845 = vmatprep.subr.bf16.mxu0 %v10958_v47  ;;  %p11076_p4 = pnand %p11075_p3, %p11069_p0 }
 0x409   :  { %8103 = vmatprep.subr.bf16.mxu1 %v10961_v26 }
 0x40b   :  { %7846 = vmatpush1.bf16.msra.mxu0 %v10956_v19 }
 0x40c   :  { %8104 = vmatpush1.bf16.msra.mxu1 %v10959_v20  ;;  %7847 = vmatprep.subr.bf16.mxu0 %v10964_v30 }
 0x40d   :  { %8105 = vmatprep.subr.bf16.mxu1 %v10967_v10 }
 0x40f   :  { %7848 = vmatpush1.bf16.msra.mxu0 %v10962_v35 }
 0x410   :  { %8106 = vmatpush1.bf16.msra.mxu1 %v10965_v50 }
 0x412   :  { %9252 = vmatmul.mubr.msk.bf16.vlgmr.msra.gmra.mrb[28].mxu0 %vm7622_vm0, %v14173_v39 }
 0x413   :  { %9253 = vmatmul.mubr.msk.bf16.vlgmr.msra.gmra.mrb[28].mxu1 %vm7622_vm0, %v14173_v39 }
 0x4e5   :  { %v7875_v22 = vpop.f32.mrb[28].mxu0 }
 0x4e6   :  { %v8133_v23 = vpop.f32.mrb[28].mxu1  ;;  %v7877_v12 = vpop.f32.mrb[29].mxu0 }
 0x4e7   :  { %v9258_v16 = vpack.c.bf16 %v7877_v12, %v7875_v22  ;;  %v8135_v51 = vpop.f32.mrb[29].mxu1  ;;  %v7879_v6 = vpop.f32.mrb[30].mxu0 }
 0x4e8   :  { %v9259_v27 = vpack.c.bf16 %v8135_v51, %v8133_v23  ;;  %v8137_v28 = vpop.f32.mrb[30].mxu1  ;;  %v7881_v29 = vpop.f32.mrb[31].mxu0 }
 0x4e9   :  { %8166 = vst [vmem:[#allocation2] sm:$0xff] %v9258_v16  ;;  %v9260_v56 = vpack.c.bf16 %v7881_v29, %v7879_v6  ;;  %v8139_v36 = vpop.f32.mrb[31].mxu1 }
 0x4ea   :  { %8167 = vst [vmem:[#allocation2 + $0x8] sm:$0xff] %v9259_v27  ;;  %v9261_v58 = vpack.c.bf16 %v8139_v36, %v8137_v28 }
 0x4eb   :  { %8168 = vst [vmem:[#allocation2 + $0x10] sm:$0xff] %v9260_v56 }
 0x4ec   :  { %8169 = vst [vmem:[#allocation2 + $0x18] sm:$0xff] %v9261_v58 }
 0x4ed   :  { %11079 = shalt.err (!%p11076_p4)
}
 0x4ee   :  { %s11080_s1 = scalar_lea.hbm %s14529_s4, 512 }
 0x4ef   :  { %p11081_p5 = scmp.ne.s32.totalorder %s14529_s4, %s11080_s1  ;;  %p11084_p6 = scmp.lt.u32.totalorder %s11080_s1, %s14529_s4 }
 0x4f1   :  { %p11086_p7 = pnand %p11084_p6, %p11081_p5 }
 0x4f3   :  { %11089 = shalt.err (!%p11086_p7)
}
 0x4f4   :  { %s11094_s30 = smov 256   ;;  %s11095_s5 = smov 16  }
 0x4f5   :  { %8181 = dma.vmem_to_hbm [thread:$0]  %s8176_s24, 512, %s14529_s4, [#allocation3], %s11094_s30, %s11094_s30, %s11095_s5  }
 0x4f6   :  { %11090 = dma.done.wait [#allocation3], 512  }
 0x4f7   :  { %11091 = vsyncadd [#allocation3], 4294966784 }
 0x4f8   :  { %8185 = vsyncpa [#allocation3], 1 }

</bundles_post_ra>
